<compile_context>
chip_gen: v5e
topology: v5e:2x2
jax: 0.10.0
libtpu: 0.0.40
codegen_flags: <defaults>
</compile_context>

<pallas_src>
import numpy as np
import jax
import jax.numpy as jnp
from jax.experimental import pallas as pl
from jax.experimental.pallas import tpu as pltpu


# --------------------------------------------------------------------------- #
# Host-side 1-D interpolation operators (tiny; diff-pad baked in)
# --------------------------------------------------------------------------- #
def _interp_matrix(n_in, n_out):
    """[n_out, n_in] 1-D bilinear interpolation matrix, align_corners=True."""
    A = np.zeros((n_out, n_in), dtype=np.float32)
    if n_in == 1 or n_out == 1:
        A[:, 0] = 1.0
        return A
    src = np.arange(n_out, dtype=np.float64) * (n_in - 1) / (n_out - 1)
    i0 = np.clip(np.floor(src).astype(np.int64), 0, n_in - 1)
    i1 = np.minimum(i0 + 1, n_in - 1)
    frac = (src - i0).astype(np.float32)
    A[np.arange(n_out), i0] += 1.0 - frac
    A[np.arange(n_out), i1] += frac
    return A


def _padded_interp_matrices(h_in, w_in, h_out, w_out):
    """2x bilinear upsample matrices with the UNet diffY/diffX zero-pad baked in.

    Returns ah (h_out, h_in), aw (w_out, w_in) such that
    upsampled_padded[c] = ah @ x[c] @ aw.T   (spatial size (h_out, w_out)).
    """
    ah = np.zeros((h_out, h_in), np.float32)
    aw = np.zeros((w_out, w_in), np.float32)
    dy, dx = h_out - 2 * h_in, w_out - 2 * w_in
    assert dy >= 0 and dx >= 0, "skip connection must be >= 2x the upsampled size"
    ah[dy // 2: dy // 2 + 2 * h_in, :] = _interp_matrix(h_in, 2 * h_in)
    aw[dx // 2: dx // 2 + 2 * w_in, :] = _interp_matrix(w_in, 2 * w_in)
    return ah, aw


# --------------------------------------------------------------------------- #
# Fused kernel: separable upsample + pad + concat + (conv3x3 + BN + ReLU) x 2
# --------------------------------------------------------------------------- #
def _up_fused_kernel(x1_ref, x2_ref, awt_ref, ah_ref, w1_ref, s1_ref, b1_ref,
                     w2_ref, s2_ref, b2_ref, o_ref, xp_ref, mp_ref):
    Hp, Wp, cin = xp_ref.shape
    H, W = Hp - 2, Wp - 2
    cmid = mp_ref.shape[2]
    c2 = x2_ref.shape[1]
    h1 = ah_ref.shape[1]
    c1 = x1_ref.shape[1] // h1
    f32 = jnp.float32

    # ---- border-only zeroing (interior is fully overwritten every step) ------
    xp_ref[0:1, :, :] = jnp.zeros((1, Wp, cin), f32)
    xp_ref[H + 1:Hp, :, :] = jnp.zeros((1, Wp, cin), f32)
    xp_ref[:, 0:1, :] = jnp.zeros((Hp, 1, cin), f32)
    xp_ref[:, W + 1:Wp, :] = jnp.zeros((Hp, 1, cin), f32)
    mp_ref[0:1, :, :] = jnp.zeros((1, Wp, cmid), f32)
    mp_ref[H + 1:Hp, :, :] = jnp.zeros((1, Wp, cmid), f32)
    mp_ref[:, 0:1, :] = jnp.zeros((Hp, 1, cmid), f32)
    mp_ref[:, W + 1:Wp, :] = jnp.zeros((Hp, 1, cmid), f32)

    # ---- skip connection x2: (C2, H*W) -> (H, W, C2) entirely in VMEM --------
    x2_hwc = x2_ref[0].T.reshape(H, W, c2)
    xp_ref[1:H + 1, 1:W + 1, 0:c2] = x2_hwc.astype(f32)

    # ---- separable bilinear 2x upsample of x1 (diff-pad baked into operators) -
    awt = awt_ref[...]                                        # (W1, W)
    ahm = ah_ref[...]                                         # (H, H1)
    tw = jnp.dot(x1_ref[0].astype(awt.dtype), awt,
                 preferred_element_type=jnp.float32)          # (C1*H1, W)
    tw = tw.astype(ahm.dtype)
    ups = [jnp.dot(ahm, tw[c * h1:(c + 1) * h1, :],
                   preferred_element_type=jnp.float32)        # (H, W) per channel
           for c in range(c1)]
    x1_hwc = jnp.stack(ups, axis=-1)                          # (H, W, C1)
    xp_ref[1:H + 1, 1:W + 1, c2:cin] = x1_hwc.astype(f32)

    # ---- 3x3 conv as 9 accumulating matmuls (no im2col materialization) ------
    def conv3x3(src_ref, w_ref, n_in):
        acc = None
        for k in range(9):
            kh, kw = divmod(k, 3)
            tap = src_ref[kh:kh + H, kw:kw + W, :].reshape(H * W, n_in)
            part = jnp.dot(tap.astype(w_ref.dtype), w_ref[k],
                           preferred_element_type=jnp.float32)
            acc = part if acc is None else acc + part
        return acc                                            # (H*W, Cout) f32

    # conv1 + folded BN + ReLU (mid activation never leaves VMEM)
    y1 = jnp.maximum(conv3x3(xp_ref, w1_ref, cin) * s1_ref[...] + b1_ref[...], 0.0)
    mp_ref[1:H + 1, 1:W + 1, :] = y1.reshape(H, W, cmid)

    # conv2 + folded BN + ReLU
    y2 = jnp.maximum(conv3x3(mp_ref, w2_ref, cmid) * s2_ref[...] + b2_ref[...], 0.0)

    # ---- lane-dense store: (Cout, H*W) is flattened NCHW ---------------------
    o_ref[0] = y2.T.astype(o_ref.dtype)


def up_forward(x1, x2, params, compute_dtype=jnp.float32):
    """Up.forward(x1, x2): x1/x2 are NCHW float32; returns NCHW float32.

    compute_dtype=jnp.bfloat16 casts MXU operands (operators + weights) for
    v6e/v7x peak throughput; accumulation stays f32.
    """
    N, c1, H1, W1 = x1.shape
    n2, c2, H2, W2 = x2.shape
    assert n2 == N
    cin = c1 + c2
    cmid = params["w1"].shape[-1]
    cout = params["w2"].shape[-1]
    Hp, Wp = H2 + 2, W2 + 2

    ah_np, aw_np = _padded_interp_matrices(H1, W1, H2, W2)
    awt = jnp.asarray(aw_np.T, dtype=compute_dtype)           # (W1, W2)
    ahm = jnp.asarray(ah_np, dtype=compute_dtype)             # (H2, H1)
    w1m = params["w1"].reshape(9, cin, cmid).astype(compute_dtype)
    w2m = params["w2"].reshape(9, cmid, cout).astype(compute_dtype)

    # Only free metadata reshapes on the host side (no HBM pads/concats/transposes).
    x1r = x1.reshape(N, c1 * H1, W1)
    x2r = x2.reshape(N, c2, H2 * W2)

    out_flat = pl.pallas_call(
        _up_fused_kernel,
        out_shape=jax.ShapeDtypeStruct((N, cout, H2 * W2), x1.dtype),
        grid_spec=pltpu.PrefetchScalarGridSpec(
            num_scalar_prefetch=0,
            grid=(N,),
            in_specs=[
                pl.BlockSpec((1, c1 * H1, W1), lambda n: (n, 0, 0)),
                pl.BlockSpec((1, c2, H2 * W2), lambda n: (n, 0, 0)),
                pl.BlockSpec((W1, W2), lambda n: (0, 0)),
                pl.BlockSpec((H2, H1), lambda n: (0, 0)),
                pl.BlockSpec((9, cin, cmid), lambda n: (0, 0, 0)),
                pl.BlockSpec((1, cmid), lambda n: (0, 0)),
                pl.BlockSpec((1, cmid), lambda n: (0, 0)),
                pl.BlockSpec((9, cmid, cout), lambda n: (0, 0, 0)),
                pl.BlockSpec((1, cout), lambda n: (0, 0)),
                pl.BlockSpec((1, cout), lambda n: (0, 0)),
            ],
            out_specs=pl.BlockSpec((1, cout, H2 * W2), lambda n: (n, 0, 0)),
            scratch_shapes=[
                pltpu.VMEM((Hp, Wp, cin), jnp.float32),
                pltpu.VMEM((Hp, Wp, cmid), jnp.float32),
            ],
        ),
        compiler_params=pltpu.CompilerParams(
            dimension_semantics=("parallel",),
            vmem_limit_bytes=64 * 1024 * 1024,
        ),
    )(x1r, x2r, awt, ahm, w1m, params["s1"], params["b1"],
      w2m, params["s2"], params["b2"])

    # Free metadata reshape: (N, Cout, H*W) -> NCHW.
    return out_flat.reshape(N, cout, H2, W2)


# --------------------------------------------------------------------------- #
# Parameters (folded inference-mode BatchNorm)
# --------------------------------------------------------------------------- #
def _fold_bn(gamma, beta, mean, var, eps=1e-5):
    scale = gamma / jnp.sqrt(var + eps)
    bias = beta - mean * scale
    return scale.reshape(1, -1), bias.reshape(1, -1)


def init_up_params(key, in_channels, out_channels):
    mid_channels = in_channels // 2
    ks = jax.random.split(key, 10)
    w1 = 0.1 * jax.random.normal(ks[0], (3, 3, in_channels, mid_channels), jnp.float32)
    g1 = 1.0 + 0.1 * jax.random.normal(ks[1], (mid_channels,), jnp.float32)
    b1 = 0.1 * jax.random.normal(ks[2], (mid_channels,), jnp.float32)
    m1 = 0.1 * jax.random.normal(ks[3], (mid_channels,), jnp.float32)
    v1 = 0.5 + jax.random.uniform(ks[4], (mid_channels,), jnp.float32)
    w2 = 0.1 * jax.random.normal(ks[5], (3, 3, mid_channels, out_channels), jnp.float32)
    g2 = 1.0 + 0.1 * jax.random.normal(ks[6], (out_channels,), jnp.float32)
    b2 = 0.1 * jax.random.normal(ks[7], (out_channels,), jnp.float32)
    m2 = 0.1 * jax.random.normal(ks[8], (out_channels,), jnp.float32)
    v2 = 0.5 + jax.random.uniform(ks[9], (out_channels,), jnp.float32)
    s1, bb1 = _fold_bn(g1, b1, m1, v1)
    s2, bb2 = _fold_bn(g2, b2, m2, v2)
    return dict(w1=w1, s1=s1, b1=bb1, w2=w2, s2=s2, b2=bb2)


# --------------------------------------------------------------------------- #
# Pure-JAX/XLA reference (no Pallas) for numerical validation
# --------------------------------------------------------------------------- #
def _reference_up_forward(x1, x2, params):
    H2, W2 = x2.shape[2], x2.shape[3]
    ah, aw = _padded_interp_matrices(x1.shape[2], x1.shape[3], H2, W2)
    hi = jax.lax.Precision.HIGHEST
    x1u = jnp.einsum("oh,nchw->ncow", jnp.asarray(ah), x1, precision=hi)
    x1u = jnp.einsum("pw,ncow->ncop", jnp.asarray(aw), x1u, precision=hi)
    x = jnp.concatenate([x2, x1u], axis=1)

    def conv_bn_relu(v, w_hwio, s, b):
        y = jax.lax.conv_general_dilated(
            v, w_hwio, (1, 1), ((1, 1), (1, 1)),
            dimension_numbers=("NCHW", "HWIO", "NCHW"), precision=hi)
        return jnp.maximum(y * s.reshape(1, -1, 1, 1) + b.reshape(1, -1, 1, 1), 0.0)

    y = conv_bn_relu(x, params["w1"], params["s1"], params["b1"])
    return conv_bn_relu(y, params["w2"], params["s2"], params["b2"])


if __name__ == "__main__":
    key = jax.random.PRNGKey(0)
    k1, k2, kp = jax.random.split(key, 3)
    in_channels, out_channels = 8, 6
    # x1: lower-resolution feature map, x2: skip connection at 2x spatial size;
    # each has in_channels // 2 channels so the concat has in_channels channels.
    x1 = jax.random.normal(k1, (2, in_channels // 2, 8, 8), jnp.float32)
    x2 = jax.random.normal(k2, (2, in_channels // 2, 16, 16), jnp.float32)
    params = init_up_params(kp, in_channels, out_channels)

    out = jax.block_until_ready(up_forward(x1, x2, params))
    assert out.shape == (2, out_channels, 16, 16), out.shape
    assert bool(jnp.all(jnp.isfinite(out)))

    ref = jax.block_until_ready(_reference_up_forward(x1, x2, params))
    err = float(jnp.max(jnp.abs(out - ref)))
    # Tolerance covers possible reduced-precision MXU pass structure for f32
    # operands; genuine logic errors (tap/offset/concat bugs) produce O(0.1)
    # errors and are still caught.
    assert err < 2e-2, f"max abs error vs XLA reference too large: {err}"
    print("KERNEL_OK")
</pallas_src>

<mosaic_0001>
module attributes {stable_mosaic.version = 11 : i64} {
  func.func @_up_fused_kernel(%arg0: i32, %arg1: memref<1x32x8xf32, #tpu.memory_space<vmem>>, %arg2: memref<1x4x256xf32, #tpu.memory_space<vmem>>, %arg3: memref<8x16xf32, #tpu.memory_space<vmem>>, %arg4: memref<16x8xf32, #tpu.memory_space<vmem>>, %arg5: memref<9x8x4xf32, #tpu.memory_space<vmem>>, %arg6: memref<1x4xf32, #tpu.memory_space<vmem>>, %arg7: memref<1x4xf32, #tpu.memory_space<vmem>>, %arg8: memref<9x4x6xf32, #tpu.memory_space<vmem>>, %arg9: memref<1x6xf32, #tpu.memory_space<vmem>>, %arg10: memref<1x6xf32, #tpu.memory_space<vmem>>, %arg11: memref<1x6x256xf32, #tpu.memory_space<vmem>>, %arg12: memref<18x18x8xf32, #tpu.memory_space<vmem>>, %arg13: memref<18x18x4xf32, #tpu.memory_space<vmem>>) attributes {dimension_semantics = [#tpu.dimension_semantics<parallel>], iteration_bounds = array<i64: 2>, scalar_prefetch = 0 : i64, scratch_operands = 2 : i64, tpu.core_type = #tpu.core_type<tc>, window_params = [{transform_indices = @transform_0, window_bounds = array<i64: 1, 32, 8>}, {transform_indices = @transform_1, window_bounds = array<i64: 1, 4, 256>}, {pipeline_mode = #tpu.pipeline_mode<synchronous>, transform_indices = @transform_2, window_bounds = array<i64: 8, 16>}, {pipeline_mode = #tpu.pipeline_mode<synchronous>, transform_indices = @transform_3, window_bounds = array<i64: 16, 8>}, {pipeline_mode = #tpu.pipeline_mode<synchronous>, transform_indices = @transform_4, window_bounds = array<i64: 9, 8, 4>}, {pipeline_mode = #tpu.pipeline_mode<synchronous>, transform_indices = @transform_5, window_bounds = array<i64: 1, 4>}, {pipeline_mode = #tpu.pipeline_mode<synchronous>, transform_indices = @transform_6, window_bounds = array<i64: 1, 4>}, {pipeline_mode = #tpu.pipeline_mode<synchronous>, transform_indices = @transform_7, window_bounds = array<i64: 9, 4, 6>}, {pipeline_mode = #tpu.pipeline_mode<synchronous>, transform_indices = @transform_8, window_bounds = array<i64: 1, 6>}, {pipeline_mode = #tpu.pipeline_mode<synchronous>, transform_indices = @transform_9, window_bounds = array<i64: 1, 6>}, {transform_indices = @transform_10, window_bounds = array<i64: 1, 6, 256>}]} {
    %cst = arith.constant 0.000000e+00 : f32
    %0 = vector.broadcast %cst : f32 to vector<1x18x8xf32>
    %c0 = arith.constant 0 : index
    %c0_0 = arith.constant 0 : index
    %c0_1 = arith.constant 0 : index
    %1 = vector.load %arg12[%c0, %c0_0, %c0_1] : memref<18x18x8xf32, #tpu.memory_space<vmem>>, vector<1x18x8xf32>
    tpu.vector_store %arg12[%c0, %c0_0, %c0_1], %0 {strides = array<i32>} : memref<18x18x8xf32, #tpu.memory_space<vmem>>, vector<1x18x8xf32>,
    %cst_2 = arith.constant 0.000000e+00 : f32
    %2 = vector.broadcast %cst_2 : f32 to vector<1x18x8xf32>
    %c17 = arith.constant 17 : index
    %c0_3 = arith.constant 0 : index
    %c0_4 = arith.constant 0 : index
    %3 = vector.load %arg12[%c17, %c0_3, %c0_4] : memref<18x18x8xf32, #tpu.memory_space<vmem>>, vector<1x18x8xf32>
    tpu.vector_store %arg12[%c17, %c0_3, %c0_4], %2 {strides = array<i32>} : memref<18x18x8xf32, #tpu.memory_space<vmem>>, vector<1x18x8xf32>,
    %cst_5 = arith.constant 0.000000e+00 : f32
    %4 = vector.broadcast %cst_5 : f32 to vector<18x1x8xf32>
    %c0_6 = arith.constant 0 : index
    %c0_7 = arith.constant 0 : index
    %c0_8 = arith.constant 0 : index
    %5 = vector.load %arg12[%c0_6, %c0_7, %c0_8] : memref<18x18x8xf32, #tpu.memory_space<vmem>>, vector<18x1x8xf32>
    tpu.vector_store %arg12[%c0_6, %c0_7, %c0_8], %4 {strides = array<i32>} : memref<18x18x8xf32, #tpu.memory_space<vmem>>, vector<18x1x8xf32>,
    %cst_9 = arith.constant 0.000000e+00 : f32
    %6 = vector.broadcast %cst_9 : f32 to vector<18x1x8xf32>
    %c0_10 = arith.constant 0 : index
    %c17_11 = arith.constant 17 : index
    %c0_12 = arith.constant 0 : index
    %7 = vector.load %arg12[%c0_10, %c17_11, %c0_12] : memref<18x18x8xf32, #tpu.memory_space<vmem>>, vector<18x1x8xf32>
    tpu.vector_store %arg12[%c0_10, %c17_11, %c0_12], %6 {strides = array<i32>} : memref<18x18x8xf32, #tpu.memory_space<vmem>>, vector<18x1x8xf32>,
    %cst_13 = arith.constant 0.000000e+00 : f32
    %8 = vector.broadcast %cst_13 : f32 to vector<1x18x4xf32>
    %c0_14 = arith.constant 0 : index
    %c0_15 = arith.constant 0 : index
    %c0_16 = arith.constant 0 : index
    %9 = vector.load %arg13[%c0_14, %c0_15, %c0_16] : memref<18x18x4xf32, #tpu.memory_space<vmem>>, vector<1x18x4xf32>
    tpu.vector_store %arg13[%c0_14, %c0_15, %c0_16], %8 {strides = array<i32>} : memref<18x18x4xf32, #tpu.memory_space<vmem>>, vector<1x18x4xf32>,
    %cst_17 = arith.constant 0.000000e+00 : f32
    %10 = vector.broadcast %cst_17 : f32 to vector<1x18x4xf32>
    %c17_18 = arith.constant 17 : index
    %c0_19 = arith.constant 0 : index
    %c0_20 = arith.constant 0 : index
    %11 = vector.load %arg13[%c17_18, %c0_19, %c0_20] : memref<18x18x4xf32, #tpu.memory_space<vmem>>, vector<1x18x4xf32>
    tpu.vector_store %arg13[%c17_18, %c0_19, %c0_20], %10 {strides = array<i32>} : memref<18x18x4xf32, #tpu.memory_space<vmem>>, vector<1x18x4xf32>,
    %cst_21 = arith.constant 0.000000e+00 : f32
    %12 = vector.broadcast %cst_21 : f32 to vector<18x1x4xf32>
    %c0_22 = arith.constant 0 : index
    %c0_23 = arith.constant 0 : index
    %c0_24 = arith.constant 0 : index
    %13 = vector.load %arg13[%c0_22, %c0_23, %c0_24] : memref<18x18x4xf32, #tpu.memory_space<vmem>>, vector<18x1x4xf32>
    tpu.vector_store %arg13[%c0_22, %c0_23, %c0_24], %12 {strides = array<i32>} : memref<18x18x4xf32, #tpu.memory_space<vmem>>, vector<18x1x4xf32>,
    %cst_25 = arith.constant 0.000000e+00 : f32
    %14 = vector.broadcast %cst_25 : f32 to vector<18x1x4xf32>
    %c0_26 = arith.constant 0 : index
    %c17_27 = arith.constant 17 : index
    %c0_28 = arith.constant 0 : index
    %15 = vector.load %arg13[%c0_26, %c17_27, %c0_28] : memref<18x18x4xf32, #tpu.memory_space<vmem>>, vector<18x1x4xf32>
    tpu.vector_store %arg13[%c0_26, %c17_27, %c0_28], %14 {strides = array<i32>} : memref<18x18x4xf32, #tpu.memory_space<vmem>>, vector<18x1x4xf32>,
    %c0_29 = arith.constant 0 : index
    %c0_30 = arith.constant 0 : index
    %c0_31 = arith.constant 0 : index
    %16 = vector.load %arg2[%c0_29, %c0_30, %c0_31] : memref<1x4x256xf32, #tpu.memory_space<vmem>>, vector<1x4x256xf32>
    %17 = vector.shape_cast %16 : vector<1x4x256xf32> to vector<4x256xf32>
    %18 = tpu.transpose %17, [1, 0] : vector<4x256xf32> -> vector<256x4xf32>
    %19 = vector.shape_cast %18 : vector<256x4xf32> to vector<16x16x4xf32>
    %c1 = arith.constant 1 : index
    %c1_32 = arith.constant 1 : index
    %c0_33 = arith.constant 0 : index
    %20 = vector.load %arg12[%c1, %c1_32, %c0_33] : memref<18x18x8xf32, #tpu.memory_space<vmem>>, vector<16x16x4xf32>
    tpu.vector_store %arg12[%c1, %c1_32, %c0_33], %19 {strides = array<i32>} : memref<18x18x8xf32, #tpu.memory_space<vmem>>, vector<16x16x4xf32>,
    %c0_34 = arith.constant 0 : index
    %c0_35 = arith.constant 0 : index
    %21 = vector.load %arg3[%c0_34, %c0_35] : memref<8x16xf32, #tpu.memory_space<vmem>>, vector<8x16xf32>
    %c0_36 = arith.constant 0 : index
    %c0_37 = arith.constant 0 : index
    %22 = vector.load %arg4[%c0_36, %c0_37] : memref<16x8xf32, #tpu.memory_space<vmem>>, vector<16x8xf32>
    %c0_38 = arith.constant 0 : index
    %c0_39 = arith.constant 0 : index
    %c0_40 = arith.constant 0 : index
    %23 = vector.load %arg1[%c0_38, %c0_39, %c0_40] : memref<1x32x8xf32, #tpu.memory_space<vmem>>, vector<1x32x8xf32>
    %24 = vector.shape_cast %23 : vector<1x32x8xf32> to vector<32x8xf32>
    %cst_41 = arith.constant dense<0.000000e+00> : vector<32x16xf32>
    %25 = tpu.matmul %24, %21, %cst_41 {dimension_numbers = #tpu.dot_dimension_numbers<[1], [0], [0], [1], [0, 0, 1, 1], [], []>} : vector<32x8xf32>, vector<8x16xf32>, vector<32x16xf32> -> vector<32x16xf32>
    %26 = vector.extract_strided_slice %25 {offsets = [0, 0], sizes = [8, 16], strides = [1, 1]} : vector<32x16xf32> to vector<8x16xf32>
    %cst_42 = arith.constant dense<0.000000e+00> : vector<16x16xf32>
    %27 = tpu.matmul %22, %26, %cst_42 {dimension_numbers = #tpu.dot_dimension_numbers<[1], [0], [0], [1], [0, 0, 1, 1], [], []>} : vector<16x8xf32>, vector<8x16xf32>, vector<16x16xf32> -> vector<16x16xf32>
    %28 = vector.extract_strided_slice %25 {offsets = [8, 0], sizes = [8, 16], strides = [1, 1]} : vector<32x16xf32> to vector<8x16xf32>
    %cst_43 = arith.constant dense<0.000000e+00> : vector<16x16xf32>
    %29 = tpu.matmul %22, %28, %cst_43 {dimension_numbers = #tpu.dot_dimension_numbers<[1], [0], [0], [1], [0, 0, 1, 1], [], []>} : vector<16x8xf32>, vector<8x16xf32>, vector<16x16xf32> -> vector<16x16xf32>
    %30 = vector.extract_strided_slice %25 {offsets = [16, 0], sizes = [8, 16], strides = [1, 1]} : vector<32x16xf32> to vector<8x16xf32>
    %cst_44 = arith.constant dense<0.000000e+00> : vector<16x16xf32>
    %31 = tpu.matmul %22, %30, %cst_44 {dimension_numbers = #tpu.dot_dimension_numbers<[1], [0], [0], [1], [0, 0, 1, 1], [], []>} : vector<16x8xf32>, vector<8x16xf32>, vector<16x16xf32> -> vector<16x16xf32>
    %32 = vector.extract_strided_slice %25 {offsets = [24, 0], sizes = [8, 16], strides = [1, 1]} : vector<32x16xf32> to vector<8x16xf32>
    %cst_45 = arith.constant dense<0.000000e+00> : vector<16x16xf32>
    %33 = tpu.matmul %22, %32, %cst_45 {dimension_numbers = #tpu.dot_dimension_numbers<[1], [0], [0], [1], [0, 0, 1, 1], [], []>} : vector<16x8xf32>, vector<8x16xf32>, vector<16x16xf32> -> vector<16x16xf32>
    %34 = vector.shape_cast %27 : vector<16x16xf32> to vector<16x16x1xf32>
    %35 = vector.shape_cast %29 : vector<16x16xf32> to vector<16x16x1xf32>
    %36 = vector.shape_cast %31 : vector<16x16xf32> to vector<16x16x1xf32>
    %37 = vector.shape_cast %33 : vector<16x16xf32> to vector<16x16x1xf32>
    %38 = tpu.concatenate %34, %35, %36, %37 in 2 : vector<16x16x1xf32>, vector<16x16x1xf32>, vector<16x16x1xf32>, vector<16x16x1xf32> -> vector<16x16x4xf32>
    %c1_46 = arith.constant 1 : index
    %c1_47 = arith.constant 1 : index
    %c4 = arith.constant 4 : index
    %39 = vector.load %arg12[%c1_46, %c1_47, %c4] : memref<18x18x8xf32, #tpu.memory_space<vmem>>, vector<16x16x4xf32>
    tpu.vector_store %arg12[%c1_46, %c1_47, %c4], %38 {strides = array<i32>} : memref<18x18x8xf32, #tpu.memory_space<vmem>>, vector<16x16x4xf32>,
    %c0_48 = arith.constant 0 : index
    %c0_49 = arith.constant 0 : index
    %c0_50 = arith.constant 0 : index
    %40 = vector.load %arg12[%c0_48, %c0_49, %c0_50] : memref<18x18x8xf32, #tpu.memory_space<vmem>>, vector<16x16x8xf32>
    %41 = vector.shape_cast %40 : vector<16x16x8xf32> to vector<256x8xf32>
    %c0_51 = arith.constant 0 : index
    %c0_52 = arith.constant 0 : index
    %c0_53 = arith.constant 0 : index
    %42 = vector.load %arg5[%c0_51, %c0_52, %c0_53] : memref<9x8x4xf32, #tpu.memory_space<vmem>>, vector<1x8x4xf32>
    %43 = vector.shape_cast %42 : vector<1x8x4xf32> to vector<8x4xf32>
    %cst_54 = arith.constant dense<0.000000e+00> : vector<256x4xf32>
    %44 = tpu.matmul %41, %43, %cst_54 {dimension_numbers = #tpu.dot_dimension_numbers<[1], [0], [0], [1], [0, 0, 1, 1], [], []>} : vector<256x8xf32>, vector<8x4xf32>, vector<256x4xf32> -> vector<256x4xf32>
    %c0_55 = arith.constant 0 : index
    %c1_56 = arith.constant 1 : index
    %c0_57 = arith.constant 0 : index
    %45 = vector.load %arg12[%c0_55, %c1_56, %c0_57] : memref<18x18x8xf32, #tpu.memory_space<vmem>>, vector<16x16x8xf32>
    %46 = vector.shape_cast %45 : vector<16x16x8xf32> to vector<256x8xf32>
    %c1_58 = arith.constant 1 : index
    %c0_59 = arith.constant 0 : index
    %c0_60 = arith.constant 0 : index
    %47 = vector.load %arg5[%c1_58, %c0_59, %c0_60] : memref<9x8x4xf32, #tpu.memory_space<vmem>>, vector<1x8x4xf32>
    %48 = vector.shape_cast %47 : vector<1x8x4xf32> to vector<8x4xf32>
    %cst_61 = arith.constant dense<0.000000e+00> : vector<256x4xf32>
    %49 = tpu.matmul %46, %48, %cst_61 {dimension_numbers = #tpu.dot_dimension_numbers<[1], [0], [0], [1], [0, 0, 1, 1], [], []>} : vector<256x8xf32>, vector<8x4xf32>, vector<256x4xf32> -> vector<256x4xf32>
    %50 = arith.addf %44, %49 : vector<256x4xf32>
    %c0_62 = arith.constant 0 : index
    %c2 = arith.constant 2 : index
    %c0_63 = arith.constant 0 : index
    %51 = vector.load %arg12[%c0_62, %c2, %c0_63] : memref<18x18x8xf32, #tpu.memory_space<vmem>>, vector<16x16x8xf32>
    %52 = vector.shape_cast %51 : vector<16x16x8xf32> to vector<256x8xf32>
    %c2_64 = arith.constant 2 : index
    %c0_65 = arith.constant 0 : index
    %c0_66 = arith.constant 0 : index
    %53 = vector.load %arg5[%c2_64, %c0_65, %c0_66] : memref<9x8x4xf32, #tpu.memory_space<vmem>>, vector<1x8x4xf32>
    %54 = vector.shape_cast %53 : vector<1x8x4xf32> to vector<8x4xf32>
    %cst_67 = arith.constant dense<0.000000e+00> : vector<256x4xf32>
    %55 = tpu.matmul %52, %54, %cst_67 {dimension_numbers = #tpu.dot_dimension_numbers<[1], [0], [0], [1], [0, 0, 1, 1], [], []>} : vector<256x8xf32>, vector<8x4xf32>, vector<256x4xf32> -> vector<256x4xf32>
    %56 = arith.addf %50, %55 : vector<256x4xf32>
    %c1_68 = arith.constant 1 : index
    %c0_69 = arith.constant 0 : index
    %c0_70 = arith.constant 0 : index
    %57 = vector.load %arg12[%c1_68, %c0_69, %c0_70] : memref<18x18x8xf32, #tpu.memory_space<vmem>>, vector<16x16x8xf32>
    %58 = vector.shape_cast %57 : vector<16x16x8xf32> to vector<256x8xf32>
    %c3 = arith.constant 3 : index
    %c0_71 = arith.constant 0 : index
    %c0_72 = arith.constant 0 : index
    %59 = vector.load %arg5[%c3, %c0_71, %c0_72] : memref<9x8x4xf32, #tpu.memory_space<vmem>>, vector<1x8x4xf32>
    %60 = vector.shape_cast %59 : vector<1x8x4xf32> to vector<8x4xf32>
    %cst_73 = arith.constant dense<0.000000e+00> : vector<256x4xf32>
    %61 = tpu.matmul %58, %60, %cst_73 {dimension_numbers = #tpu.dot_dimension_numbers<[1], [0], [0], [1], [0, 0, 1, 1], [], []>} : vector<256x8xf32>, vector<8x4xf32>, vector<256x4xf32> -> vector<256x4xf32>
    %62 = arith.addf %56, %61 : vector<256x4xf32>
    %c1_74 = arith.constant 1 : index
    %c1_75 = arith.constant 1 : index
    %c0_76 = arith.constant 0 : index
    %63 = vector.load %arg12[%c1_74, %c1_75, %c0_76] : memref<18x18x8xf32, #tpu.memory_space<vmem>>, vector<16x16x8xf32>
    %64 = vector.shape_cast %63 : vector<16x16x8xf32> to vector<256x8xf32>
    %c4_77 = arith.constant 4 : index
    %c0_78 = arith.constant 0 : index
    %c0_79 = arith.constant 0 : index
    %65 = vector.load %arg5[%c4_77, %c0_78, %c0_79] : memref<9x8x4xf32, #tpu.memory_space<vmem>>, vector<1x8x4xf32>
    %66 = vector.shape_cast %65 : vector<1x8x4xf32> to vector<8x4xf32>
    %cst_80 = arith.constant dense<0.000000e+00> : vector<256x4xf32>
    %67 = tpu.matmul %64, %66, %cst_80 {dimension_numbers = #tpu.dot_dimension_numbers<[1], [0], [0], [1], [0, 0, 1, 1], [], []>} : vector<256x8xf32>, vector<8x4xf32>, vector<256x4xf32> -> vector<256x4xf32>
    %68 = arith.addf %62, %67 : vector<256x4xf32>
    %c1_81 = arith.constant 1 : index
    %c2_82 = arith.constant 2 : index
    %c0_83 = arith.constant 0 : index
    %69 = vector.load %arg12[%c1_81, %c2_82, %c0_83] : memref<18x18x8xf32, #tpu.memory_space<vmem>>, vector<16x16x8xf32>
    %70 = vector.shape_cast %69 : vector<16x16x8xf32> to vector<256x8xf32>
    %c5 = arith.constant 5 : index
    %c0_84 = arith.constant 0 : index
    %c0_85 = arith.constant 0 : index
    %71 = vector.load %arg5[%c5, %c0_84, %c0_85] : memref<9x8x4xf32, #tpu.memory_space<vmem>>, vector<1x8x4xf32>
    %72 = vector.shape_cast %71 : vector<1x8x4xf32> to vector<8x4xf32>
    %cst_86 = arith.constant dense<0.000000e+00> : vector<256x4xf32>
    %73 = tpu.matmul %70, %72, %cst_86 {dimension_numbers = #tpu.dot_dimension_numbers<[1], [0], [0], [1], [0, 0, 1, 1], [], []>} : vector<256x8xf32>, vector<8x4xf32>, vector<256x4xf32> -> vector<256x4xf32>
    %74 = arith.addf %68, %73 : vector<256x4xf32>
    %c2_87 = arith.constant 2 : index
    %c0_88 = arith.constant 0 : index
    %c0_89 = arith.constant 0 : index
    %75 = vector.load %arg12[%c2_87, %c0_88, %c0_89] : memref<18x18x8xf32, #tpu.memory_space<vmem>>, vector<16x16x8xf32>
    %76 = vector.shape_cast %75 : vector<16x16x8xf32> to vector<256x8xf32>
    %c6 = arith.constant 6 : index
    %c0_90 = arith.constant 0 : index
    %c0_91 = arith.constant 0 : index
    %77 = vector.load %arg5[%c6, %c0_90, %c0_91] : memref<9x8x4xf32, #tpu.memory_space<vmem>>, vector<1x8x4xf32>
    %78 = vector.shape_cast %77 : vector<1x8x4xf32> to vector<8x4xf32>
    %cst_92 = arith.constant dense<0.000000e+00> : vector<256x4xf32>
    %79 = tpu.matmul %76, %78, %cst_92 {dimension_numbers = #tpu.dot_dimension_numbers<[1], [0], [0], [1], [0, 0, 1, 1], [], []>} : vector<256x8xf32>, vector<8x4xf32>, vector<256x4xf32> -> vector<256x4xf32>
    %80 = arith.addf %74, %79 : vector<256x4xf32>
    %c2_93 = arith.constant 2 : index
    %c1_94 = arith.constant 1 : index
    %c0_95 = arith.constant 0 : index
    %81 = vector.load %arg12[%c2_93, %c1_94, %c0_95] : memref<18x18x8xf32, #tpu.memory_space<vmem>>, vector<16x16x8xf32>
    %82 = vector.shape_cast %81 : vector<16x16x8xf32> to vector<256x8xf32>
    %c7 = arith.constant 7 : index
    %c0_96 = arith.constant 0 : index
    %c0_97 = arith.constant 0 : index
    %83 = vector.load %arg5[%c7, %c0_96, %c0_97] : memref<9x8x4xf32, #tpu.memory_space<vmem>>, vector<1x8x4xf32>
    %84 = vector.shape_cast %83 : vector<1x8x4xf32> to vector<8x4xf32>
    %cst_98 = arith.constant dense<0.000000e+00> : vector<256x4xf32>
    %85 = tpu.matmul %82, %84, %cst_98 {dimension_numbers = #tpu.dot_dimension_numbers<[1], [0], [0], [1], [0, 0, 1, 1], [], []>} : vector<256x8xf32>, vector<8x4xf32>, vector<256x4xf32> -> vector<256x4xf32>
    %86 = arith.addf %80, %85 : vector<256x4xf32>
    %c2_99 = arith.constant 2 : index
    %c2_100 = arith.constant 2 : index
    %c0_101 = arith.constant 0 : index
    %87 = vector.load %arg12[%c2_99, %c2_100, %c0_101] : memref<18x18x8xf32, #tpu.memory_space<vmem>>, vector<16x16x8xf32>
    %88 = vector.shape_cast %87 : vector<16x16x8xf32> to vector<256x8xf32>
    %c8 = arith.constant 8 : index
    %c0_102 = arith.constant 0 : index
    %c0_103 = arith.constant 0 : index
    %89 = vector.load %arg5[%c8, %c0_102, %c0_103] : memref<9x8x4xf32, #tpu.memory_space<vmem>>, vector<1x8x4xf32>
    %90 = vector.shape_cast %89 : vector<1x8x4xf32> to vector<8x4xf32>
    %cst_104 = arith.constant dense<0.000000e+00> : vector<256x4xf32>
    %91 = tpu.matmul %88, %90, %cst_104 {dimension_numbers = #tpu.dot_dimension_numbers<[1], [0], [0], [1], [0, 0, 1, 1], [], []>} : vector<256x8xf32>, vector<8x4xf32>, vector<256x4xf32> -> vector<256x4xf32>
    %92 = arith.addf %86, %91 : vector<256x4xf32>
    %c0_105 = arith.constant 0 : index
    %c0_106 = arith.constant 0 : index
    %93 = vector.load %arg6[%c0_105, %c0_106] : memref<1x4xf32, #tpu.memory_space<vmem>>, vector<1x4xf32>
    %94 = vector.broadcast %93 : vector<1x4xf32> to vector<256x4xf32>
    %95 = arith.mulf %92, %94 : vector<256x4xf32>
    %c0_107 = arith.constant 0 : index
    %c0_108 = arith.constant 0 : index
    %96 = vector.load %arg7[%c0_107, %c0_108] : memref<1x4xf32, #tpu.memory_space<vmem>>, vector<1x4xf32>
    %97 = vector.broadcast %96 : vector<1x4xf32> to vector<256x4xf32>
    %98 = arith.addf %95, %97 : vector<256x4xf32>
    %cst_109 = arith.constant 0.000000e+00 : f32
    %99 = vector.broadcast %cst_109 : f32 to vector<256x4xf32>
    %100 = arith.maximumf %98, %99 : vector<256x4xf32>
    %101 = vector.shape_cast %100 : vector<256x4xf32> to vector<16x16x4xf32>
    %c1_110 = arith.constant 1 : index
    %c1_111 = arith.constant 1 : index
    %c0_112 = arith.constant 0 : index
    %102 = vector.load %arg13[%c1_110, %c1_111, %c0_112] : memref<18x18x4xf32, #tpu.memory_space<vmem>>, vector<16x16x4xf32>
    tpu.vector_store %arg13[%c1_110, %c1_111, %c0_112], %101 {strides = array<i32>} : memref<18x18x4xf32, #tpu.memory_space<vmem>>, vector<16x16x4xf32>,
    %c0_113 = arith.constant 0 : index
    %c0_114 = arith.constant 0 : index
    %c0_115 = arith.constant 0 : index
    %103 = vector.load %arg13[%c0_113, %c0_114, %c0_115] : memref<18x18x4xf32, #tpu.memory_space<vmem>>, vector<16x16x4xf32>
    %104 = vector.shape_cast %103 : vector<16x16x4xf32> to vector<256x4xf32>
    %c0_116 = arith.constant 0 : index
    %c0_117 = arith.constant 0 : index
    %c0_118 = arith.constant 0 : index
    %105 = vector.load %arg8[%c0_116, %c0_117, %c0_118] : memref<9x4x6xf32, #tpu.memory_space<vmem>>, vector<1x4x6xf32>
    %106 = vector.shape_cast %105 : vector<1x4x6xf32> to vector<4x6xf32>
    %cst_119 = arith.constant dense<0.000000e+00> : vector<256x6xf32>
    %107 = tpu.matmul %104, %106, %cst_119 {dimension_numbers = #tpu.dot_dimension_numbers<[1], [0], [0], [1], [0, 0, 1, 1], [], []>} : vector<256x4xf32>, vector<4x6xf32>, vector<256x6xf32> -> vector<256x6xf32>
    %c0_120 = arith.constant 0 : index
    %c1_121 = arith.constant 1 : index
    %c0_122 = arith.constant 0 : index
    %108 = vector.load %arg13[%c0_120, %c1_121, %c0_122] : memref<18x18x4xf32, #tpu.memory_space<vmem>>, vector<16x16x4xf32>
    %109 = vector.shape_cast %108 : vector<16x16x4xf32> to vector<256x4xf32>
    %c1_123 = arith.constant 1 : index
    %c0_124 = arith.constant 0 : index
    %c0_125 = arith.constant 0 : index
    %110 = vector.load %arg8[%c1_123, %c0_124, %c0_125] : memref<9x4x6xf32, #tpu.memory_space<vmem>>, vector<1x4x6xf32>
    %111 = vector.shape_cast %110 : vector<1x4x6xf32> to vector<4x6xf32>
    %cst_126 = arith.constant dense<0.000000e+00> : vector<256x6xf32>
    %112 = tpu.matmul %109, %111, %cst_126 {dimension_numbers = #tpu.dot_dimension_numbers<[1], [0], [0], [1], [0, 0, 1, 1], [], []>} : vector<256x4xf32>, vector<4x6xf32>, vector<256x6xf32> -> vector<256x6xf32>
    %113 = arith.addf %107, %112 : vector<256x6xf32>
    %c0_127 = arith.constant 0 : index
    %c2_128 = arith.constant 2 : index
    %c0_129 = arith.constant 0 : index
    %114 = vector.load %arg13[%c0_127, %c2_128, %c0_129] : memref<18x18x4xf32, #tpu.memory_space<vmem>>, vector<16x16x4xf32>
    %115 = vector.shape_cast %114 : vector<16x16x4xf32> to vector<256x4xf32>
    %c2_130 = arith.constant 2 : index
    %c0_131 = arith.constant 0 : index
    %c0_132 = arith.constant 0 : index
    %116 = vector.load %arg8[%c2_130, %c0_131, %c0_132] : memref<9x4x6xf32, #tpu.memory_space<vmem>>, vector<1x4x6xf32>
    %117 = vector.shape_cast %116 : vector<1x4x6xf32> to vector<4x6xf32>
    %cst_133 = arith.constant dense<0.000000e+00> : vector<256x6xf32>
    %118 = tpu.matmul %115, %117, %cst_133 {dimension_numbers = #tpu.dot_dimension_numbers<[1], [0], [0], [1], [0, 0, 1, 1], [], []>} : vector<256x4xf32>, vector<4x6xf32>, vector<256x6xf32> -> vector<256x6xf32>
    %119 = arith.addf %113, %118 : vector<256x6xf32>
    %c1_134 = arith.constant 1 : index
    %c0_135 = arith.constant 0 : index
    %c0_136 = arith.constant 0 : index
    %120 = vector.load %arg13[%c1_134, %c0_135, %c0_136] : memref<18x18x4xf32, #tpu.memory_space<vmem>>, vector<16x16x4xf32>
    %121 = vector.shape_cast %120 : vector<16x16x4xf32> to vector<256x4xf32>
    %c3_137 = arith.constant 3 : index
    %c0_138 = arith.constant 0 : index
    %c0_139 = arith.constant 0 : index
    %122 = vector.load %arg8[%c3_137, %c0_138, %c0_139] : memref<9x4x6xf32, #tpu.memory_space<vmem>>, vector<1x4x6xf32>
    %123 = vector.shape_cast %122 : vector<1x4x6xf32> to vector<4x6xf32>
    %cst_140 = arith.constant dense<0.000000e+00> : vector<256x6xf32>
    %124 = tpu.matmul %121, %123, %cst_140 {dimension_numbers = #tpu.dot_dimension_numbers<[1], [0], [0], [1], [0, 0, 1, 1], [], []>} : vector<256x4xf32>, vector<4x6xf32>, vector<256x6xf32> -> vector<256x6xf32>
    %125 = arith.addf %119, %124 : vector<256x6xf32>
    %c1_141 = arith.constant 1 : index
    %c1_142 = arith.constant 1 : index
    %c0_143 = arith.constant 0 : index
    %126 = vector.load %arg13[%c1_141, %c1_142, %c0_143] : memref<18x18x4xf32, #tpu.memory_space<vmem>>, vector<16x16x4xf32>
    %127 = vector.shape_cast %126 : vector<16x16x4xf32> to vector<256x4xf32>
    %c4_144 = arith.constant 4 : index
    %c0_145 = arith.constant 0 : index
    %c0_146 = arith.constant 0 : index
    %128 = vector.load %arg8[%c4_144, %c0_145, %c0_146] : memref<9x4x6xf32, #tpu.memory_space<vmem>>, vector<1x4x6xf32>
    %129 = vector.shape_cast %128 : vector<1x4x6xf32> to vector<4x6xf32>
    %cst_147 = arith.constant dense<0.000000e+00> : vector<256x6xf32>
    %130 = tpu.matmul %127, %129, %cst_147 {dimension_numbers = #tpu.dot_dimension_numbers<[1], [0], [0], [1], [0, 0, 1, 1], [], []>} : vector<256x4xf32>, vector<4x6xf32>, vector<256x6xf32> -> vector<256x6xf32>
    %131 = arith.addf %125, %130 : vector<256x6xf32>
    %c1_148 = arith.constant 1 : index
    %c2_149 = arith.constant 2 : index
    %c0_150 = arith.constant 0 : index
    %132 = vector.load %arg13[%c1_148, %c2_149, %c0_150] : memref<18x18x4xf32, #tpu.memory_space<vmem>>, vector<16x16x4xf32>
    %133 = vector.shape_cast %132 : vector<16x16x4xf32> to vector<256x4xf32>
    %c5_151 = arith.constant 5 : index
    %c0_152 = arith.constant 0 : index
    %c0_153 = arith.constant 0 : index
    %134 = vector.load %arg8[%c5_151, %c0_152, %c0_153] : memref<9x4x6xf32, #tpu.memory_space<vmem>>, vector<1x4x6xf32>
    %135 = vector.shape_cast %134 : vector<1x4x6xf32> to vector<4x6xf32>
    %cst_154 = arith.constant dense<0.000000e+00> : vector<256x6xf32>
    %136 = tpu.matmul %133, %135, %cst_154 {dimension_numbers = #tpu.dot_dimension_numbers<[1], [0], [0], [1], [0, 0, 1, 1], [], []>} : vector<256x4xf32>, vector<4x6xf32>, vector<256x6xf32> -> vector<256x6xf32>
    %137 = arith.addf %131, %136 : vector<256x6xf32>
    %c2_155 = arith.constant 2 : index
    %c0_156 = arith.constant 0 : index
    %c0_157 = arith.constant 0 : index
    %138 = vector.load %arg13[%c2_155, %c0_156, %c0_157] : memref<18x18x4xf32, #tpu.memory_space<vmem>>, vector<16x16x4xf32>
    %139 = vector.shape_cast %138 : vector<16x16x4xf32> to vector<256x4xf32>
    %c6_158 = arith.constant 6 : index
    %c0_159 = arith.constant 0 : index
    %c0_160 = arith.constant 0 : index
    %140 = vector.load %arg8[%c6_158, %c0_159, %c0_160] : memref<9x4x6xf32, #tpu.memory_space<vmem>>, vector<1x4x6xf32>
    %141 = vector.shape_cast %140 : vector<1x4x6xf32> to vector<4x6xf32>
    %cst_161 = arith.constant dense<0.000000e+00> : vector<256x6xf32>
    %142 = tpu.matmul %139, %141, %cst_161 {dimension_numbers = #tpu.dot_dimension_numbers<[1], [0], [0], [1], [0, 0, 1, 1], [], []>} : vector<256x4xf32>, vector<4x6xf32>, vector<256x6xf32> -> vector<256x6xf32>
    %143 = arith.addf %137, %142 : vector<256x6xf32>
    %c2_162 = arith.constant 2 : index
    %c1_163 = arith.constant 1 : index
    %c0_164 = arith.constant 0 : index
    %144 = vector.load %arg13[%c2_162, %c1_163, %c0_164] : memref<18x18x4xf32, #tpu.memory_space<vmem>>, vector<16x16x4xf32>
    %145 = vector.shape_cast %144 : vector<16x16x4xf32> to vector<256x4xf32>
    %c7_165 = arith.constant 7 : index
    %c0_166 = arith.constant 0 : index
    %c0_167 = arith.constant 0 : index
    %146 = vector.load %arg8[%c7_165, %c0_166, %c0_167] : memref<9x4x6xf32, #tpu.memory_space<vmem>>, vector<1x4x6xf32>
    %147 = vector.shape_cast %146 : vector<1x4x6xf32> to vector<4x6xf32>
    %cst_168 = arith.constant dense<0.000000e+00> : vector<256x6xf32>
    %148 = tpu.matmul %145, %147, %cst_168 {dimension_numbers = #tpu.dot_dimension_numbers<[1], [0], [0], [1], [0, 0, 1, 1], [], []>} : vector<256x4xf32>, vector<4x6xf32>, vector<256x6xf32> -> vector<256x6xf32>
    %149 = arith.addf %143, %148 : vector<256x6xf32>
    %c2_169 = arith.constant 2 : index
    %c2_170 = arith.constant 2 : index
    %c0_171 = arith.constant 0 : index
    %150 = vector.load %arg13[%c2_169, %c2_170, %c0_171] : memref<18x18x4xf32, #tpu.memory_space<vmem>>, vector<16x16x4xf32>
    %151 = vector.shape_cast %150 : vector<16x16x4xf32> to vector<256x4xf32>
    %c8_172 = arith.constant 8 : index
    %c0_173 = arith.constant 0 : index
    %c0_174 = arith.constant 0 : index
    %152 = vector.load %arg8[%c8_172, %c0_173, %c0_174] : memref<9x4x6xf32, #tpu.memory_space<vmem>>, vector<1x4x6xf32>
    %153 = vector.shape_cast %152 : vector<1x4x6xf32> to vector<4x6xf32>
    %cst_175 = arith.constant dense<0.000000e+00> : vector<256x6xf32>
    %154 = tpu.matmul %151, %153, %cst_175 {dimension_numbers = #tpu.dot_dimension_numbers<[1], [0], [0], [1], [0, 0, 1, 1], [], []>} : vector<256x4xf32>, vector<4x6xf32>, vector<256x6xf32> -> vector<256x6xf32>
    %155 = arith.addf %149, %154 : vector<256x6xf32>
    %c0_176 = arith.constant 0 : index
    %c0_177 = arith.constant 0 : index
    %156 = vector.load %arg9[%c0_176, %c0_177] : memref<1x6xf32, #tpu.memory_space<vmem>>, vector<1x6xf32>
    %157 = vector.broadcast %156 : vector<1x6xf32> to vector<256x6xf32>
    %158 = arith.mulf %155, %157 : vector<256x6xf32>
    %c0_178 = arith.constant 0 : index
    %c0_179 = arith.constant 0 : index
    %159 = vector.load %arg10[%c0_178, %c0_179] : memref<1x6xf32, #tpu.memory_space<vmem>>, vector<1x6xf32>
    %160 = vector.broadcast %159 : vector<1x6xf32> to vector<256x6xf32>
    %161 = arith.addf %158, %160 : vector<256x6xf32>
    %cst_180 = arith.constant 0.000000e+00 : f32
    %162 = vector.broadcast %cst_180 : f32 to vector<256x6xf32>
    %163 = arith.maximumf %161, %162 : vector<256x6xf32>
    %164 = tpu.transpose %163, [1, 0] : vector<256x6xf32> -> vector<6x256xf32>
    %c0_181 = arith.constant 0 : index
    %c0_182 = arith.constant 0 : index
    %c0_183 = arith.constant 0 : index
    %165 = vector.load %arg11[%c0_181, %c0_182, %c0_183] : memref<1x6x256xf32, #tpu.memory_space<vmem>>, vector<1x6x256xf32>
    %166 = vector.shape_cast %165 : vector<1x6x256xf32> to vector<6x256xf32>
    %167 = vector.shape_cast %164 : vector<6x256xf32> to vector<1x6x256xf32>
    tpu.vector_store %arg11[%c0_181, %c0_182, %c0_183], %167 {strides = array<i32>} : memref<1x6x256xf32, #tpu.memory_space<vmem>>, vector<1x6x256xf32>,
    return
  }
  func.func @transform_0(%arg0: i32) -> (i32, i32, i32) {
    %c0_i32 = arith.constant 0 : i32
    %c0_i32_0 = arith.constant 0 : i32
    %c0_i32_1 = arith.constant 0 : i32
    return %arg0, %c0_i32, %c0_i32_0 : i32, i32, i32
  }
  func.func @transform_1(%arg0: i32) -> (i32, i32, i32) {
    %c0_i32 = arith.constant 0 : i32
    %c0_i32_0 = arith.constant 0 : i32
    %c0_i32_1 = arith.constant 0 : i32
    return %arg0, %c0_i32, %c0_i32_0 : i32, i32, i32
  }
  func.func @transform_2(%arg0: i32) -> (i32, i32) {
    %c0_i32 = arith.constant 0 : i32
    %c0_i32_0 = arith.constant 0 : i32
    %c0_i32_1 = arith.constant 0 : i32
    return %c0_i32, %c0_i32_0 : i32, i32
  }
  func.func @transform_3(%arg0: i32) -> (i32, i32) {
    %c0_i32 = arith.constant 0 : i32
    %c0_i32_0 = arith.constant 0 : i32
    %c0_i32_1 = arith.constant 0 : i32
    return %c0_i32, %c0_i32_0 : i32, i32
  }
  func.func @transform_4(%arg0: i32) -> (i32, i32, i32) {
    %c0_i32 = arith.constant 0 : i32
    %c0_i32_0 = arith.constant 0 : i32
    %c0_i32_1 = arith.constant 0 : i32
    %c0_i32_2 = arith.constant 0 : i32
    return %c0_i32, %c0_i32_0, %c0_i32_1 : i32, i32, i32
  }
  func.func @transform_5(%arg0: i32) -> (i32, i32) {
    %c0_i32 = arith.constant 0 : i32
    %c0_i32_0 = arith.constant 0 : i32
    %c0_i32_1 = arith.constant 0 : i32
    return %c0_i32, %c0_i32_0 : i32, i32
  }
  func.func @transform_6(%arg0: i32) -> (i32, i32) {
    %c0_i32 = arith.constant 0 : i32
    %c0_i32_0 = arith.constant 0 : i32
    %c0_i32_1 = arith.constant 0 : i32
    return %c0_i32, %c0_i32_0 : i32, i32
  }
  func.func @transform_7(%arg0: i32) -> (i32, i32, i32) {
    %c0_i32 = arith.constant 0 : i32
    %c0_i32_0 = arith.constant 0 : i32
    %c0_i32_1 = arith.constant 0 : i32
    %c0_i32_2 = arith.constant 0 : i32
    return %c0_i32, %c0_i32_0, %c0_i32_1 : i32, i32, i32
  }
  func.func @transform_8(%arg0: i32) -> (i32, i32) {
    %c0_i32 = arith.constant 0 : i32
    %c0_i32_0 = arith.constant 0 : i32
    %c0_i32_1 = arith.constant 0 : i32
    return %c0_i32, %c0_i32_0 : i32, i32
  }
  func.func @transform_9(%arg0: i32) -> (i32, i32) {
    %c0_i32 = arith.constant 0 : i32
    %c0_i32_0 = arith.constant 0 : i32
    %c0_i32_1 = arith.constant 0 : i32
    return %c0_i32, %c0_i32_0 : i32, i32
  }
  func.func @transform_10(%arg0: i32) -> (i32, i32, i32) {
    %c0_i32 = arith.constant 0 : i32
    %c0_i32_0 = arith.constant 0 : i32
    %c0_i32_1 = arith.constant 0 : i32
    return %arg0, %c0_i32, %c0_i32_0 : i32, i32, i32
  }
}

</mosaic_0001>

<bundles_post_ra>
// kernel: tpu_custom_call.1
= control target key start
LH: loop header
LB: loop body
LE: loop exit
PB: predicated region body
PF: predicated region fallthrough
CT: control target
= control target key end

     0   :  { %s7812_s13 = smov 0   ;;  %s11064_s0 = inlined_call_operand.vmem [shape: f32[2,32,8], index: 0, kind: input, shape index: {}]   ;;  %s11065_s1 = inlined_call_operand.vmem [shape: f32[2,4,256], index: 1, kind: input, shape index: {}]   ;;  %s11066_s2 = inlined_call_operand.vmem [shape: f32[8,16], index: 2, kind: input, shape index: {}]   ;;  %s11067_s3 = inlined_call_operand.vmem [shape: f32[16,8], index: 3, kind: input, shape index: {}]   ;;  %s11068_s4 = inlined_call_operand.vmem [shape: f32[9,8,4], index: 4, kind: input, shape index: {}]   ;;  %s11069_s5 = inlined_call_operand.vmem [shape: f32[1,4], index: 5, kind: input, shape index: {}]   ;;  %s11070_s6 = inlined_call_operand.vmem [shape: f32[1,4], index: 6, kind: input, shape index: {}]   ;;  %s11071_s7 = inlined_call_operand.vmem [shape: f32[9,4,6], index: 7, kind: input, shape index: {}]   ;;  %s11072_s8 = inlined_call_operand.vmem [shape: f32[1,6], index: 8, kind: input, shape index: {}]   ;;  %s11073_s9 = inlined_call_operand.vmem [shape: f32[1,6], index: 9, kind: input, shape index: {}]   ;;  %s11074_s10 = inlined_call_operand.vmem [shape: f32[2,6,256], index: 10, kind: output, shape index: {}]  }
   0x1 LB: > { %s7038_s14 = sadd.s32 4294967295, %s7753_s13   ;;  %p7042_p0 = scmp.ge.s32.totalorder %s7753_s13, 1  ;;  %s7753_s13 = sphi %s7812_s13, %s20_s13  }
   0x2   : > { %p322_p1 = scmp.lt.s32.totalorder %s7753_s13, 3 }
   0x4   : > { %p323_p2 = pnand %p7042_p0, %p322_p1 }
   0x6   : > { %326 = sbr.rel (%p323_p2) target bundleno = 2744 (0xab8), region = 60 }
   0xb   : > { %v576_v0 = vld [vmem:[%s11066_s2] sm:$0xff]  ;;  %p365_p3 = scmp.lt.s32.totalorder %s7038_s14, 1  ;;  %vm380_vm0 = vcmask 64512   ;;  %v723_v8 = vlaneseq  ;;  %v578_v10 = vld [vmem:[%s11067_s3 + $0x8] sm:$0xff]  ;;  %vm1554_vm1 = vcmask 7168   ;;  %vm1587_vm2 = vcmask 15360  }
   0xc   : > { %610 = vmatpush.msra.mxu0 %v576_v0  ;;  %v577_v6 = vld [vmem:[%s11067_s3] sm:$0xff]  ;;  %vm1620_vm3 = vcmask 23552   ;;  %s7755_s29 = smov 4   ;;  %vm426_vm4 = vcmask 31744   ;;  %vm389_vm5 = vcmask 57344   ;;  %vm1781_vm6 = vcmask 64544  }
   0xd   : > { %s11395_s14 = smov (!%p365_p3, %s7038_s14), 1  ;;  %v7841_v9 = vshrl.u32 %v723_v8, 7  ;;  %vm383_vm7 = vcmask 58368   ;;  %vm4525_vm8 = vcmask 1043456   ;;  %vm429_vm9 = vcmask 25600  }
   0xe   : > { %s7664_s17 = sshll.u32 %s11395_s14, 5  ;;  %s7665_s18 = sshll.u32 %s11395_s14, 3  ;;  %vm435_vm10 = vcmask 24576  }
   0xf   : > { %s369_s21 = scalar_lea.vmem %s11064_s0, %s7664_s17  ;;  %s374_s24 = scalar_lea.vmem %s11065_s1, %s7665_s18  ;;  %7682 = vset.pattern.permute.xlu0 %v7841_v9  ;;  %7679 = vset.pattern.permute.xlu2 %v7841_v9  ;;  %v7863_v17 = vadd.s32 8, %v7841_v9 }
  0x10   : > { %v472_v1 = vld [vmem:[%s374_s24] sm:$0xff]  ;;  %v580_v3 = vld [vmem:[%s369_s21 + $0x8] sm:$0xff]  ;;  %v581_v4 = vld [vmem:[%s369_s21 + $0x10] sm:$0xff]  ;;  %7683 = vset.pattern.permute.xlu1 %v7841_v9  ;;  %s7666_s24 = sshll.u32 %s11395_s14, 4 }
  0x11   : > { %v579_v2 = vld [vmem:[%s369_s21] sm:$0xff]  ;;  %474 = vst [vmem:[#allocation1] ss:$2 sm:$0xff] %v472_v1  ;;  %v582_v5 = vld [vmem:[%s369_s21 + $0x18] sm:$0xff]  ;;  %s11046_s27 = scalar_lea.vmem %s11074_s10, %s7666_s24 }
  0x12   : > { %7049 = vmatmul.msk.f32.vlgmr.msra.gmra.mxu0 %vm380_vm0, %v579_v2 }
  0x18   : > { %v475_v0 = vld.sshfl [vmem:[#allocation1] sm:$0xff pattern:$0x75316420] }
  0x1a   : > { %7050 = vmatmul.msk.f32.gmra.mxu0 %vm380_vm0, %v580_v3 }
  0x22   : > { %7051 = vmatmul.msk.f32.gmra.mxu0 %vm380_vm0, %v581_v4 }
  0x2a   : > { %7052 = vmatmul.msk.f32.gmra.mxu0 %vm380_vm0, %v582_v5 }
  0x8f   : > { %v612_v7 = vpop.f32.mrf.mxu0 }
  0x90   : > { %645 = vmatpush.msra.mxu1 %v612_v7 }
  0x91   : > { %7053 = vmatmul.msk.f32.vlgmr.msra.gmra.mxu1 %vm380_vm0, %v577_v6 }
  0x97   : > { %v615_v11 = vpop.f32.mrf.mxu0 }
  0x98   : > { %668 = vmatpush.msra.mxu2 %v615_v11 }
  0x99   : > { %7054 = vmatmul.msk.f32.gmra.mxu1 %vm380_vm0, %v578_v10  ;;  %7055 = vmatmul.msk.f32.vlgmr.msra.gmra.mxu2 %vm380_vm0, %v577_v6 }
  0x9f   : > { %v618_v12 = vpop.f32.mrf.mxu0 }
  0xa0   : > { %691 = vmatpush.msra.mxu3 %v618_v12 }
  0xa1   : > { %7057 = vmatmul.msk.f32.vlgmr.msra.gmra.mxu3 %vm380_vm0, %v577_v6  ;;  %7056 = vmatmul.msk.f32.gmra.mxu2 %vm380_vm0, %v578_v10 }
  0xa7   : > { %v621_v13 = vpop.f32.mrf.mxu0 }
  0xa8   : > { %714 = vmatpush.msrb.mxu1 %v621_v13 }
  0xa9   : > { %7059 = vmatmul.msk.f32.vlgmr.msrb.gmra.mxu1 %vm380_vm0, %v577_v6  ;;  %7058 = vmatmul.msk.f32.gmra.mxu3 %vm380_vm0, %v578_v10 }
  0xb1   : > { %7060 = vmatmul.msk.f32.gmra.mxu1 %vm380_vm0, %v578_v10 }
 0x10e   : > { %v7856_v14 = vpop.f32.mrf.mxu1 }
 0x10f   : > { %v813_v15 = vperm.slane %v7856_v14, 7  ;;  %v735_v16 = vperm.slane %v7856_v14, 1  ;;  %v748_v19 = vperm.slane %v7856_v14, 2  ;;  %v11080_v21 = vperm.slane %v7856_v14, 3 }
 0x110   : > { %v722_v29 = vperm.slane %v7856_v14, 0  ;;  %v11076_v45 = vperm.slane %v7856_v14, 6 }
 0x111   : > { %818 = vperm.xlu2 %7679, %v813_v15   ;;  %740 = vperm.xlu0 %7682, %v735_v16  }
 0x116   : > { %v7865_v18 = vpop.f32.mrf.mxu1 }
 0x117   : > { %v826_v20 = vperm.slane %v7865_v18, 0  ;;  %v839_v37 = vperm.slane %v7865_v18, 1  ;;  %v852_v44 = vperm.slane %v7865_v18, 2  ;;  %v865_v52 = vperm.slane %v7865_v18, 3 }
 0x119   : > { %7680 = vset.pattern.permute.xlu2 %v7863_v17  ;;  %753 = vperm.xlu0 %7682, %v748_v19  }
 0x11a   : > { %831 = vperm.xlu1 %7683, %v826_v20  }
 0x11c   : > { %v7873_v22 = vpop.f32.mrf.mxu2 }
 0x11d   : > { %v1021_v25 = vperm.slane %v7873_v22, 7  ;;  %v11078_v46 = vperm.slane %v7873_v22, 6  ;;  %v930_v55 = vperm.slane %v7873_v22, 0  ;;  %v943_v63 = vperm.slane %v7873_v22, 1 }
 0x11e   : > { %v956_v11 = vperm.slane %v7873_v22, 2  ;;  %v969_v12 = vperm.slane %v7873_v22, 3 }
 0x121   : > { %824 = vperm.xlu2 %7680, %v813_v15   ;;  %766 = vperm.xlu0 %7682, %v11080_v21  }
 0x122   : > { %7690 = vset.pattern.permute.xlu1 %v7863_v17 }
 0x124   : > { %v7878_v23 = vpop.f32.mrf.mxu3  ;;  %v7887_v26 = vpop.f32.mrf.mxu2 }
 0x125   : > { %v1229_v24 = vperm.slane %v7878_v23, 7  ;;  %v1060_v27 = vperm.slane %v7887_v26, 2  ;;  %v11077_v28 = vperm.slane %v7878_v23, 6  ;;  %v1073_v30 = vperm.slane %v7887_v26, 3 }
 0x126   : > { %v7903_v31 = vpop.f32.mrf.mxu1  ;;  %v1047_v33 = vperm.slane %v7887_v26, 1  ;;  %v1177_v47 = vperm.slane %v7878_v23, 3 }
 0x127   : > { %v1346_v32 = vperm.slane %v7903_v31, 0  ;;  %v1359_v34 = vperm.slane %v7903_v31, 1  ;;  %v1372_v35 = vperm.slane %v7903_v31, 2  ;;  %v11075_v36 = vperm.slane %v7903_v31, 6 }
 0x128   : > { %v11079_v40 = vperm.slane %v7903_v31, 3  ;;  %v1437_v41 = vperm.slane %v7903_v31, 7 }
 0x129   : > { %7681 = vset.pattern.permute.xlu2 %v7841_v9  ;;  %1234 = vperm.xlu0 %7682, %v1229_v24  }
 0x12a   : > { %1032 = vperm.xlu1 %7690, %v1021_v25  }
 0x12c   : > { %v7931_v42 = vpop.f32.mrf.mxu3 }
 0x12d   : > { %v1281_v43 = vperm.slane %v7931_v42, 3  ;;  %v1242_v49 = vperm.slane %v7931_v42, 0 }
 0x12e   : > { %v7919_v38 = vpop.f32.mrf.mxu1 }
 0x12f   : > { %v1450_v39 = vperm.slane %v7919_v38, 0  ;;  %v1489_v51 = vperm.slane %v7919_v38, 3 }
 0x131   : > { %727 = vperm.xlu2 %7681, %v722_v29   ;;  %1065 = vperm.xlu0 %7682, %v1060_v27  }
 0x132   : > { %1227 = vperm.xlu1 %7690, %v11077_v28  }
 0x139   : > { %7684 = vset.pattern.permute.xlu2 %v7863_v17  ;;  %1078 = vperm.xlu0 %7682, %v1073_v30  }
 0x13a   : > { %7699 = vset.pattern.permute.xlu1 %v7841_v9 }
 0x141   : > { %837 = vperm.xlu2 %7684, %v826_v20   ;;  %1351 = vperm.xlu0 %7682, %v1346_v32  }
 0x142   : > { %1052 = vperm.xlu1 %7699, %v1047_v33  }
 0x149   : > { %7685 = vset.pattern.permute.xlu2 %v7841_v9  ;;  %1364 = vperm.xlu0 %7682, %v1359_v34  }
 0x14a   : > { %7705 = vset.pattern.permute.xlu1 %v7863_v17 }
 0x151   : > { %844 = vperm.xlu2 %7685, %v839_v37   ;;  %1377 = vperm.xlu0 %7682, %v1372_v35  }
 0x152   : > { %1435 = vperm.xlu1 %7705, %v11075_v36  }
 0x159   : > { %7686 = vset.pattern.permute.xlu2 %v7863_v17  ;;  %1455 = vperm.xlu0 %7682, %v1450_v39  }
 0x15a   : > { %7706 = vset.pattern.permute.xlu1 %v7841_v9 }
 0x161   : > { %850 = vperm.xlu2 %7686, %v839_v37   ;;  %1390 = vperm.xlu0 %7682, %v11079_v40  }
 0x162   : > { %1442 = vperm.xlu1 %7706, %v1437_v41  }
 0x169   : > { %7687 = vset.pattern.permute.xlu2 %v7841_v9  ;;  %7719 = vset.pattern.permute.xlu0 %v7863_v17 }
 0x16a   : > { %7712 = vset.pattern.permute.xlu1 %v7863_v17 }
 0x16b   : > { %v819_v58 = vpop.permute.xlu2 %818 }
 0x171   : > { %857 = vperm.xlu2 %7687, %v852_v44   ;;  %811 = vperm.xlu0 %7719, %v11076_v45  }
 0x172   : > { %1292 = vperm.xlu1 %7712, %v1281_v43  }
 0x179   : > { %7688 = vset.pattern.permute.xlu2 %v7863_v17  ;;  %1019 = vperm.xlu0 %7719, %v11078_v46  }
 0x17a   : > { %7717 = vset.pattern.permute.xlu1 %v7841_v9 }
 0x17b   : > { %v7977_v60 = vpop.permute.xlu2 %824 }
 0x181   : > { %863 = vperm.xlu2 %7688, %v852_v44   ;;  %1448 = vperm.xlu0 %7719, %v1437_v41  }
 0x182   : > { %1182 = vperm.xlu1 %7717, %v1177_v47  }
 0x183   : > { %v7946_v48 = vpop.permute.xlu0 %740 }
 0x189   : > { %7689 = vset.pattern.permute.xlu2 %v7841_v9  ;;  %1253 = vperm.xlu0 %7719, %v1242_v49  }
 0x18a   : > { %7718 = vset.pattern.permute.xlu1 %v7863_v17 }
 0x18b   : > { %v7953_v50 = vpop.permute.xlu0 %753  ;;  %v7982_v61 = vpop.permute.xlu2 %727 }
 0x18c   : > { %v7998_v4 = vpop.permute.xlu1 %831 }
 0x191   : > { %870 = vperm.xlu2 %7689, %v865_v52   ;;  %1461 = vperm.xlu0 %7719, %v1450_v39  }
 0x192   : > { %1500 = vperm.xlu1 %7718, %v1489_v51  }
 0x193   : > { %v7959_v53 = vpop.permute.xlu0 %766 }
 0x199   : > { %1026 = vperm.xlu2 %7689, %v1021_v25   ;;  %733 = vperm.xlu0 %7719, %v722_v29   ;;  %v11081_v25 = vperm.slane %v7887_v26, 4 }
 0x19b   : > { %v7965_v54 = vpop.permute.xlu0 %1234  ;;  %v7989_v1 = vpop.permute.xlu2 %837 }
 0x19c   : > { %v8006_v7 = vpop.permute.xlu1 %1032 }
 0x1a1   : > { %935 = vperm.xlu2 %7689, %v930_v55   ;;  %1357 = vperm.xlu0 %7719, %v1346_v32  }
 0x1a3   : > { %v7968_v56 = vpop.permute.xlu0 %1065 }
 0x1a4   : > { %v1228_v13 = vpop.permute.xlu1 %1227 }
 0x1a9   : > { %7691 = vset.pattern.permute.xlu2 %v7863_v17  ;;  %1058 = vperm.xlu0 %7719, %v1047_v33  }
 0x1ab   : > { %v7971_v57 = vpop.permute.xlu0 %1078  ;;  %v7996_v3 = vpop.permute.xlu2 %844 }
 0x1b1   : > { %941 = vperm.xlu2 %7691, %v930_v55   ;;  %746 = vperm.xlu0 %7719, %v735_v16  }
 0x1b3   : > { %v7975_v59 = vpop.permute.xlu0 %1351 }
 0x1b9   : > { %7692 = vset.pattern.permute.xlu2 %v7841_v9  ;;  %1370 = vperm.xlu0 %7719, %v1359_v34  }
 0x1bb   : > { %v7984_v62 = vpop.permute.xlu0 %1364  ;;  %v8004_v6 = vpop.permute.xlu2 %850 }
 0x1c1   : > { %948 = vperm.xlu2 %7692, %v943_v63   ;;  %1071 = vperm.xlu0 %7719, %v1060_v27  }
 0x1c3   : > { %v7991_v2 = vpop.permute.xlu0 %1377 }
 0x1c7   : > { %479 = vxpose.xlu1.b32.start.end [1/1] (short) %v475_v0, 128 }
 0x1c9   : > { %7693 = vset.pattern.permute.xlu2 %v7863_v17  ;;  %759 = vperm.xlu0 %7719, %v748_v19   ;;  %v8020_v19 = vpop.permute.xlu1 %1052 }
 0x1cb   : > { %v8002_v5 = vpop.permute.xlu0 %1455  ;;  %v8011_v10 = vpop.permute.xlu2 %857 }
 0x1d1   : > { %954 = vperm.xlu2 %7693, %v943_v63   ;;  %1383 = vperm.xlu0 %7719, %v1372_v35   ;;  %v1436_v32 = vpop.permute.xlu1 %1435 }
 0x1d3   : > { %v8009_v8 = vpop.permute.xlu0 %1390 }
 0x1d9   : > { %7694 = vset.pattern.permute.xlu2 %v7841_v9  ;;  %876 = vperm.xlu0 %7719, %v865_v52   ;;  %v1443_v39 = vpop.permute.xlu1 %1442  ;;  %v1138_v52 = vperm.slane %v7878_v23, 0 }
 0x1db   : > { %v8017_v15 = vpop.permute.xlu2 %863 }
 0x1e1   : > { %961 = vperm.xlu2 %7694, %v956_v11   ;;  %980 = vperm.xlu0 %7719, %v969_v12  }
 0x1e3   : > { %v812_v16 = vpop.permute.xlu0 %811 }
 0x1e9   : > { %7695 = vset.pattern.permute.xlu2 %v7863_v17  ;;  %1188 = vperm.xlu0 %7719, %v1177_v47   ;;  %v1034_v47 = vperm.slane %v7887_v26, 0 }
 0x1eb   : > { %v8022_v20 = vpop.permute.xlu2 %870  ;;  %v1020_v27 = vpop.permute.xlu0 %1019 }
 0x1ec   : > { %v1568_v29 = vsel %vm1554_vm1, %v812_v16, %v1020_v27  ;;  %v1151_v16 = vperm.slane %v7878_v23, 1 }
 0x1ed   : > { %v1601_v33 = vsel %vm1587_vm2, %v1568_v29, %v1228_v13  ;;  %v8060_v29 = vpop.permute.xlu1 %1292 }
 0x1ee   : > { %v1634_v35 = vsel %vm1620_vm3, %v1601_v33, %v1436_v32  ;;  %v1570_v33 = vsel %vm1554_vm1, %v7977_v60, %v8006_v7  ;;  %v1164_v60 = vperm.slane %v7878_v23, 2 }
 0x1f1   : > { %967 = vperm.xlu2 %7695, %v956_v11   ;;  %1097 = vperm.xlu0 %7719, %v11081_v25   ;;  %v476_v11 = vld.sshfl [vmem:[#allocation1 + $0x8] sm:$0xff pattern:$0x75316420] }
 0x1f3   : > { %v1027_v34 = vpop.permute.xlu2 %1026  ;;  %v1449_v63 = vpop.permute.xlu0 %1448 }
 0x1f4   : > { %v1569_v37 = vsel %vm1554_vm1, %v819_v58, %v1027_v34 }
 0x1f5   : > { %v1602_v41 = vsel %vm1587_vm2, %v1569_v37, %v7965_v54 }
 0x1f6   : > { %v1635_v44 = vsel %vm1620_vm3, %v1602_v41, %v1443_v39  ;;  %v8071_v39 = vpop.permute.xlu1 %1182 }
 0x1f9   : > { %1240 = vperm.xlu2 %7695, %v1229_v24   ;;  %1711 = vrot.lane.b32.xlu0 %v1634_v35, %s7755_s29 }
 0x1fb   : > { %v8042_v24 = vpop.permute.xlu2 %935  ;;  %v8055_v13 = vpop.permute.xlu0 %1253 }
 0x201   : > { %7696 = vset.pattern.permute.xlu2 %v7841_v9  ;;  %1713 = vrot.lane.b32.xlu0 %v1635_v44, %s7755_s29 }
 0x203   : > { %v8062_v32 = vpop.permute.xlu0 %1461 }
 0x204   : > { %v8076_v44 = vpop.permute.xlu1 %1500 }
 0x209   : > { %1039 = vperm.xlu2 %7696, %v1034_v47  }
 0x20b   : > { %v8045_v54 = vpop.permute.xlu2 %941  ;;  %v8073_v41 = vpop.permute.xlu0 %733 }
 0x211   : > { %7697 = vset.pattern.permute.xlu2 %v7863_v17 }
 0x219   : > { %1045 = vperm.xlu2 %7697, %v1034_v47   ;;  %v8078_v47 = vpop.permute.xlu0 %1357 }
 0x21b   : > { %v8048_v55 = vpop.permute.xlu2 %948 }
 0x221   : > { %7698 = vset.pattern.permute.xlu2 %v7841_v9 }
 0x229   : > { %1143 = vperm.xlu2 %7698, %v1138_v52  }
 0x22b   : > { %v8050_v58 = vpop.permute.xlu2 %954 }
 0x231   : > { %7700 = vset.pattern.permute.xlu2 %v7863_v17 }
 0x239   : > { %1149 = vperm.xlu2 %7700, %v1138_v52   ;;  %v8082_v52 = vpop.permute.xlu0 %1058 }
 0x23b   : > { %v8053_v0 = vpop.permute.xlu2 %961 }
 0x241   : > { %7701 = vset.pattern.permute.xlu2 %v7841_v9 }
 0x247   : > { %511 = vxpose.xlu1.b32.start.end [1/1] (short) %v476_v11, 128  ;;  %v747_v11 = vpop.permute.xlu0 %746 }
 0x249   : > { %1156 = vperm.xlu2 %7701, %v1151_v16  }
 0x24b   : > { %v8058_v27 = vpop.permute.xlu2 %967 }
 0x251   : > { %7702 = vset.pattern.permute.xlu2 %v7863_v17 }
 0x253   : > { %v1241_v34 = vpop.permute.xlu2 %1240 }
 0x254   : > { %v1603_v35 = vsel %vm1587_vm2, %v1570_v33, %v1241_v34  ;;  %v1371_v33 = vpop.permute.xlu0 %1370 }
 0x255   : > { %v1636_v37 = vsel %vm1620_vm3, %v1603_v35, %v1449_v63 }
 0x256   : > { %1715 = vrot.lane.b32.xlu0 %v1636_v37, %s7755_s29 }
 0x259   : > { %1162 = vperm.xlu2 %7702, %v1151_v16  }
 0x261   : > { %7703 = vset.pattern.permute.xlu2 %v7841_v9 }
 0x263   : > { %v8089_v34 = vpop.permute.xlu2 %1039 }
 0x269   : > { %1169 = vperm.xlu2 %7703, %v1164_v60  }
 0x26b   : > { %v495_v7 = vpop.trf.xlu1 }
 0x26c   : > { %544 = vst.msk [vmem:[#allocation2 + $0x19] sm:$0xff] %vm426_vm4, %v495_v7 }
 0x271   : > { %7704 = vset.pattern.permute.xlu2 %v7863_v17 }
 0x273   : > { %v496_v63 = vpop.trf.xlu1  ;;  %v8093_v37 = vpop.permute.xlu2 %1045 }
 0x274   : > { %545 = vst.msk [vmem:[#allocation2 + $0x21] sm:$0xff] %vm426_vm4, %v496_v63  ;;  %v8095_v63 = vpop.permute.xlu0 %1071 }
 0x279   : > { %1175 = vperm.xlu2 %7704, %v1164_v60  }
 0x27b   : > { %v497_v16 = vpop.trf.xlu1 }
 0x27c   : > { %546 = vst.msk [vmem:[#allocation2 + $0x31] sm:$0xff] %vm426_vm4, %v497_v16  ;;  %v8103_v16 = vpop.permute.xlu0 %759 }
 0x281   : > { %1084 = vperm.xlu2 %7704, %v1073_v30  }
 0x283   : > { %v498_v35 = vpop.trf.xlu1  ;;  %v8100_v60 = vpop.permute.xlu2 %1143 }
 0x284   : > { %547 = vst.msk [vmem:[#allocation2 + $0x39] sm:$0xff] %vm426_vm4, %v498_v35  ;;  %v1255_v35 = vperm.slane %v7931_v42, 1 }
 0x289   : > { %7707 = vset.pattern.permute.xlu2 %v7841_v9 }
 0x28b   : > { %v499_v7 = vpop.trf.xlu1 }
 0x28c   : > { %548 = vst.msk [vmem:[#allocation2 + $0x49] sm:$0xff] %vm426_vm4, %v499_v7  ;;  %v8110_v7 = vpop.permute.xlu0 %1383 }
 0x291   : > { %1247 = vperm.xlu2 %7707, %v1242_v49   ;;  %v1557_v49 = vsel %vm1554_vm1, %v7946_v48, %v8048_v55  ;;  %v1558_v48 = vsel %vm1554_vm1, %v747_v11, %v8050_v58  ;;  %v7061_v58 = vld [vmem:[%s11068_s4 + $0x8] sm:$0xff] }
 0x292   : > { %7667 = vmatpush.msrb.mxu2 %v7061_v58  ;;  %1992 = vmatpush.msrb.mxu0 %v7061_v58 }
 0x293   : > { %v500_v30 = vpop.trf.xlu1  ;;  %v8107_v36 = vpop.permute.xlu2 %1149 }
 0x294   : > { %549 = vst.msk [vmem:[#allocation2 + $0x51] sm:$0xff] %vm426_vm4, %v500_v30 }
 0x299   : > { %1260 = vperm.xlu2 %7707, %v1255_v35  }
 0x29a   : > { %7723 = vset.pattern.permute.xlu1 %v7841_v9 }
 0x29b   : > { %v501_v45 = vpop.trf.xlu1 }
 0x29c   : > { %550 = vst.msk [vmem:[#allocation2 + $0x61] sm:$0xff] %vm426_vm4, %v501_v45  ;;  %v8121_v45 = vpop.permute.xlu0 %876 }
 0x2a1   : > { %7708 = vset.pattern.permute.xlu2 %v7863_v17 }
 0x2a3   : > { %v502_v30 = vpop.trf.xlu1  ;;  %v1157_v28 = vpop.permute.xlu2 %1156 }
 0x2a4   : > { %551 = vst.msk [vmem:[#allocation2 + $0x69] sm:$0xff] %vm426_vm4, %v502_v30  ;;  %v1590_v46 = vsel %vm1587_vm2, %v1557_v49, %v1157_v28  ;;  %v8127_v25 = vpop.permute.xlu0 %980 }
 0x2a5   : > { %v1623_v40 = vsel %vm1620_vm3, %v1590_v46, %v7984_v62  ;;  %v11082_v46 = vmov 0.0  }
 0x2a6   : > { %1689 = vrot.lane.b32.xlu0 %v1623_v40, %s7755_s29  ;;  %381 = vst.msk [vmem:[#allocation2] sm:$0xff] %vm380_vm0, %v11082_v46 }
 0x2a7   : > { %382 = vst.msk [vmem:[#allocation2 + $0x8] sm:$0xff] %vm380_vm0, %v11082_v46 }
 0x2a8   : > { %386 = vst.msk [vmem:[#allocation2 + $0x198] sm:$0xff] %vm380_vm0, %v11082_v46 }
 0x2a9   : > { %1266 = vperm.xlu2 %7708, %v1255_v35   ;;  %387 = vst.msk [vmem:[#allocation2 + $0x1a0] sm:$0xff] %vm380_vm0, %v11082_v46 }
 0x2aa   : > { %427 = vst.msk [vmem:[#allocation3] sm:$0xff] %vm426_vm4, %v11082_v46 }
 0x2ab   : > { %v503_v21 = vpop.trf.xlu1  ;;  %428 = vst.msk [vmem:[#allocation3 + $0x8] sm:$0xff] %vm426_vm4, %v11082_v46 }
 0x2ac   : > { %552 = vst.msk [vmem:[#allocation2 + $0x79] sm:$0xff] %vm426_vm4, %v503_v21  ;;  %v1268_v21 = vperm.slane %v7931_v42, 2  ;;  %v8154_v11 = vpop.permute.xlu0 %1188 }
 0x2ad   : > { %432 = vst.msk [vmem:[#allocation3 + $0x198] sm:$0xff] %vm426_vm4, %v11082_v46 }
 0x2ae   : > { %433 = vst.msk [vmem:[#allocation3 + $0x1a0] sm:$0xff] %vm426_vm4, %v11082_v46 }
 0x2af   : > { %390 = vst.msk [vmem:[#allocation2] sm:$0x1] %vm389_vm5, %v11082_v46 }
 0x2b0   : > { %391 = vst.msk [vmem:[#allocation2 + $0x18] sm:$0x1] %vm389_vm5, %v11082_v46 }
 0x2b1   : > { %7709 = vset.pattern.permute.xlu2 %v7841_v9  ;;  %392 = vst.msk [vmem:[#allocation2 + $0x30] sm:$0x1] %vm389_vm5, %v11082_v46 }
 0x2b2   : > { %393 = vst.msk [vmem:[#allocation2 + $0x48] sm:$0x1] %vm389_vm5, %v11082_v46 }
 0x2b3   : > { %v504_v55 = vpop.trf.xlu1  ;;  %v1163_v30 = vpop.permute.xlu2 %1162  ;;  %394 = vst.msk [vmem:[#allocation2 + $0x60] sm:$0x1] %vm389_vm5, %v11082_v46 }
 0x2b4   : > { %553 = vst.msk [vmem:[#allocation2 + $0x81] sm:$0xff] %vm426_vm4, %v504_v55  ;;  %v1591_v28 = vsel %vm1587_vm2, %v1558_v48, %v1163_v30  ;;  %v8176_v35 = vpop.permute.xlu0 %1097 }
 0x2b5   : > { %v1624_v40 = vsel %vm1620_vm3, %v1591_v28, %v1371_v33  ;;  %395 = vst.msk [vmem:[#allocation2 + $0x78] sm:$0x1] %vm389_vm5, %v11082_v46 }
 0x2b6   : > { %1691 = vrot.lane.b32.xlu0 %v1624_v40, %s7755_s29  ;;  %396 = vst.msk [vmem:[#allocation2 + $0x90] sm:$0x1] %vm389_vm5, %v11082_v46 }
 0x2b7   : > { %397 = vst.msk [vmem:[#allocation2 + $0xa8] sm:$0x1] %vm389_vm5, %v11082_v46 }
 0x2b8   : > { %398 = vst.msk [vmem:[#allocation2 + $0xc0] sm:$0x1] %vm389_vm5, %v11082_v46 }
 0x2b9   : > { %1273 = vperm.xlu2 %7709, %v1268_v21   ;;  %399 = vst.msk [vmem:[#allocation2 + $0xd8] sm:$0x1] %vm389_vm5, %v11082_v46 }
 0x2ba   : > { %400 = vst.msk [vmem:[#allocation2 + $0xf0] sm:$0x1] %vm389_vm5, %v11082_v46 }
 0x2bb   : > { %v505_v62 = vpop.trf.xlu1  ;;  %401 = vst.msk [vmem:[#allocation2 + $0x108] sm:$0x1] %vm389_vm5, %v11082_v46 }
 0x2bc   : > { %554 = vst.msk [vmem:[#allocation2 + $0x91] sm:$0xff] %vm426_vm4, %v505_v62  ;;  %v1712_v55 = vpop.permute.xlu0 %1711 }
 0x2bd   : > { %402 = vst.msk [vmem:[#allocation2 + $0x120] sm:$0x1] %vm389_vm5, %v11082_v46 }
 0x2be   : > { %403 = vst.msk [vmem:[#allocation2 + $0x138] sm:$0x1] %vm389_vm5, %v11082_v46 }
 0x2bf   : > { %404 = vst.msk [vmem:[#allocation2 + $0x150] sm:$0x1] %vm389_vm5, %v11082_v46 }
 0x2c0   : > { %405 = vst.msk [vmem:[#allocation2 + $0x168] sm:$0x1] %vm389_vm5, %v11082_v46 }
 0x2c1   : > { %7710 = vset.pattern.permute.xlu2 %v7863_v17  ;;  %406 = vst.msk [vmem:[#allocation2 + $0x180] sm:$0x1] %vm389_vm5, %v11082_v46 }
 0x2c2   : > { %407 = vst.msk [vmem:[#allocation2 + $0x198] sm:$0x1] %vm389_vm5, %v11082_v46 }
 0x2c3   : > { %v506_v33 = vpop.trf.xlu1  ;;  %v8195_v48 = vpop.permute.xlu2 %1169  ;;  %409 = vst.msk [vmem:[#allocation2 + $0x29] sm:$0x1] %vm389_vm5, %v11082_v46 }
 0x2c4   : > { %555 = vst.msk [vmem:[#allocation2 + $0x99] sm:$0xff] %vm426_vm4, %v506_v33 }
 0x2c5   : > { %410 = vst.msk [vmem:[#allocation2 + $0x41] sm:$0x1] %vm389_vm5, %v11082_v46 }
 0x2c6   : > { %411 = vst.msk [vmem:[#allocation2 + $0x59] sm:$0x1] %vm389_vm5, %v11082_v46 }
 0x2c7   : > { %412 = vst.msk [vmem:[#allocation2 + $0x71] sm:$0x1] %vm389_vm5, %v11082_v46 }
 0x2c8   : > { %413 = vst.msk [vmem:[#allocation2 + $0x89] sm:$0x1] %vm389_vm5, %v11082_v46 }
 0x2c9   : > { %1279 = vperm.xlu2 %7710, %v1268_v21   ;;  %414 = vst.msk [vmem:[#allocation2 + $0xa1] sm:$0x1] %vm389_vm5, %v11082_v46  ;;  %v1714_v21 = vpop.permute.xlu0 %1713 }
 0x2ca   : > { %415 = vst.msk [vmem:[#allocation2 + $0xb9] sm:$0x1] %vm389_vm5, %v11082_v46 }
 0x2cb   : > { %v507_v49 = vpop.trf.xlu1  ;;  %416 = vst.msk [vmem:[#allocation2 + $0xd1] sm:$0x1] %vm389_vm5, %v11082_v46 }
 0x2cc   : > { %556 = vst.msk [vmem:[#allocation2 + $0xa9] sm:$0xff] %vm426_vm4, %v507_v49 }
 0x2cd   : > { %417 = vst.msk [vmem:[#allocation2 + $0xe9] sm:$0x1] %vm389_vm5, %v11082_v46 }
 0x2ce   : > { %418 = vst.msk [vmem:[#allocation2 + $0x101] sm:$0x1] %vm389_vm5, %v11082_v46 }
 0x2cf   : > { %419 = vst.msk [vmem:[#allocation2 + $0x119] sm:$0x1] %vm389_vm5, %v11082_v46 }
 0x2d0   : > { %420 = vst.msk [vmem:[#allocation2 + $0x131] sm:$0x1] %vm389_vm5, %v11082_v46 }
 0x2d1   : > { %7711 = vset.pattern.permute.xlu2 %v7841_v9  ;;  %421 = vst.msk [vmem:[#allocation2 + $0x149] sm:$0x1] %vm389_vm5, %v11082_v46  ;;  %v1716_v49 = vpop.permute.xlu0 %1715 }
 0x2d2   : > { %422 = vst.msk [vmem:[#allocation2 + $0x161] sm:$0x1] %vm389_vm5, %v11082_v46 }
 0x2d3   : > { %v508_v30 = vpop.trf.xlu1  ;;  %v8212_v28 = vpop.permute.xlu2 %1175  ;;  %423 = vst.msk [vmem:[#allocation2 + $0x179] sm:$0x1] %vm389_vm5, %v11082_v46 }
 0x2d4   : > { %557 = vst.msk [vmem:[#allocation2 + $0xb1] sm:$0xff] %vm426_vm4, %v508_v30  ;;  %v1571_v30 = vsel %vm1554_vm1, %v7998_v4, %v8089_v34 }
 0x2d5   : > { %1795 = vst.msk [vmem:[#allocation2 + $0xb1] sm:$0xff] %vm1781_vm6, %v1712_v55 }
 0x2d6   : > { %424 = vst.msk [vmem:[#allocation2 + $0x191] sm:$0x1] %vm389_vm5, %v11082_v46 }
 0x2d7   : > { %384 = vst.msk [vmem:[#allocation2 + $0x10] sm:$0x3] %vm383_vm7, %v11082_v46 }
 0x2d8   : > { %388 = vst.msk [vmem:[#allocation2 + $0x1a8] sm:$0x3] %vm383_vm7, %v11082_v46 }
 0x2d9   : > { %1286 = vperm.xlu2 %7711, %v1281_v43   ;;  %v1463_v43 = vperm.slane %v7919_v38, 1  ;;  %408 = vst.msk [vmem:[#allocation2 + $0x11] sm:$0x1] %vm389_vm5, %v11082_v46 }
 0x2da   : > { %425 = vst.msk [vmem:[#allocation2 + $0x1a9] sm:$0x1] %vm389_vm5, %v11082_v46 }
 0x2db   : > { %v509_v40 = vpop.trf.xlu1  ;;  %v8236_v58 = vpop.permute.xlu2 %1084 }
 0x2dc   : > { %558 = vst.msk [vmem:[#allocation2 + $0xc1] sm:$0xff] %vm426_vm4, %v509_v40  ;;  %v1862_v62 = vld [vmem:[#allocation2 + $0xb1] sm:$0xff] }
 0x2dd   : > { %1796 = vst.msk [vmem:[#allocation2 + $0xc1] sm:$0xff] %vm1781_vm6, %v1714_v21  ;;  %7077 = vmatmul.msk.f32.vlgmr.msrb.gmra.mxu2 %vm380_vm0, %v1862_v62 }
 0x2e1   : > { %1468 = vperm.xlu2 %7711, %v1463_v43  }
 0x2e3   : > { %v510_v33 = vpop.trf.xlu1 }
 0x2e4   : > { %559 = vst.msk [vmem:[#allocation2 + $0xc9] sm:$0xff] %vm426_vm4, %v510_v33  ;;  %v1863_v55 = vld [vmem:[#allocation2 + $0xc1] sm:$0xff] }
 0x2e5   : > { %1797 = vst.msk [vmem:[#allocation2 + $0xc9] sm:$0xff] %vm1781_vm6, %v1716_v49  ;;  %7078 = vmatmul.msk.f32.gmra.mxu2 %vm380_vm0, %v1863_v55  ;;  %v1572_v55 = vsel %vm1554_vm1, %v7989_v1, %v8093_v37  ;;  %v1476_v1 = vperm.slane %v7919_v38, 2  ;;  %v1398_v37 = vperm.slane %v7903_v31, 4 }
 0x2e6   : > { %v1605_v4 = vsel %vm1587_vm2, %v1572_v55, %v8055_v13 }
 0x2e9   : > { %7713 = vset.pattern.permute.xlu2 %v7863_v17 }
 0x2eb   : > { %v1248_v40 = vpop.permute.xlu2 %1247  ;;  %v527_v21 = vpop.trf.xlu1 }
 0x2ec   : > { %v1604_v62 = vsel %vm1587_vm2, %v1571_v30, %v1248_v40  ;;  %v1864_v33 = vld [vmem:[#allocation2 + $0xc9] sm:$0xff]  ;;  %560 = vst.msk [vmem:[#allocation2 + $0xd9] sm:$0xff] %vm426_vm4, %v527_v21  ;;  %v1638_v30 = vsel %vm1620_vm3, %v1605_v4, %v8062_v32  ;;  %v774_v40 = vperm.slane %v7856_v14, 4 }
 0x2ed   : > { %7079 = vmatmul.msk.f32.gmra.mxu2 %vm380_vm0, %v1864_v33  ;;  %v1637_v49 = vsel %vm1620_vm3, %v1604_v62, %v8002_v5 }
 0x2ee   : > { %1717 = vrot.lane.b32.xlu0 %v1637_v49, %s7755_s29 }
 0x2f1   : > { %1474 = vperm.xlu2 %7713, %v1463_v43   ;;  %v891_v43 = vperm.slane %v7865_v18, 5 }
 0x2f3   : > { %v528_v34 = vpop.trf.xlu1  ;;  %v1261_v21 = vpop.permute.xlu2 %1260 }
 0x2f4   : > { %561 = vst.msk [vmem:[#allocation2 + $0xe1] sm:$0xff] %vm426_vm4, %v528_v34 }
 0x2f6   : > { %1719 = vrot.lane.b32.xlu0 %v1638_v30, %s7755_s29 }
 0x2f9   : > { %7714 = vset.pattern.permute.xlu2 %v7841_v9 }
 0x2fb   : > { %v529_v5 = vpop.trf.xlu1 }
 0x2fc   : > { %562 = vst.msk [vmem:[#allocation2 + $0xf1] sm:$0xff] %vm426_vm4, %v529_v5 }
 0x2fe   : > { %785 = vperm.xlu0 %7719, %v774_v40  }
 0x301   : > { %1481 = vperm.xlu2 %7714, %v1476_v1  }
 0x303   : > { %v530_v13 = vpop.trf.xlu1  ;;  %v1267_v49 = vpop.permute.xlu2 %1266 }
 0x304   : > { %563 = vst.msk [vmem:[#allocation2 + $0xf9] sm:$0xff] %vm426_vm4, %v530_v13 }
 0x306   : > { %1409 = vperm.xlu0 %7719, %v1398_v37  }
 0x309   : > { %7715 = vset.pattern.permute.xlu2 %v7863_v17 }
 0x30b   : > { %v531_v32 = vpop.trf.xlu1 }
 0x30c   : > { %564 = vst.msk [vmem:[#allocation2 + $0x109] sm:$0xff] %vm426_vm4, %v531_v32  ;;  %v1573_v32 = vsel %vm1554_vm1, %v7996_v3, %v8020_v19  ;;  %v1574_v3 = vsel %vm1554_vm1, %v8004_v6, %v8082_v52  ;;  %v11158_v52 = vperm.slane %v7903_v31, 3 }
 0x30d   : > { %v1607_v19 = vsel %vm1587_vm2, %v1574_v3, %v1267_v49  ;;  %v1576_v3 = vsel %vm1554_vm1, %v8017_v15, %v8095_v63  ;;  %v1560_v15 = vsel %vm1554_vm1, %v8103_v16, %v8058_v27  ;;  %v1578_v27 = vsel %vm1554_vm1, %v8121_v45, %v8236_v58 }
 0x30e   : > { %902 = vperm.xlu0 %7719, %v891_v43   ;;  %v1593_v63 = vsel %vm1587_vm2, %v1560_v15, %v8212_v28  ;;  %v1611_v16 = vsel %vm1587_vm2, %v1578_v27, %v8060_v29  ;;  %v1555_v45 = vsel %vm1554_vm1, %v7982_v61, %v8042_v24 }
 0x30f   : > { %v1588_v58 = vsel %vm1587_vm2, %v1555_v45, %v8100_v60  ;;  %v1320_v60 = vperm.slane %v7931_v42, 6  ;;  %v1203_v45 = vperm.slane %v7878_v23, 5 }
 0x310   : > { %v1621_v29 = vsel %vm1620_vm3, %v1588_v58, %v7975_v59 }
 0x311   : > { %1487 = vperm.xlu2 %7715, %v1476_v1   ;;  %v11156_v1 = vperm.slane %v7887_v26, 4 }
 0x313   : > { %v532_v62 = vpop.trf.xlu1  ;;  %v8285_v4 = vpop.permute.xlu2 %1273 }
 0x314   : > { %565 = vst.msk [vmem:[#allocation2 + $0x111] sm:$0xff] %vm426_vm4, %v532_v62 }
 0x318   : > { %v1690_v33 = vpop.permute.xlu0 %1689 }
 0x319   : > { %779 = vperm.xlu1 %7723, %v774_v40   ;;  %1784 = vst.msk [vmem:[#allocation2 + $0x31] sm:$0xff] %vm1781_vm6, %v1690_v33  ;;  %7716 = vset.pattern.permute.xlu2 %v7841_v9 }
 0x31b   : > { %v533_v55 = vpop.trf.xlu1 }
 0x31c   : > { %566 = vst.msk [vmem:[#allocation2 + $0x121] sm:$0xff] %vm426_vm4, %v533_v55 }
 0x321   : > { %1494 = vperm.xlu2 %7716, %v1489_v51  }
 0x323   : > { %v534_v34 = vpop.trf.xlu1  ;;  %v1280_v5 = vpop.permute.xlu2 %1279 }
 0x324   : > { %567 = vst.msk [vmem:[#allocation2 + $0x129] sm:$0xff] %vm426_vm4, %v534_v34  ;;  %v11157_v34 = vperm.slane %v7856_v14, 3 }
 0x328   : > { %v1692_v30 = vpop.permute.xlu0 %1691 }
 0x329   : > { %1785 = vst.msk [vmem:[#allocation2 + $0x39] sm:$0xff] %vm1781_vm6, %v1692_v30  ;;  %974 = vperm.xlu2 %7716, %v969_v12   ;;  %v1606_v12 = vsel %vm1587_vm2, %v1573_v32, %v1261_v21 }
 0x32b   : > { %v535_v40 = vpop.trf.xlu1 }
 0x32c   : > { %568 = vst.msk [vmem:[#allocation2 + $0x139] sm:$0xff] %vm426_vm4, %v535_v40 }
 0x331   : > { %1091 = vperm.xlu2 %7716, %v11156_v1  }
 0x333   : > { %v8294_v13 = vpop.permute.xlu2 %1286  ;;  %v536_v51 = vpop.trf.xlu1 }
 0x334   : > { %569 = vst.msk [vmem:[#allocation2 + $0x141] sm:$0xff] %vm426_vm4, %v536_v51  ;;  %v1502_v51 = vperm.slane %v7919_v38, 4 }
 0x339   : > { %7720 = vset.pattern.permute.xlu2 %v7863_v17 }
 0x33b   : > { %v1469_v62 = vpop.permute.xlu2 %1468  ;;  %v537_v33 = vpop.trf.xlu1 }
 0x33c   : > { %v8303_v55 = vsel %vm1620_vm3, %v1606_v12, %v1469_v62  ;;  %570 = vst.msk [vmem:[#allocation2 + $0x151] sm:$0xff] %vm426_vm4, %v537_v33  ;;  %v878_v33 = vperm.slane %v7865_v18, 4 }
 0x341   : > { %772 = vperm.xlu2 %7720, %v11157_v34  }
 0x343   : > { %v538_v30 = vpop.trf.xlu1 }
 0x344   : > { %571 = vst.msk [vmem:[#allocation2 + $0x159] sm:$0xff] %vm426_vm4, %v538_v30 }
 0x349   : > { %7721 = vset.pattern.permute.xlu2 %v7841_v9 }
 0x34b   : > { %v1475_v21 = vpop.permute.xlu2 %1474  ;;  %v539_v40 = vpop.trf.xlu1 }
 0x34c   : > { %v8315_v1 = vsel %vm1620_vm3, %v1607_v19, %v1475_v21  ;;  %572 = vst.msk [vmem:[#allocation2 + $0x169] sm:$0xff] %vm426_vm4, %v539_v40  ;;  %v1609_v19 = vsel %vm1587_vm2, %v1576_v3, %v1280_v5  ;;  %v1626_v5 = vsel %vm1620_vm3, %v1593_v63, %v8110_v7  ;;  %v1644_v7 = vsel %vm1620_vm3, %v1611_v16, %v8076_v44  ;;  %v1847_v3 = vld [vmem:[#allocation2 + $0x1] sm:$0xff]  ;;  %v1848_v63 = vld [vmem:[#allocation2 + $0x9] sm:$0xff] }
 0x34d   : > { %7062 = vmatmul.msk.f32.vlgmr.msrb.gmra.mxu0 %vm380_vm0, %v1847_v3  ;;  %v1515_v16 = vperm.slane %v7919_v38, 5  ;;  %v8511_v3 = vld [vmem:[#allocation2 + $0x30] sm:$0xff] }
 0x351   : > { %1507 = vperm.xlu2 %7721, %v1502_v51  }
 0x353   : > { %v540_v32 = vpop.trf.xlu1 }
 0x354   : > { %573 = vst.msk [vmem:[#allocation2 + $0x171] sm:$0xff] %vm426_vm4, %v540_v32  ;;  %v1294_v32 = vperm.slane %v7931_v42, 4 }
 0x355   : > { %7063 = vmatmul.msk.f32.gmra.mxu0 %vm380_vm0, %v1848_v63 }
 0x359   : > { %7722 = vset.pattern.permute.xlu2 %v7863_v17 }
 0x35b   : > { %v541_v12 = vpop.trf.xlu1  ;;  %v1482_v49 = vpop.permute.xlu2 %1481 }
 0x35c   : > { %574 = vst.msk [vmem:[#allocation2 + $0x181] sm:$0xff] %vm426_vm4, %v541_v12 }
 0x360   : > { %v1718_v6 = vpop.permute.xlu0 %1717 }
 0x361   : > { %1798 = vst.msk [vmem:[#allocation2 + $0xd9] sm:$0xff] %vm1781_vm6, %v1718_v6  ;;  %1396 = vperm.xlu2 %7722, %v11158_v52   ;;  %v1307_v6 = vperm.slane %v7931_v42, 5  ;;  %v787_v52 = vperm.slane %v7856_v14, 5 }
 0x363   : > { %v542_v62 = vpop.trf.xlu1 }
 0x364   : > { %575 = vst.msk [vmem:[#allocation2 + $0x189] sm:$0xff] %vm426_vm4, %v542_v62 }
 0x368   : > { %v1720_v34 = vpop.permute.xlu0 %1719  ;;  %v1865_v30 = vld [vmem:[#allocation2 + $0xd9] sm:$0xff] }
 0x369   : > { %1799 = vst.msk [vmem:[#allocation2 + $0xe1] sm:$0xff] %vm1781_vm6, %v1720_v34  ;;  %889 = vperm.xlu2 %7722, %v878_v33   ;;  %7080 = vmatmul.msk.f32.gmra.mxu2 %vm380_vm0, %v1865_v30  ;;  %v1190_v30 = vperm.slane %v7878_v23, 4 }
 0x36b   : > { %v1488_v21 = vpop.permute.xlu2 %1487 }
 0x36c   : > { %v1642_v40 = vsel %vm1620_vm3, %v1609_v19, %v1488_v21  ;;  %v1814_v21 = vld [vmem:[#allocation2] sm:$0xff] }
 0x36d   : > { %1727 = vrot.lane.b32.xlu0 %v1642_v40, %s7755_s29 }
 0x370   : > { %v1866_v12 = vld [vmem:[#allocation2 + $0xe1] sm:$0xff] }
 0x371   : > { %1305 = vperm.xlu2 %7722, %v1294_v32   ;;  %7081 = vmatmul.msk.f32.gmra.mxu2 %vm380_vm0, %v1866_v12 }
 0x375   : > { %1318 = vperm.xlu0 %7719, %v1307_v6  }
 0x379   : > { %1513 = vperm.xlu2 %7722, %v1502_v51   ;;  %v1411_v51 = vperm.slane %v7903_v31, 5 }
 0x37b   : > { %v8360_v28 = vpop.permute.xlu2 %1494 }
 0x37d   : > { %1695 = vrot.lane.b32.xlu0 %v1626_v5, %s7755_s29  ;;  %v995_v5 = vperm.slane %v7873_v22, 5 }
 0x381   : > { %7724 = vset.pattern.permute.xlu2 %v7841_v9 }
 0x383   : > { %v8374_v44 = vpop.permute.xlu2 %974 }
 0x385   : > { %798 = vperm.xlu0 %7719, %v787_v52  }
 0x389   : > { %1403 = vperm.xlu2 %7724, %v1398_v37   ;;  %v904_v37 = vperm.slane %v7865_v18, 6 }
 0x38b   : > { %v8388_v59 = vpop.permute.xlu2 %1091 }
 0x38d   : > { %1731 = vrot.lane.b32.xlu0 %v1644_v7, %s7755_s29 }
 0x391   : > { %896 = vperm.xlu2 %7724, %v891_v43   ;;  %v1556_v43 = vsel %vm1554_vm1, %v8073_v41, %v8045_v54  ;;  %v1575_v41 = vsel %vm1554_vm1, %v8011_v10, %v7968_v56  ;;  %v8414_v56 = vpop.permute.xlu0 %785 }
 0x392   : > { %v1589_v61 = vsel %vm1587_vm2, %v1556_v43, %v8107_v36  ;;  %v1112_v43 = vperm.slane %v7887_v26, 6 }
 0x393   : > { %v1622_v24 = vsel %vm1620_vm3, %v1589_v61, %v8078_v47  ;;  %v1608_v47 = vsel %vm1587_vm2, %v1575_v41, %v8285_v4  ;;  %v982_v4 = vperm.slane %v7873_v22, 4 }
 0x394   : > { %v1641_v62 = vsel %vm1620_vm3, %v1608_v47, %v1482_v49  ;;  %v11159_v47 = vperm.slane %v7873_v22, 6  ;;  %v1528_v22 = vperm.slane %v7919_v38, 6 }
 0x395   : > { %1422 = vperm.xlu0 %7719, %v1411_v51  }
 0x399   : > { %1685 = vrot.lane.b32.xlu2 %v1621_v29, %s7755_s29  ;;  %v8426_v40 = vpop.permute.xlu0 %1409 }
 0x39b   : > { %v773_v54 = vpop.permute.xlu2 %772 }
 0x39d   : > { %915 = vperm.xlu0 %7719, %v904_v37  }
 0x3a1   : > { %1687 = vrot.lane.b32.xlu2 %v1622_v24, %s7755_s29  ;;  %v8440_v15 = vpop.permute.xlu0 %902 }
 0x3a5   : > { %1331 = vperm.xlu0 %7719, %v1320_v60  }
 0x3a9   : > { %1721 = vrot.lane.b32.xlu2 %v8303_v55, %s7755_s29  ;;  %v1562_v55 = vsel %vm1554_vm1, %v773_v54, %v8127_v25  ;;  %v1846_v25 = vld [vmem:[%s11068_s4] sm:$0xff]  ;;  %v1559_v54 = vsel %vm1554_vm1, %v7953_v50, %v8053_v0  ;;  %v11160_v50 = vperm.slane %v7878_v23, 6 }
 0x3aa   : > { %2201 = vmatpush.msra.mxu1 %v1846_v25  ;;  %7668 = vmatpush.msrb.mxu3 %v1846_v25  ;;  %v1592_v41 = vsel %vm1587_vm2, %v1559_v54, %v8195_v48 }
 0x3ab   : > { %v8398_v36 = vpop.permute.xlu2 %1507  ;;  %7094 = vmatmul.msk.f32.vlgmr.msra.gmra.mxu1 %vm380_vm0, %v1814_v21 }
 0x3ad   : > { %7734 = vset.pattern.permute.xlu0 %v7841_v9 }
 0x3b1   : > { %1723 = vrot.lane.b32.xlu2 %v8315_v1, %s7755_s29  ;;  %v1595_v1 = vsel %vm1587_vm2, %v1562_v55, %v8154_v11  ;;  %v1625_v55 = vsel %vm1620_vm3, %v1592_v41, %v7991_v2 }
 0x3b5   : > { %883 = vperm.xlu0 %7734, %v878_v33  }
 0x3b9   : > { %1725 = vrot.lane.b32.xlu2 %v1641_v62, %s7755_s29 }
 0x3bb   : > { %v1397_v34 = vpop.permute.xlu2 %1396 }
 0x3bc   : > { %v8412_v33 = vsel %vm1620_vm3, %v1595_v1, %v1397_v34 }
 0x3bd   : > { %1299 = vperm.xlu0 %7734, %v1294_v32  }
 0x3c1   : > { %1312 = vperm.xlu2 %7724, %v1307_v6   ;;  %v1815_v6 = vld [vmem:[#allocation2 + $0x8] sm:$0xff] }
 0x3c2   : > { %7095 = vmatmul.msk.f32.gmra.mxu1 %vm380_vm0, %v1815_v6 }
 0x3c3   : > { %v890_v10 = vpop.permute.xlu2 %889 }
 0x3c4   : > { %v1580_v11 = vsel %vm1554_vm1, %v890_v10, %v8176_v35  ;;  %v1099_v35 = vperm.slane %v7887_v26, 5 }
 0x3c5   : > { %987 = vperm.xlu0 %7734, %v982_v4  }
 0x3c9   : > { %7725 = vset.pattern.permute.xlu2 %v7863_v17 }
 0x3cb   : > { %v1306_v49 = vpop.permute.xlu2 %1305 }
 0x3cc   : > { %v1613_v19 = vsel %vm1587_vm2, %v1580_v11, %v1306_v49  ;;  %v8502_v49 = vld [vmem:[#allocation2 + $0x31] sm:$0xff] }
 0x3cd   : > { %1195 = vperm.xlu0 %7734, %v1190_v30  }
 0x3d1   : > { %993 = vperm.xlu2 %7725, %v982_v4  }
 0x3d3   : > { %v1514_v32 = vpop.permute.xlu2 %1513 }
 0x3d4   : > { %v8433_v12 = vsel %vm1620_vm3, %v1613_v19, %v1514_v32  ;;  %v8517_v19 = vld [vmem:[#allocation2 + $0x39] sm:$0xff] }
 0x3d5   : > { %1104 = vperm.xlu0 %7734, %v1099_v35   ;;  %v8526_v32 = vld [vmem:[#allocation2 + $0x38] sm:$0xff] }
 0x3d9   : > { %7726 = vset.pattern.permute.xlu2 %v7841_v9 }
 0x3dd   : > { %1000 = vperm.xlu0 %7734, %v995_v5  }
 0x3df   : > { %v1728_v27 = vpop.permute.xlu0 %1727 }
 0x3e0   : > { %1803 = vst.msk [vmem:[#allocation2 + $0x111] sm:$0xff] %vm1781_vm6, %v1728_v27  ;;  %v1577_v27 = vsel %vm1554_vm1, %v8022_v20, %v7971_v57 }
 0x3e1   : > { %1520 = vperm.xlu2 %7726, %v1515_v16  }
 0x3e3   : > { %v8449_v7 = vpop.permute.xlu2 %1403 }
 0x3e5   : > { %1208 = vperm.xlu0 %7734, %v1203_v45  }
 0x3e7   : > { %v8454_v58 = vpop.permute.xlu0 %1318  ;;  %v1870_v63 = vld [vmem:[#allocation2 + $0x111] sm:$0xff] }
 0x3e9   : > { %7727 = vset.pattern.permute.xlu2 %v7863_v17 }
 0x3eb   : > { %v8457_v29 = vpop.permute.xlu2 %896 }
 0x3ed   : > { %1117 = vperm.xlu0 %7734, %v1112_v43  }
 0x3ef   : > { %v1696_v61 = vpop.permute.xlu0 %1695 }
 0x3f0   : > { %1787 = vst.msk [vmem:[#allocation2 + $0x51] sm:$0xff] %vm1781_vm6, %v1696_v61 }
 0x3f1   : > { %1201 = vperm.xlu2 %7727, %v1190_v30  }
 0x3f3   : > { %v1686_v24 = vpop.permute.xlu2 %1685 }
 0x3f4   : > { %1782 = vst.msk [vmem:[#allocation2 + $0x19] sm:$0xff] %vm1781_vm6, %v1686_v24  ;;  %v1610_v24 = vsel %vm1587_vm2, %v1577_v27, %v8294_v13 }
 0x3f5   : > { %1013 = vperm.xlu0 %7734, %v11159_v47   ;;  %v1643_v54 = vsel %vm1620_vm3, %v1610_v24, %v8360_v28  ;;  %v780_v28 = vpop.permute.xlu1 %779 }
 0x3f7   : > { %v8471_v62 = vpop.permute.xlu0 %798  ;;  %v8933_v46 = vld [vmem:[#allocation2 + $0x52] sm:$0xff] }
 0x3f9   : > { %1693 = vrot.lane.b32.xlu2 %v1625_v55, %s7755_s29 }
 0x3fb   : > { %v1688_v34 = vpop.permute.xlu2 %1687  ;;  %v8476_v1 = vld [vmem:[#allocation2 + $0x19] sm:$0xff] }
 0x3fc   : > { %v8478_v10 = vld [vmem:[#allocation2 + $0x18] sm:$0xff]  ;;  %1783 = vst.msk [vmem:[#allocation2 + $0x21] sm:$0xff] %vm1781_vm6, %v1688_v34  ;;  %7064 = vmatmul.msk.f32.gmra.mxu0 %vm380_vm0, %v8476_v1 }
 0x3fd   : > { %7096 = vmatmul.msk.f32.gmra.mxu1 %vm380_vm0, %v8478_v10  ;;  %1221 = vperm.xlu0 %7734, %v11160_v50  }
 0x3ff   : > { %v1732_v0 = vpop.permute.xlu0 %1731 }
 0x400   : > { %1805 = vst.msk [vmem:[#allocation2 + $0x129] sm:$0xff] %vm1781_vm6, %v1732_v0 }
 0x401   : > { %1110 = vperm.xlu2 %7727, %v1099_v35  }
 0x403   : > { %v1722_v2 = vpop.permute.xlu2 %1721  ;;  %v8488_v48 = vld [vmem:[#allocation2 + $0x21] sm:$0xff] }
 0x404   : > { %v8490_v4 = vld [vmem:[#allocation2 + $0x20] sm:$0xff]  ;;  %1800 = vst.msk [vmem:[#allocation2 + $0xf1] sm:$0xff] %vm1781_vm6, %v1722_v2  ;;  %7065 = vmatmul.msk.f32.gmra.mxu0 %vm380_vm0, %v8488_v48 }
 0x405   : > { %7097 = vmatmul.msk.f32.gmra.mxu1 %vm380_vm0, %v8490_v4  ;;  %1699 = vrot.lane.b32.xlu0 %v8412_v33, %s7755_s29 }
 0x407   : > { %v8500_v25 = vpop.permute.xlu0 %1422 }
 0x409   : > { %7728 = vset.pattern.permute.xlu2 %v7841_v9 }
 0x40b   : > { %v1724_v11 = vpop.permute.xlu2 %1723  ;;  %v8504_v30 = vld [vmem:[#allocation2 + $0xf1] sm:$0xff] }
 0x40c   : > { %1801 = vst.msk [vmem:[#allocation2 + $0xf9] sm:$0xff] %vm1781_vm6, %v1724_v11  ;;  %7066 = vmatmul.msk.f32.gmra.mxu0 %vm380_vm0, %v8502_v49  ;;  %7082 = vmatmul.msk.f32.gmra.mxu2 %vm380_vm0, %v8504_v30 }
 0x40d   : > { %7098 = vmatmul.msk.f32.gmra.mxu1 %vm380_vm0, %v8511_v3 }
 0x40f   : > { %v8528_v35 = vpop.permute.xlu0 %915 }
 0x411   : > { %792 = vperm.xlu2 %7728, %v787_v52  }
 0x413   : > { %v1726_v33 = vpop.permute.xlu2 %1725  ;;  %v8519_v21 = vld [vmem:[#allocation2 + $0xf9] sm:$0xff] }
 0x414   : > { %1802 = vst.msk [vmem:[#allocation2 + $0x109] sm:$0xff] %vm1781_vm6, %v1726_v33  ;;  %7067 = vmatmul.msk.f32.gmra.mxu0 %vm380_vm0, %v8517_v19  ;;  %7083 = vmatmul.msk.f32.gmra.mxu2 %vm380_vm0, %v8519_v21 }
 0x415   : > { %7099 = vmatmul.msk.f32.gmra.mxu1 %vm380_vm0, %v8526_v32 }
 0x417   : > { %v8537_v6 = vpop.permute.xlu0 %1331 }
 0x419   : > { %7729 = vset.pattern.permute.xlu2 %v7863_v17 }
 0x41b   : > { %v8533_v52 = vld [vmem:[#allocation2 + $0x109] sm:$0xff]  ;;  %v1313_v57 = vpop.permute.xlu2 %1312 }
 0x41c   : > { %7084 = vmatmul.msk.f32.gmra.mxu2 %vm380_vm0, %v8533_v52 }
 0x421   : > { %1526 = vperm.xlu2 %7729, %v1515_v16  }
 0x424   : > { %7085 = vmatmul.msk.f32.gmra.mxu2 %vm380_vm0, %v1870_v63 }
 0x427   : > { %v884_v61 = vpop.permute.xlu0 %883 }
 0x428   : > { %v1579_v16 = vsel %vm1554_vm1, %v884_v61, %v8388_v59 }
 0x429   : > { %7730 = vset.pattern.permute.xlu2 %v7841_v9 }
 0x42a   : > { %1729 = vrot.lane.b32.xlu2 %v1643_v54, %s7755_s29 }
 0x42b   : > { %v994_v13 = vpop.permute.xlu2 %993 }
 0x42c   : > { %v1564_v33 = vsel %vm1554_vm1, %v8414_v56, %v994_v13 }
 0x42f   : > { %v1300_v41 = vpop.permute.xlu0 %1299 }
 0x430   : > { %v8552_v47 = vsel %vm1587_vm2, %v1579_v16, %v1300_v41 }
 0x432   : > { %1416 = vperm.xlu2 %7730, %v1411_v51  }
 0x437   : > { %v988_v20 = vpop.permute.xlu0 %987 }
 0x438   : > { %v1563_v55 = vsel %vm1554_vm1, %v780_v28, %v988_v20  ;;  %v1561_v20 = vsel %vm1554_vm1, %v7959_v53, %v8374_v44 }
 0x439   : > { %v1594_v28 = vsel %vm1587_vm2, %v1561_v20, %v8071_v39 }
 0x43a   : > { %909 = vperm.xlu2 %7730, %v904_v37  }
 0x43b   : > { %v1521_v51 = vpop.permute.xlu2 %1520 }
 0x43f   : > { %v1196_v34 = vpop.permute.xlu0 %1195 }
 0x440   : > { %v1596_v50 = vsel %vm1587_vm2, %v1563_v55, %v1196_v34 }
 0x441   : > { %v1629_v59 = vsel %vm1620_vm3, %v1596_v50, %v8449_v7  ;;  %v1627_v50 = vsel %vm1620_vm3, %v1594_v28, %v8009_v8 }
 0x442   : > { %1325 = vperm.xlu2 %7730, %v1320_v60   ;;  %1701 = vrot.lane.b32.xlu1 %v1629_v59, %s7755_s29 }
 0x447   : > { %v1105_v0 = vpop.permute.xlu0 %1104 }
 0x448   : > { %v1581_v37 = vsel %vm1554_vm1, %v8457_v29, %v1105_v0 }
 0x449   : > { %v1614_v2 = vsel %vm1587_vm2, %v1581_v37, %v1313_v57  ;;  %v1645_v37 = vsel %vm1620_vm3, %v8552_v47, %v8398_v36 }
 0x44a   : > { %7731 = vset.pattern.permute.xlu2 %v7863_v17  ;;  %v1647_v11 = vsel %vm1620_vm3, %v1614_v2, %v1521_v51  ;;  %v8633_v51 = vld [vmem:[#allocation2 + $0x129] sm:$0xff] }
 0x44b   : > { %v1202_v7 = vpop.permute.xlu2 %1201  ;;  %1737 = vrot.lane.b32.xlu0 %v1647_v11, %s7755_s29 }
 0x44c   : > { %v8574_v60 = vsel %vm1587_vm2, %v1564_v33, %v1202_v7 }
 0x44f   : > { %v1001_v63 = vpop.permute.xlu0 %1000 }
 0x452   : > { %1006 = vperm.xlu2 %7731, %v995_v5   ;;  %v8589_v5 = vld [vmem:[#allocation2 + $0x51] sm:$0xff] }
 0x453   : > { %v1694_v29 = vpop.permute.xlu2 %1693 }
 0x454   : > { %1786 = vst.msk [vmem:[#allocation2 + $0x49] sm:$0xff] %vm1781_vm6, %v1694_v29 }
 0x457   : > { %v1209_v27 = vpop.permute.xlu0 %1208 }
 0x45a   : > { %7732 = vset.pattern.permute.xlu2 %v7841_v9 }
 0x45b   : > { %v8580_v61 = vld [vmem:[#allocation2 + $0x49] sm:$0xff]  ;;  %v1111_v41 = vpop.permute.xlu2 %1110 }
 0x45c   : > { %v8582_v24 = vld [vmem:[#allocation2 + $0x48] sm:$0xff]  ;;  %7068 = vmatmul.msk.f32.gmra.mxu0 %vm380_vm0, %v8580_v61  ;;  %v8591_v54 = vld [vmem:[#allocation2 + $0x50] sm:$0xff]  ;;  %v1582_v34 = vsel %vm1554_vm1, %v8440_v15, %v1111_v41 }
 0x45d   : > { %7100 = vmatmul.msk.f32.gmra.mxu1 %vm380_vm0, %v8582_v24 }
 0x45f   : > { %v1118_v56 = vpop.permute.xlu0 %1117 }
 0x462   : > { %1533 = vperm.xlu2 %7732, %v1528_v22  }
 0x464   : > { %7069 = vmatmul.msk.f32.gmra.mxu0 %vm380_vm0, %v8589_v5 }
 0x465   : > { %7101 = vmatmul.msk.f32.gmra.mxu1 %vm380_vm0, %v8591_v54 }
 0x467   : > { %v8597_v16 = vpop.permute.xlu0 %1013 }
 0x46a   : > { %7733 = vset.pattern.permute.xlu2 %v7863_v17 }
 0x46b   : > { %v793_v13 = vpop.permute.xlu2 %792 }
 0x46c   : > { %v1565_v44 = vsel %vm1554_vm1, %v793_v13, %v1001_v63 }
 0x46d   : > { %v1598_v15 = vsel %vm1587_vm2, %v1565_v44, %v1209_v27 }
 0x46f   : > { %v8600_v57 = vpop.permute.xlu0 %1221 }
 0x472   : > { %1214 = vperm.xlu2 %7733, %v1203_v45   ;;  %v1615_v45 = vsel %vm1587_vm2, %v1582_v34, %v8454_v58 }
 0x477   : > { %v1700_v55 = vpop.permute.xlu0 %1699 }
 0x478   : > { %1789 = vst.msk [vmem:[#allocation2 + $0x69] sm:$0xff] %vm1781_vm6, %v1700_v55 }
 0x47a   : > { %1697 = vrot.lane.b32.xlu2 %v1627_v50, %s7755_s29  ;;  %v1333_v50 = vperm.slane %v7931_v42, 7 }
 0x47b   : > { %v1527_v23 = vpop.permute.xlu2 %1526 }
 0x47c   : > { %v1648_v53 = vsel %vm1620_vm3, %v1615_v45, %v1527_v23  ;;  %v7159_v23 = vld [vmem:[%s11068_s4 + $0x18] sm:$0xff] }
 0x47d   : > { %1739 = vrot.lane.b32.xlu1 %v1648_v53, %s7755_s29  ;;  %2719 = vmatpush.msrb.mxu1 %v7159_v23 }
 0x47f   : > { %v8679_v20 = vld [vmem:[#allocation2 + $0x69] sm:$0xff] }
 0x482   : > { %1123 = vperm.xlu2 %7733, %v1112_v43   ;;  %v11161_v43 = vperm.slane %v7856_v14, 6  ;;  %v11162_v14 = vperm.slane %v7903_v31, 6 }
 0x484   : > { %v1730_v39 = vpop.permute.xlu2 %1729 }
 0x485   : > { %1804 = vst.msk [vmem:[#allocation2 + $0x121] sm:$0xff] %vm1781_vm6, %v1730_v39 }
 0x48a   : > { %7735 = vset.pattern.permute.xlu2 %v7841_v9 }
 0x48c   : > { %v1417_v8 = vpop.permute.xlu2 %1416  ;;  %v8625_v59 = vld [vmem:[#allocation2 + $0x121] sm:$0xff] }
 0x48d   : > { %v1631_v58 = vsel %vm1620_vm3, %v1598_v15, %v1417_v8  ;;  %7086 = vmatmul.msk.f32.gmra.mxu2 %vm380_vm0, %v8625_v59 }
 0x48e   : > { %1705 = vrot.lane.b32.xlu0 %v1631_v58, %s7755_s29  ;;  %v1125_v58 = vperm.slane %v7887_v26, 7 }
 0x492   : > { %805 = vperm.xlu2 %7735, %v11161_v43  }
 0x494   : > { %v910_v0 = vpop.permute.xlu2 %909 }
 0x495   : > { %7087 = vmatmul.msk.f32.gmra.mxu2 %vm380_vm0, %v8633_v51  ;;  %v1583_v31 = vsel %vm1554_vm1, %v910_v0, %v1118_v56 }
 0x49a   : > { %7736 = vset.pattern.permute.xlu2 %v7863_v17 }
 0x49c   : > { %v1326_v2 = vpop.permute.xlu2 %1325 }
 0x49d   : > { %v1616_v47 = vsel %vm1587_vm2, %v1583_v31, %v1326_v2 }
 0x4a2   : > { %1539 = vperm.xlu2 %7736, %v1528_v22   ;;  %v917_v22 = vperm.slane %v7865_v18, 7  ;;  %v7126_v18 = vld [vmem:[%s11068_s4 + $0x10] sm:$0xff] }
 0x4a3   : > { %2444 = vmatpush.msra.mxu0 %v7126_v18 }
 0x4aa   : > { %7737 = vset.pattern.permute.xlu2 %v7841_v9  ;;  %v1630_v9 = vsel %vm1620_vm3, %v8574_v60, %v8426_v40  ;;  %v7192_v60 = vld [vmem:[%s11068_s4 + $0x20] sm:$0xff] }
 0x4ab   : > { %1733 = vrot.lane.b32.xlu2 %v1645_v37, %s7755_s29  ;;  %2994 = vmatpush.msra.mxu2 %v7192_v60  ;;  %v8783_v60 = vpop.f32.mrf.mxu2 }
 0x4ac   : > { %v1007_v33 = vpop.permute.xlu2 %1006  ;;  %11165 = vst [vmem:[#allocation6_spill] sm:$0xff] %v8783_v60 }
 0x4b3   : > { %1429 = vperm.xlu2 %7737, %v11162_v14  }
 0x4b4   : > { %v1702_v11 = vpop.permute.xlu1 %1701 }
 0x4b5   : > { %1790 = vst.msk [vmem:[#allocation2 + $0x79] sm:$0xff] %vm1781_vm6, %v1702_v11 }
 0x4bb   : > { %1735 = vrot.lane.b32.xlu2 %v8433_v12, %s7755_s29  ;;  %v1566_v12 = vsel %vm1554_vm1, %v8471_v62, %v1007_v33 }
 0x4bc   : > { %v1534_v36 = vpop.permute.xlu2 %1533  ;;  %v8691_v55 = vld [vmem:[#allocation2 + $0x79] sm:$0xff] }
 0x4bd   : > { %v1738_v7 = vpop.permute.xlu0 %1737  ;;  %v1649_v63 = vsel %vm1620_vm3, %v1616_v47, %v1534_v36  ;;  %v8693_v34 = vld [vmem:[#allocation2 + $0x78] sm:$0xff] }
 0x4be   : > { %1808 = vst.msk [vmem:[#allocation2 + $0x151] sm:$0xff] %vm1781_vm6, %v1738_v7 }
 0x4c3   : > { %1703 = vrot.lane.b32.xlu2 %v1630_v9, %s7755_s29 }
 0x4c5   : > { %v8733_v33 = vld [vmem:[#allocation2 + $0x151] sm:$0xff] }
 0x4cb   : > { %1741 = vrot.lane.b32.xlu2 %v1649_v63, %s7755_s29 }
 0x4cc   : > { %v1215_v29 = vpop.permute.xlu2 %1214 }
 0x4cd   : > { %v1599_v27 = vsel %vm1587_vm2, %v1566_v12, %v1215_v29  ;;  %v7324_v29 = vld [vmem:[%s11068_s4 + $0x40] sm:$0xff] }
 0x4ce   : > { %v1632_v40 = vsel %vm1620_vm3, %v1599_v27, %v8500_v25  ;;  %v1541_v25 = vperm.slane %v7919_v38, 7  ;;  %v7225_v38 = vld [vmem:[%s11068_s4 + $0x28] sm:$0xff]  ;;  %v7258_v27 = vld [vmem:[%s11068_s4 + $0x30] sm:$0xff]  ;;  %4095 = vmatpush.msrb.mxu2 %v7324_v29 }
 0x4cf   : > { %1707 = vrot.lane.b32.xlu1 %v1632_v40, %s7755_s29  ;;  %3269 = vmatpush.msra.mxu3 %v7225_v38  ;;  %v7291_v40 = vld [vmem:[%s11068_s4 + $0x38] sm:$0xff] }
 0x4d0   : > { %3545 = vmatpush.msrb.mxu0 %v7258_v27  ;;  %3820 = vmatpush.msra.mxu1 %v7291_v40 }
 0x4d4   : > { %v1698_v56 = vpop.permute.xlu2 %1697 }
 0x4d5   : > { %1788 = vst.msk [vmem:[#allocation2 + $0x61] sm:$0xff] %vm1781_vm6, %v1698_v56 }
 0x4d7   : > { %922 = vperm.xlu1 %7723, %v917_v22  }
 0x4dc   : > { %v8668_v62 = vld [vmem:[#allocation2 + $0x61] sm:$0xff]  ;;  %v1124_v28 = vpop.permute.xlu2 %1123 }
 0x4dd   : > { %v8670_v41 = vld [vmem:[#allocation2 + $0x60] sm:$0xff]  ;;  %7070 = vmatmul.msk.f32.gmra.mxu0 %vm380_vm0, %v8668_v62  ;;  %v8681_v13 = vld [vmem:[#allocation2 + $0x68] sm:$0xff]  ;;  %v1584_v39 = vsel %vm1554_vm1, %v8528_v35, %v1124_v28 }
 0x4de   : > { %7102 = vmatmul.msk.f32.gmra.mxu1 %vm380_vm0, %v8670_v41  ;;  %v1617_v8 = vsel %vm1587_vm2, %v1584_v39, %v8537_v6 }
 0x4df   : > { %1546 = vperm.xlu1 %7723, %v1541_v25  }
 0x4e5   : > { %7071 = vmatmul.msk.f32.gmra.mxu0 %vm380_vm0, %v8679_v20 }
 0x4e6   : > { %7103 = vmatmul.msk.f32.gmra.mxu1 %vm380_vm0, %v8681_v13 }
 0x4e7   : > { %7740 = vset.pattern.permute.xlu1 %v7863_v17 }
 0x4ec   : > { %v806_v53 = vpop.permute.xlu2 %805 }
 0x4ed   : > { %7072 = vmatmul.msk.f32.gmra.mxu0 %vm380_vm0, %v8691_v55  ;;  %v1567_v35 = vsel %vm1554_vm1, %v806_v53, %v8597_v16  ;;  %v8797_v53 = vpop.f32.mrf.mxu2 }
 0x4ee   : > { %7104 = vmatmul.msk.f32.gmra.mxu1 %vm380_vm0, %v8693_v34  ;;  %v1600_v6 = vsel %vm1587_vm2, %v1567_v35, %v8600_v57  ;;  %11166 = vst [vmem:[#allocation7_spill] sm:$0xff] %v8797_v53 }
 0x4ef   : > { %1344 = vperm.xlu1 %7740, %v1333_v50   ;;  %v1740_v45 = vpop.permute.xlu1 %1739 }
 0x4f0   : > { %1809 = vst.msk [vmem:[#allocation2 + $0x159] sm:$0xff] %vm1781_vm6, %v1740_v45 }
 0x4f7   : > { %v8746_v9 = vld [vmem:[#allocation2 + $0x159] sm:$0xff] }
 0x4f8   : > { %11163 = vst [vmem:[#allocation4_spill] sm:$0xff] %v8746_v9 }
 0x4fc   : > { %v1540_v44 = vpop.permute.xlu2 %1539 }
 0x4fd   : > { %v1650_v15 = vsel %vm1620_vm3, %v1617_v8, %v1540_v44  ;;  %v2299_v8 = vld [vmem:[#allocation2 + $0x2] sm:$0xff] }
 0x4fe   : > { %1743 = vrot.lane.b32.xlu0 %v1650_v15, %s7755_s29 }
 0x500   : > { %v1706_v42 = vpop.permute.xlu0 %1705 }
 0x501   : > { %1792 = vst.msk [vmem:[#allocation2 + $0x91] sm:$0xff] %vm1781_vm6, %v1706_v42 }
 0x505   : > { %v1734_v43 = vpop.permute.xlu2 %1733 }
 0x506   : > { %1806 = vst.msk [vmem:[#allocation2 + $0x139] sm:$0xff] %vm1781_vm6, %v1734_v43  ;;  %1130 = vperm.xlu0 %7734, %v1125_v58  }
 0x508   : > { %v8752_v36 = vld [vmem:[#allocation2 + $0x90] sm:$0xff] }
 0x50d   : > { %v1430_v0 = vpop.permute.xlu2 %1429  ;;  %v8717_v37 = vld [vmem:[#allocation2 + $0x139] sm:$0xff] }
 0x50e   : > { %v1633_v14 = vsel %vm1620_vm3, %v1600_v6, %v1430_v0  ;;  %7088 = vmatmul.msk.f32.gmra.mxu2 %vm380_vm0, %v8717_v37  ;;  %7738 = vset.pattern.permute.xlu0 %v7863_v17  ;;  %v8814_v0 = vld [vmem:[#allocation2 + $0xc0] sm:$0xff] }
 0x50f   : > { %1709 = vrot.lane.b32.xlu2 %v1633_v14, %s7755_s29 }
 0x515   : > { %v1736_v26 = vpop.permute.xlu2 %1735 }
 0x516   : > { %1807 = vst.msk [vmem:[#allocation2 + $0x141] sm:$0xff] %vm1781_vm6, %v1736_v26  ;;  %928 = vperm.xlu0 %7738, %v917_v22   ;;  %v8786_v22 = vpop.f32.mrf.mxu0  ;;  %v8823_v26 = vpop.f32.mrf.mxu2 }
 0x517   : > { %1338 = vperm.xlu2 %7737, %v1333_v50   ;;  %11168 = vst [vmem:[#allocation9_spill] sm:$0xff] %v8823_v26 }
 0x51d   : > { %v1704_v16 = vpop.permute.xlu2 %1703  ;;  %v8725_v2 = vld [vmem:[#allocation2 + $0x141] sm:$0xff] }
 0x51e   : > { %1791 = vst.msk [vmem:[#allocation2 + $0x81] sm:$0xff] %vm1781_vm6, %v1704_v16  ;;  %7089 = vmatmul.msk.f32.gmra.mxu2 %vm380_vm0, %v8725_v2  ;;  %v8805_v39 = vpop.f32.mrf.mxu0  ;;  %v2300_v16 = vld [vmem:[#allocation2 + $0xa] sm:$0xff]  ;;  %v8839_v29 = vpop.f32.mrf.mxu2 }
 0x51f   : > { %7739 = vset.pattern.permute.xlu2 %v7863_v17  ;;  %v8744_v17 = vld [vmem:[#allocation2 + $0x91] sm:$0xff]  ;;  %11169 = vst [vmem:[#allocation10_spill] sm:$0xff] %v8839_v29 }
 0x525   : > { %v1742_v57 = vpop.permute.xlu2 %1741  ;;  %v8731_v11 = vld [vmem:[#allocation2 + $0x81] sm:$0xff] }
 0x526   : > { %v8735_v7 = vld [vmem:[#allocation2 + $0x80] sm:$0xff]  ;;  %1810 = vst.msk [vmem:[#allocation2 + $0x169] sm:$0xff] %vm1781_vm6, %v1742_v57  ;;  %7073 = vmatmul.msk.f32.gmra.mxu0 %vm380_vm0, %v8731_v11  ;;  %7090 = vmatmul.msk.f32.gmra.mxu2 %vm380_vm0, %v8733_v33  ;;  %v8826_v57 = vpop.f32.mrf.mxu0 }
 0x527   : > { %7105 = vmatmul.msk.f32.gmra.mxu1 %vm380_vm0, %v8735_v7  ;;  %1136 = vperm.xlu2 %7739, %v1125_v58   ;;  %v8983_v29 = vld [vmem:[#allocation2 + $0x7a] sm:$0xff]  ;;  %v9001_v53 = vld [vmem:[#allocation2 + $0x82] sm:$0xff] }
 0x52d   : > { %v8758_v31 = vld [vmem:[#allocation2 + $0x169] sm:$0xff] }
 0x52e   : > { %7074 = vmatmul.msk.f32.gmra.mxu0 %vm380_vm0, %v8744_v17  ;;  %7091 = vmatmul.msk.f32.gmra.mxu2 %vm380_vm0, %v8746_v9  ;;  %11164 = vst [vmem:[#allocation5_spill] sm:$0xff] %v8758_v31 }
 0x52f   : > { %7106 = vmatmul.msk.f32.gmra.mxu1 %vm380_vm0, %v8752_v36  ;;  %1552 = vperm.xlu2 %7739, %v1541_v25   ;;  %v8788_v25 = vpop.f32.mrf.mxu1 }
 0x536   : > { %7092 = vmatmul.msk.f32.gmra.mxu2 %vm380_vm0, %v8758_v31 }
 0x537   : > { %v8807_v44 = vpop.f32.mrf.mxu1 }
 0x541   : > { %v1708_v47 = vpop.permute.xlu1 %1707 }
 0x542   : > { %1793 = vst.msk [vmem:[#allocation2 + $0x99] sm:$0xff] %vm1781_vm6, %v1708_v47  ;;  %v8828_v47 = vpop.f32.mrf.mxu1 }
 0x549   : > { %v8763_v63 = vld [vmem:[#allocation2 + $0x99] sm:$0xff]  ;;  %v923_v18 = vpop.permute.xlu1 %922 }
 0x54a   : > { %v8765_v12 = vld [vmem:[#allocation2 + $0x98] sm:$0xff]  ;;  %7075 = vmatmul.msk.f32.gmra.mxu0 %vm380_vm0, %v8763_v63 }
 0x54b   : > { %7107 = vmatmul.msk.f32.gmra.mxu1 %vm380_vm0, %v8765_v12  ;;  %v9037_v9 = vld [vmem:[#allocation2 + $0x9a] sm:$0xff] }
 0x54c   : > { %11184 = vst [vmem:[#allocation25_spill] sm:$0xff] %v9037_v9 }
 0x551   : > { %v1547_v35 = vpop.permute.xlu1 %1546 }
 0x561   : > { %v1345_v40 = vpop.permute.xlu1 %1344 }
 0x569   : > { %v1710_v56 = vpop.permute.xlu2 %1709 }
 0x56a   : > { %1794 = vst.msk [vmem:[#allocation2 + $0xa9] sm:$0xff] %vm1781_vm6, %v1710_v56 }
 0x570   : > { %v1744_v28 = vpop.permute.xlu0 %1743 }
 0x571   : > { %1811 = vst.msk [vmem:[#allocation2 + $0x171] sm:$0xff] %vm1781_vm6, %v1744_v28  ;;  %v8791_v50 = vld [vmem:[#allocation2 + $0xa9] sm:$0xff]  ;;  %v1339_v58 = vpop.permute.xlu2 %1338 }
 0x572   : > { %v8793_v23 = vld [vmem:[#allocation2 + $0xa8] sm:$0xff]  ;;  %v8795_v45 = vld [vmem:[#allocation2 + $0xb0] sm:$0xff]  ;;  %7076 = vmatmul.msk.f32.gmra.mxu0 %vm380_vm0, %v8791_v50 }
 0x573   : > { %7108 = vmatmul.msk.f32.gmra.mxu1 %vm380_vm0, %v8793_v23  ;;  %7109 = vmatmul.msk.f32.vlgmr.msrb.gmra.mxu3 %vm380_vm0, %v8795_v45 }
 0x578   : > { %v1131_v15 = vpop.permute.xlu0 %1130  ;;  %v8809_v42 = vld [vmem:[#allocation2 + $0x171] sm:$0xff] }
 0x579   : > { %11167 = vst [vmem:[#allocation8_spill] sm:$0xff] %v8809_v42  ;;  %v1585_v43 = vsel %vm1554_vm1, %v923_v18, %v1131_v15  ;;  %7093 = vmatmul.msk.f32.gmra.mxu2 %vm380_vm0, %v8809_v42  ;;  %v8842_v18 = vld [vmem:[#allocation2 + $0x1a] sm:$0xff]  ;;  %v8855_v15 = vpop.f32.mrf.mxu1  ;;  %v9019_v42 = vld [vmem:[#allocation2 + $0x92] sm:$0xff] }
 0x57a   : > { %7127 = vmatmul.msk.f32.vlgmr.msra.gmra.mxu0 %vm380_vm0, %v2299_v8  ;;  %v1618_v6 = vsel %vm1587_vm2, %v1585_v43, %v1339_v58  ;;  %v8847_v8 = vld [vmem:[#allocation2 + $0xd8] sm:$0xff]  ;;  %v8861_v58 = vpop.f32.mrf.mxu2  ;;  %v8863_v43 = vld [vmem:[#allocation2 + $0x22] sm:$0xff] }
 0x57b   : > { %7160 = vmatmul.msk.f32.vlgmr.msrb.gmra.mxu1 %vm380_vm0, %v8478_v10  ;;  %7110 = vmatmul.msk.f32.gmra.mxu3 %vm380_vm0, %v8814_v0  ;;  %v1651_v14 = vsel %vm1620_vm3, %v1618_v6, %v1547_v35  ;;  %v8832_v10 = vld [vmem:[#allocation2 + $0xc8] sm:$0xff]  ;;  %11170 = vst [vmem:[#allocation11_spill] sm:$0xff] %v8861_v58  ;;  %v8867_v35 = vld [vmem:[#allocation2 + $0xe0] sm:$0xff] }
 0x57c   : > { %1745 = vrot.lane.b32.xlu1 %v1651_v14, %s7755_s29  ;;  %v8969_v58 = vld [vmem:[#allocation2 + $0x128] sm:$0xff] }
 0x581   : > { %v1137_v38 = vpop.permute.xlu2 %1136  ;;  %7193 = vmatmul.msk.f32.vlgmr.msra.gmra.mxu2 %vm380_vm0, %v8476_v1  ;;  %v8877_v6 = vpop.f32.mrf.mxu1 }
 0x582   : > { %7128 = vmatmul.msk.f32.gmra.mxu0 %vm380_vm0, %v2300_v16  ;;  %v8879_v14 = vpop.f32.mrf.mxu2  ;;  %v8881_v16 = vld [vmem:[#allocation2 + $0x32] sm:$0xff] }
 0x583   : > { %7161 = vmatmul.msk.f32.gmra.mxu1 %vm380_vm0, %v8490_v4  ;;  %7111 = vmatmul.msk.f32.gmra.mxu3 %vm380_vm0, %v8832_v10  ;;  %v8853_v4 = vpop.f32.mrf.mxu0  ;;  %11171 = vst [vmem:[#allocation12_spill] sm:$0xff] %v8879_v14  ;;  %v8951_v14 = vld [vmem:[#allocation2 + $0x62] sm:$0xff] }
 0x588   : > { %v929_v27 = vpop.permute.xlu0 %928 }
 0x589   : > { %v1586_v56 = vsel %vm1554_vm1, %v929_v27, %v1137_v38  ;;  %7194 = vmatmul.msk.f32.gmra.mxu2 %vm380_vm0, %v8488_v48  ;;  %v1553_v1 = vpop.permute.xlu2 %1552  ;;  %v8895_v38 = vpop.f32.mrf.mxu1 }
 0x58a   : > { %v1619_v28 = vsel %vm1587_vm2, %v1586_v56, %v1345_v40  ;;  %7129 = vmatmul.msk.f32.gmra.mxu0 %vm380_vm0, %v8842_v18  ;;  %v8897_v27 = vpop.f32.mrf.mxu2  ;;  %v8899_v40 = vld [vmem:[#allocation2 + $0x3a] sm:$0xff] }
 0x58b   : > { %7162 = vmatmul.msk.f32.gmra.mxu1 %vm380_vm0, %v8511_v3  ;;  %7112 = vmatmul.msk.f32.gmra.mxu3 %vm380_vm0, %v8847_v8  ;;  %v1652_v48 = vsel %vm1620_vm3, %v1619_v28, %v1553_v1  ;;  %v8875_v3 = vpop.f32.mrf.mxu0  ;;  %11172 = vst [vmem:[#allocation13_spill] sm:$0xff] %v8897_v27  ;;  %v8915_v1 = vld [vmem:[#allocation2 + $0x4a] sm:$0xff] }
 0x58c   : > { %1747 = vrot.lane.b32.xlu0 %v1652_v48, %s7755_s29  ;;  %v8921_v28 = vld [vmem:[#allocation2 + $0x108] sm:$0xff] }
 0x591   : > { %7195 = vmatmul.msk.f32.gmra.mxu2 %vm380_vm0, %v8502_v49  ;;  %v8885_v49 = vld [vmem:[#allocation2 + $0xf0] sm:$0xff]  ;;  %v8913_v56 = vpop.f32.mrf.mxu1 }
 0x592   : > { %7130 = vmatmul.msk.f32.gmra.mxu0 %vm380_vm0, %v8863_v43 }
 0x593   : > { %7163 = vmatmul.msk.f32.gmra.mxu1 %vm380_vm0, %v8526_v32  ;;  %7113 = vmatmul.msk.f32.gmra.mxu3 %vm380_vm0, %v8867_v35  ;;  %v8893_v32 = vpop.f32.mrf.mxu0 }
 0x599   : > { %7196 = vmatmul.msk.f32.gmra.mxu2 %vm380_vm0, %v8517_v19  ;;  %v8903_v19 = vld [vmem:[#allocation2 + $0xf8] sm:$0xff]  ;;  %v8931_v48 = vpop.f32.mrf.mxu1 }
 0x59a   : > { %7131 = vmatmul.msk.f32.gmra.mxu0 %vm380_vm0, %v8881_v16 }
 0x59b   : > { %7164 = vmatmul.msk.f32.gmra.mxu1 %vm380_vm0, %v8582_v24  ;;  %7114 = vmatmul.msk.f32.gmra.mxu3 %vm380_vm0, %v8885_v49  ;;  %v8911_v24 = vpop.f32.mrf.mxu0 }
 0x5a1   : > { %7197 = vmatmul.msk.f32.gmra.mxu2 %vm380_vm0, %v8580_v61  ;;  %v8919_v61 = vpop.f32.mrf.mxu2  ;;  %v8949_v27 = vpop.f32.mrf.mxu1 }
 0x5a2   : > { %7132 = vmatmul.msk.f32.gmra.mxu0 %vm380_vm0, %v8899_v40  ;;  %11173 = vst [vmem:[#allocation14_spill] sm:$0xff] %v8919_v61 }
 0x5a3   : > { %7165 = vmatmul.msk.f32.gmra.mxu1 %vm380_vm0, %v8591_v54  ;;  %7115 = vmatmul.msk.f32.gmra.mxu3 %vm380_vm0, %v8903_v19  ;;  %v8929_v54 = vpop.f32.mrf.mxu0 }
 0x5a9   : > { %7198 = vmatmul.msk.f32.gmra.mxu2 %vm380_vm0, %v8589_v5  ;;  %v8937_v5 = vld [vmem:[#allocation2 + $0x110] sm:$0xff] }
 0x5aa   : > { %7133 = vmatmul.msk.f32.gmra.mxu0 %vm380_vm0, %v8915_v1 }
 0x5ab   : > { %7166 = vmatmul.msk.f32.gmra.mxu1 %vm380_vm0, %v8670_v41  ;;  %7116 = vmatmul.msk.f32.gmra.mxu3 %vm380_vm0, %v8921_v28  ;;  %v8945_v41 = vpop.f32.mrf.mxu2  ;;  %v8947_v61 = vpop.f32.mrf.mxu0 }
 0x5ac   : > { %11174 = vst [vmem:[#allocation15_spill] sm:$0xff] %v8945_v41  ;;  %v8965_v41 = vld [vmem:[#allocation2 + $0x6a] sm:$0xff] }
 0x5b1   : > { %7199 = vmatmul.msk.f32.gmra.mxu2 %vm380_vm0, %v8668_v62  ;;  %v8955_v62 = vld [vmem:[#allocation2 + $0x120] sm:$0xff] }
 0x5b2   : > { %7134 = vmatmul.msk.f32.gmra.mxu0 %vm380_vm0, %v8933_v46 }
 0x5b3   : > { %7167 = vmatmul.msk.f32.gmra.mxu1 %vm380_vm0, %v8681_v13  ;;  %7117 = vmatmul.msk.f32.gmra.mxu3 %vm380_vm0, %v8937_v5  ;;  %v8963_v13 = vpop.f32.mrf.mxu2 }
 0x5b4   : > { %11175 = vst [vmem:[#allocation16_spill] sm:$0xff] %v8963_v13 }
 0x5b9   : > { %7200 = vmatmul.msk.f32.gmra.mxu2 %vm380_vm0, %v8679_v20  ;;  %v8975_v20 = vpop.f32.mrf.mxu0 }
 0x5ba   : > { %7135 = vmatmul.msk.f32.gmra.mxu0 %vm380_vm0, %v8951_v14 }
 0x5bb   : > { %7168 = vmatmul.msk.f32.gmra.mxu1 %vm380_vm0, %v8693_v34  ;;  %7118 = vmatmul.msk.f32.gmra.mxu3 %vm380_vm0, %v8955_v62  ;;  %v8977_v34 = vpop.f32.mrf.mxu1  ;;  %v8981_v13 = vpop.f32.mrf.mxu2 }
 0x5bc   : > { %11176 = vst [vmem:[#allocation17_spill] sm:$0xff] %v8981_v13 }
 0x5c1   : > { %7201 = vmatmul.msk.f32.gmra.mxu2 %vm380_vm0, %v8691_v55  ;;  %v8987_v55 = vld [vmem:[#allocation2 + $0x138] sm:$0xff] }
 0x5c2   : > { %7136 = vmatmul.msk.f32.gmra.mxu0 %vm380_vm0, %v8965_v41 }
 0x5c3   : > { %7169 = vmatmul.msk.f32.gmra.mxu1 %vm380_vm0, %v8735_v7  ;;  %7119 = vmatmul.msk.f32.gmra.mxu3 %vm380_vm0, %v8969_v58  ;;  %v8995_v7 = vpop.f32.mrf.mxu0  ;;  %v8997_v26 = vpop.f32.mrf.mxu1 }
 0x5c4   : > { %v8999_v13 = vpop.f32.mrf.mxu2 }
 0x5c5   : > { %11177 = vst [vmem:[#allocation18_spill] sm:$0xff] %v8999_v13 }
 0x5c9   : > { %7202 = vmatmul.msk.f32.gmra.mxu2 %vm380_vm0, %v8731_v11  ;;  %v9005_v11 = vld [vmem:[#allocation2 + $0x140] sm:$0xff] }
 0x5ca   : > { %7137 = vmatmul.msk.f32.gmra.mxu0 %vm380_vm0, %v8983_v29 }
 0x5cb   : > { %7170 = vmatmul.msk.f32.gmra.mxu1 %vm380_vm0, %v8752_v36  ;;  %7120 = vmatmul.msk.f32.gmra.mxu3 %vm380_vm0, %v8987_v55  ;;  %v9013_v36 = vpop.f32.mrf.mxu0  ;;  %v9015_v60 = vpop.f32.mrf.mxu1 }
 0x5cc   : > { %11178 = vst [vmem:[#allocation19_spill] sm:$0xff] %v9013_v36  ;;  %v9017_v13 = vpop.f32.mrf.mxu2 }
 0x5cd   : > { %11179 = vst [vmem:[#allocation20_spill] sm:$0xff] %v9015_v60  ;;  %v9065_v60 = vld [vmem:[#allocation2 + $0x168] sm:$0xff] }
 0x5ce   : > { %11180 = vst [vmem:[#allocation21_spill] sm:$0xff] %v9017_v13 }
 0x5cf   : > { %11190 = vst [vmem:[#allocation31_spill] sm:$0xff] %v9065_v60 }
 0x5d1   : > { %7203 = vmatmul.msk.f32.gmra.mxu2 %vm380_vm0, %v8744_v17  ;;  %v9023_v17 = vld [vmem:[#allocation2 + $0x150] sm:$0xff] }
 0x5d2   : > { %7138 = vmatmul.msk.f32.gmra.mxu0 %vm380_vm0, %v9001_v53 }
 0x5d3   : > { %7171 = vmatmul.msk.f32.gmra.mxu1 %vm380_vm0, %v8765_v12  ;;  %7121 = vmatmul.msk.f32.gmra.mxu3 %vm380_vm0, %v9005_v11  ;;  %v9031_v12 = vpop.f32.mrf.mxu0  ;;  %v9033_v31 = vpop.f32.mrf.mxu1 }
 0x5d4   : > { %11181 = vst [vmem:[#allocation22_spill] sm:$0xff] %v9031_v12  ;;  %v9035_v13 = vpop.f32.mrf.mxu2  ;;  %v9059_v12 = vld [vmem:[#allocation2 + $0xaa] sm:$0xff] }
 0x5d5   : > { %11182 = vst [vmem:[#allocation23_spill] sm:$0xff] %v9033_v31 }
 0x5d6   : > { %11183 = vst [vmem:[#allocation24_spill] sm:$0xff] %v9035_v13  ;;  %v7357_v13 = vld [vmem:[%s11071_s7 + $0x4] sm:$0xf] }
 0x5d7   : > { %7358 = vmatpush.msk.msrb.mxu3 %vm4525_vm8, %v7357_v13  ;;  %11188 = vst [vmem:[#allocation29_spill] sm:$0xff] %v9059_v12 }
 0x5d9   : > { %7204 = vmatmul.msk.f32.gmra.mxu2 %vm380_vm0, %v8763_v63  ;;  %v9041_v63 = vld [vmem:[#allocation2 + $0x158] sm:$0xff] }
 0x5da   : > { %7139 = vmatmul.msk.f32.gmra.mxu0 %vm380_vm0, %v9019_v42 }
 0x5db   : > { %7172 = vmatmul.msk.f32.gmra.mxu1 %vm380_vm0, %v8793_v23  ;;  %7122 = vmatmul.msk.f32.gmra.mxu3 %vm380_vm0, %v9023_v17  ;;  %v9049_v23 = vpop.f32.mrf.mxu0  ;;  %v9051_v31 = vpop.f32.mrf.mxu1 }
 0x5dc   : > { %11185 = vst [vmem:[#allocation26_spill] sm:$0xff] %v9049_v23 }
 0x5dd   : > { %11186 = vst [vmem:[#allocation27_spill] sm:$0xff] %v9051_v31 }
 0x5e1   : > { %7205 = vmatmul.msk.f32.gmra.mxu2 %vm380_vm0, %v8791_v50  ;;  %v9056_v50 = vld [vmem:[#allocation2 + $0xb1] sm:$0xff] }
 0x5e2   : > { %7140 = vmatmul.msk.f32.gmra.mxu0 %vm380_vm0, %v9037_v9  ;;  %11187 = vst [vmem:[#allocation28_spill] sm:$0xff] %v9056_v50  ;;  %v9117_v9 = vld [vmem:[#allocation2 + $0xca] sm:$0xff] }
 0x5e3   : > { %7173 = vmatmul.msk.f32.gmra.mxu1 %vm380_vm0, %v8795_v45  ;;  %7123 = vmatmul.msk.f32.gmra.mxu3 %vm380_vm0, %v9041_v63  ;;  %v9063_v45 = vpop.f32.mrf.mxu2 }
 0x5e4   : > { %11189 = vst [vmem:[#allocation30_spill] sm:$0xff] %v9063_v45  ;;  %v9080_v45 = vld [vmem:[#allocation2 + $0xb2] sm:$0xff] }
 0x5e5   : > { %11194 = vst [vmem:[#allocation35_spill] sm:$0xff] %v9080_v45 }
 0x5e9   : > { %7206 = vmatmul.msk.f32.gmra.mxu2 %vm380_vm0, %v9056_v50  ;;  %v9078_v50 = vld [vmem:[#allocation2 + $0xc1] sm:$0xff] }
 0x5ea   : > { %7141 = vmatmul.msk.f32.gmra.mxu0 %vm380_vm0, %v9059_v12  ;;  %11193 = vst [vmem:[#allocation34_spill] sm:$0xff] %v9078_v50  ;;  %v9084_v12 = vld [vmem:[#allocation2 + $0x170] sm:$0xff] }
 0x5eb   : > { %7174 = vmatmul.msk.f32.gmra.mxu1 %vm380_vm0, %v8814_v0  ;;  %7124 = vmatmul.msk.f32.gmra.mxu3 %vm380_vm0, %v9065_v60  ;;  %11195 = vst [vmem:[#allocation36_spill] sm:$0xff] %v9084_v12  ;;  %v9092_v0 = vpop.f32.mrf.mxu2  ;;  %v9096_v60 = vld [vmem:[#allocation2 + $0xc9] sm:$0xff] }
 0x5ec   : > { %11196 = vst [vmem:[#allocation37_spill] sm:$0xff] %v9092_v0  ;;  %v2204_v0 = vadd.f32 %v8788_v25, %v8786_v22 }
 0x5ed   : > { %11198 = vst [vmem:[#allocation39_spill] sm:$0xff] %v9096_v60 }
 0x5ee   : > { %v1746_v31 = vpop.permute.xlu1 %1745 }
 0x5ef   : > { %v9073_v13 = vpop.f32.mrf.mxu0  ;;  %1812 = vst.msk [vmem:[#allocation2 + $0x181] sm:$0xff] %vm1781_vm6, %v1746_v31 }
 0x5f0   : > { %11191 = vst [vmem:[#allocation32_spill] sm:$0xff] %v9073_v13  ;;  %v9075_v23 = vpop.f32.mrf.mxu1 }
 0x5f1   : > { %11192 = vst [vmem:[#allocation33_spill] sm:$0xff] %v9075_v23  ;;  %7207 = vmatmul.msk.f32.gmra.mxu2 %vm380_vm0, %v9078_v50  ;;  %v9098_v50 = vld [vmem:[#allocation2 + $0xc2] sm:$0xff] }
 0x5f2   : > { %7142 = vmatmul.msk.f32.gmra.mxu0 %vm380_vm0, %v9080_v45  ;;  %11199 = vst [vmem:[#allocation40_spill] sm:$0xff] %v9098_v50 }
 0x5f3   : > { %7175 = vmatmul.msk.f32.gmra.mxu1 %vm380_vm0, %v8832_v10  ;;  %7125 = vmatmul.msk.f32.gmra.mxu3 %vm380_vm0, %v9084_v12 }
 0x5f6   : > { %v9094_v31 = vpop.f32.mrf.mxu3 }
 0x5f7   : > { %11197 = vst [vmem:[#allocation38_spill] sm:$0xff] %v9094_v31  ;;  %v2446_v23 = vpop.f32.mrf.mxu0 }
 0x5f8   : > { %v2721_v13 = vpop.f32.mrf.mxu1  ;;  %v2542_v12 = vadd.f32 %v2446_v23, %v2204_v0 }
 0x5f9   : > { %7208 = vmatmul.msk.f32.gmra.mxu2 %vm380_vm0, %v9096_v60 }
 0x5fa   : > { %7143 = vmatmul.msk.f32.gmra.mxu0 %vm380_vm0, %v9098_v50  ;;  %v9115_v50 = vld [vmem:[#allocation2 + $0xd9] sm:$0xff]  ;;  %v2817_v22 = vadd.f32 %v2721_v13, %v2542_v12 }
 0x5fb   : > { %7176 = vmatmul.msk.f32.gmra.mxu1 %vm380_vm0, %v8847_v8  ;;  %7226 = vmatmul.msk.f32.vlgmr.msra.gmra.mxu3 %vm380_vm0, %v8842_v18  ;;  %11202 = vst [vmem:[#allocation43_spill] sm:$0xff] %v9115_v50  ;;  %v2207_v18 = vadd.f32 %v8807_v44, %v8805_v39 }
 0x5fc   : > { %v9108_v10 = vpop.f32.mrf.mxu2 }
 0x5fd   : > { %11200 = vst [vmem:[#allocation41_spill] sm:$0xff] %v9108_v10 }
 0x5fe   : > { %v9112_v31 = vpop.f32.mrf.mxu3  ;;  %v1748_v45 = vpop.permute.xlu0 %1747 }
 0x5ff   : > { %11201 = vst [vmem:[#allocation42_spill] sm:$0xff] %v9112_v31  ;;  %v2449_v36 = vpop.f32.mrf.mxu0  ;;  %v9135_v31 = vld [vmem:[#allocation2 + $0xda] sm:$0xff] }
 0x600   : > { %v2724_v60 = vpop.f32.mrf.mxu1  ;;  %1813 = vst.msk [vmem:[#allocation2 + $0x189] sm:$0xff] %vm1781_vm6, %v1748_v45  ;;  %v2543_v45 = vadd.f32 %v2449_v36, %v2207_v18 }
 0x601   : > { %7209 = vmatmul.msk.f32.gmra.mxu2 %vm380_vm0, %v9115_v50  ;;  %v9133_v50 = vld [vmem:[#allocation2 + $0xe1] sm:$0xff] }
 0x602   : > { %7144 = vmatmul.msk.f32.gmra.mxu0 %vm380_vm0, %v9117_v9  ;;  %11203 = vst [vmem:[#allocation44_spill] sm:$0xff] %v9133_v50  ;;  %v2818_v39 = vadd.f32 %v2724_v60, %v2543_v45 }
 0x603   : > { %7177 = vmatmul.msk.f32.gmra.mxu1 %vm380_vm0, %v8867_v35  ;;  %7227 = vmatmul.msk.f32.gmra.mxu3 %vm380_vm0, %v8863_v43  ;;  %v2210_v43 = vadd.f32 %v8828_v47, %v8826_v57  ;;  %v2213_v47 = vadd.f32 %v8855_v15, %v8853_v4  ;;  %v2216_v15 = vadd.f32 %v8877_v6, %v8875_v3 }
 0x604   : > { %v2996_v25 = vpop.f32.mrf.mxu2  ;;  %v2219_v6 = vadd.f32 %v8895_v38, %v8893_v32 }
 0x605   : > { %v9129_v8 = vadd.f32 %v2996_v25, %v2817_v22  ;;  %v9151_v25 = vld [vmem:[#allocation2 + $0xe2] sm:$0xff] }
 0x606   : > { %v9131_v23 = vpop.f32.mrf.mxu3 }
 0x607   : > { %v2452_v0 = vpop.f32.mrf.mxu0 }
 0x608   : > { %v2727_v10 = vpop.f32.mrf.mxu1  ;;  %v2544_v12 = vadd.f32 %v2452_v0, %v2210_v43 }
 0x609   : > { %7210 = vmatmul.msk.f32.gmra.mxu2 %vm380_vm0, %v9133_v50  ;;  %v2604_v50 = vld [vmem:[#allocation2 + $0x180] sm:$0xff] }
 0x60a   : > { %7145 = vmatmul.msk.f32.gmra.mxu0 %vm380_vm0, %v9135_v31  ;;  %v2819_v60 = vadd.f32 %v2727_v10, %v2544_v12 }
 0x60b   : > { %7178 = vmatmul.msk.f32.gmra.mxu1 %vm380_vm0, %v8885_v49  ;;  %7228 = vmatmul.msk.f32.gmra.mxu3 %vm380_vm0, %v8881_v16 }
 0x60c   : > { %v2999_v44 = vpop.f32.mrf.mxu2 }
 0x60d   : > { %v9147_v35 = vadd.f32 %v2999_v44, %v2818_v39  ;;  %v9167_v39 = vld [vmem:[#allocation2 + $0xf2] sm:$0xff] }
 0x60e   : > { %v9149_v36 = vpop.f32.mrf.mxu3 }
 0x60f   : > { %v2455_v13 = vpop.f32.mrf.mxu0 }
 0x610   : > { %v2730_v22 = vpop.f32.mrf.mxu1  ;;  %v2545_v45 = vadd.f32 %v2455_v13, %v2213_v47  ;;  %v9183_v13 = vld [vmem:[#allocation2 + $0xfa] sm:$0xff] }
 0x611   : > { %7211 = vmatmul.msk.f32.gmra.mxu2 %vm380_vm0, %v8504_v30 }
 0x612   : > { %7146 = vmatmul.msk.f32.gmra.mxu0 %vm380_vm0, %v9151_v25 }
 0x613   : > { %7179 = vmatmul.msk.f32.gmra.mxu1 %vm380_vm0, %v8903_v19  ;;  %7229 = vmatmul.msk.f32.gmra.mxu3 %vm380_vm0, %v8899_v40  ;;  %v2820_v19 = vadd.f32 %v2730_v22, %v2545_v45  ;;  %v9199_v45 = vld [vmem:[#allocation2 + $0x111] sm:$0xff] }
 0x614   : > { %v3002_v57 = vpop.f32.mrf.mxu2  ;;  %11204 = vst [vmem:[#allocation45_spill] sm:$0xff] %v9199_v45 }
 0x615   : > { %v9163_v49 = vadd.f32 %v3002_v57, %v2819_v60 }
 0x616   : > { %v9165_v18 = vpop.f32.mrf.mxu3 }
 0x617   : > { %v2458_v30 = vpop.f32.mrf.mxu0 }
 0x618   : > { %v2733_v0 = vpop.f32.mrf.mxu1  ;;  %v2546_v43 = vadd.f32 %v2458_v30, %v2216_v15  ;;  %v9201_v30 = vld [vmem:[#allocation2 + $0x10a] sm:$0xff] }
 0x619   : > { %7212 = vmatmul.msk.f32.gmra.mxu2 %vm380_vm0, %v8519_v21 }
 0x61a   : > { %7147 = vmatmul.msk.f32.gmra.mxu0 %vm380_vm0, %v9167_v39 }
 0x61b   : > { %7180 = vmatmul.msk.f32.gmra.mxu1 %vm380_vm0, %v8921_v28  ;;  %7230 = vmatmul.msk.f32.gmra.mxu3 %vm380_vm0, %v8915_v1  ;;  %v2821_v28 = vadd.f32 %v2733_v0, %v2546_v43 }
 0x61c   : > { %v3005_v4 = vpop.f32.mrf.mxu2 }
 0x61d   : > { %v9179_v10 = vadd.f32 %v3005_v4, %v2820_v19 }
 0x61e   : > { %v9181_v44 = vpop.f32.mrf.mxu3 }
 0x61f   : > { %v2461_v21 = vpop.f32.mrf.mxu0 }
 0x620   : > { %v2736_v12 = vpop.f32.mrf.mxu1  ;;  %v2547_v57 = vadd.f32 %v2461_v21, %v2219_v6  ;;  %v9217_v21 = vld [vmem:[#allocation2 + $0x112] sm:$0xff] }
 0x621   : > { %7213 = vmatmul.msk.f32.gmra.mxu2 %vm380_vm0, %v8533_v52 }
 0x622   : > { %7148 = vmatmul.msk.f32.gmra.mxu0 %vm380_vm0, %v9183_v13  ;;  %v2822_v32 = vadd.f32 %v2736_v12, %v2547_v57  ;;  %v9233_v57 = vld [vmem:[#allocation2 + $0x122] sm:$0xff] }
 0x623   : > { %7181 = vmatmul.msk.f32.gmra.mxu1 %vm380_vm0, %v8937_v5  ;;  %7231 = vmatmul.msk.f32.gmra.mxu3 %vm380_vm0, %v8933_v46  ;;  %v2222_v5 = vadd.f32 %v8913_v56, %v8911_v24  ;;  %v2225_v56 = vadd.f32 %v8931_v48, %v8929_v54  ;;  %v2228_v48 = vadd.f32 %v8949_v27, %v8947_v61 }
 0x624   : > { %v3008_v3 = vpop.f32.mrf.mxu2  ;;  %v2231_v61 = vadd.f32 %v8977_v34, %v8975_v20  ;;  %v2234_v34 = vadd.f32 %v8997_v26, %v8995_v7  ;;  %v11205_v26 = vld [vmem:[#allocation25_spill] sm:$0xff] }
 0x625   : > { %v9195_v22 = vadd.f32 %v3008_v3, %v2821_v28 }
 0x626   : > { %v9197_v60 = vpop.f32.mrf.mxu3 }
 0x627   : > { %v2464_v52 = vpop.f32.mrf.mxu0 }
 0x628   : > { %v2739_v47 = vpop.f32.mrf.mxu1  ;;  %v2548_v4 = vadd.f32 %v2464_v52, %v2222_v5  ;;  %v9249_v5 = vld [vmem:[#allocation2 + $0x12a] sm:$0xff] }
 0x629   : > { %7214 = vmatmul.msk.f32.gmra.mxu2 %vm380_vm0, %v9199_v45  ;;  %v9329_v45 = vld [vmem:[#allocation2 + $0x16a] sm:$0xff] }
 0x62a   : > { %7149 = vmatmul.msk.f32.gmra.mxu0 %vm380_vm0, %v9201_v30 }
 0x62b   : > { %7182 = vmatmul.msk.f32.gmra.mxu1 %vm380_vm0, %v8955_v62  ;;  %7232 = vmatmul.msk.f32.gmra.mxu3 %vm380_vm0, %v8951_v14  ;;  %v2823_v62 = vadd.f32 %v2739_v47, %v2548_v4 }
 0x62c   : > { %v3011_v38 = vpop.f32.mrf.mxu2 }
 0x62d   : > { %v9213_v0 = vadd.f32 %v3011_v38, %v2822_v32 }
 0x62e   : > { %v9215_v19 = vpop.f32.mrf.mxu3 }
 0x62f   : > { %v2467_v15 = vpop.f32.mrf.mxu0 }
 0x630   : > { %v2742_v43 = vpop.f32.mrf.mxu1  ;;  %v2549_v3 = vadd.f32 %v2467_v15, %v2225_v56 }
 0x631   : > { %7215 = vmatmul.msk.f32.gmra.mxu2 %vm380_vm0, %v8625_v59 }
 0x632   : > { %7150 = vmatmul.msk.f32.gmra.mxu0 %vm380_vm0, %v9217_v21 }
 0x633   : > { %7183 = vmatmul.msk.f32.gmra.mxu1 %vm380_vm0, %v8969_v58  ;;  %7233 = vmatmul.msk.f32.gmra.mxu3 %vm380_vm0, %v8965_v41  ;;  %v2824_v58 = vadd.f32 %v2742_v43, %v2549_v3 }
 0x634   : > { %v3014_v24 = vpop.f32.mrf.mxu2 }
 0x635   : > { %v9229_v12 = vadd.f32 %v3014_v24, %v2823_v62  ;;  %v9265_v24 = vld [vmem:[#allocation2 + $0x13a] sm:$0xff] }
 0x636   : > { %v9231_v28 = vpop.f32.mrf.mxu3 }
 0x637   : > { %v2470_v59 = vpop.f32.mrf.mxu0 }
 0x638   : > { %v2745_v6 = vpop.f32.mrf.mxu1  ;;  %v2550_v32 = vadd.f32 %v2470_v59, %v2228_v48  ;;  %v11207_v48 = vld [vmem:[#allocation20_spill] sm:$0xff] }
 0x639   : > { %7216 = vmatmul.msk.f32.gmra.mxu2 %vm380_vm0, %v8633_v51 }
 0x63a   : > { %7151 = vmatmul.msk.f32.gmra.mxu0 %vm380_vm0, %v9233_v57 }
 0x63b   : > { %7184 = vmatmul.msk.f32.gmra.mxu1 %vm380_vm0, %v8987_v55  ;;  %7234 = vmatmul.msk.f32.gmra.mxu3 %vm380_vm0, %v8983_v29  ;;  %v2825_v55 = vadd.f32 %v2745_v6, %v2550_v32 }
 0x63c   : > { %v3017_v54 = vpop.f32.mrf.mxu2 }
 0x63d   : > { %v9245_v52 = vadd.f32 %v3017_v54, %v2824_v58  ;;  %v9281_v58 = vld [vmem:[#allocation2 + $0x142] sm:$0xff]  ;;  %v11206_v54 = vld [vmem:[#allocation19_spill] sm:$0xff] }
 0x63e   : > { %v9247_v47 = vpop.f32.mrf.mxu3  ;;  %v2237_v32 = vadd.f32 %v11207_v48, %v11206_v54 }
 0x63f   : > { %v2473_v51 = vpop.f32.mrf.mxu0 }
 0x640   : > { %v2748_v38 = vpop.f32.mrf.mxu1  ;;  %v2551_v43 = vadd.f32 %v2473_v51, %v2231_v61  ;;  %v9297_v61 = vld [vmem:[#allocation2 + $0x152] sm:$0xff] }
 0x641   : > { %7217 = vmatmul.msk.f32.gmra.mxu2 %vm380_vm0, %v8717_v37 }
 0x642   : > { %7152 = vmatmul.msk.f32.gmra.mxu0 %vm380_vm0, %v9249_v5 }
 0x643   : > { %7185 = vmatmul.msk.f32.gmra.mxu1 %vm380_vm0, %v9005_v11  ;;  %7235 = vmatmul.msk.f32.gmra.mxu3 %vm380_vm0, %v9001_v53  ;;  %v2826_v11 = vadd.f32 %v2748_v38, %v2551_v43  ;;  %v11209_v43 = vld [vmem:[#allocation4_spill] sm:$0xff] }
 0x644   : > { %v3020_v27 = vpop.f32.mrf.mxu2 }
 0x645   : > { %v9261_v4 = vadd.f32 %v3020_v27, %v2825_v55 }
 0x646   : > { %v9263_v15 = vpop.f32.mrf.mxu3 }
 0x647   : > { %v2476_v37 = vpop.f32.mrf.mxu0 }
 0x648   : > { %v2751_v62 = vpop.f32.mrf.mxu1  ;;  %v2552_v59 = vadd.f32 %v2476_v37, %v2234_v34  ;;  %v11213_v34 = vld [vmem:[#allocation23_spill] sm:$0xff] }
 0x649   : > { %7218 = vmatmul.msk.f32.gmra.mxu2 %vm380_vm0, %v8725_v2 }
 0x64a   : > { %7153 = vmatmul.msk.f32.gmra.mxu0 %vm380_vm0, %v9265_v24 }
 0x64b   : > { %7186 = vmatmul.msk.f32.gmra.mxu1 %vm380_vm0, %v9023_v17  ;;  %7236 = vmatmul.msk.f32.gmra.mxu3 %vm380_vm0, %v9019_v42  ;;  %v2827_v17 = vadd.f32 %v2751_v62, %v2552_v59  ;;  %v11211_v62 = vld [vmem:[#allocation29_spill] sm:$0xff] }
 0x64c   : > { %v3023_v20 = vpop.f32.mrf.mxu2 }
 0x64d   : > { %v9277_v56 = vadd.f32 %v3023_v20, %v2826_v11  ;;  %v11212_v20 = vld [vmem:[#allocation22_spill] sm:$0xff] }
 0x64e   : > { %v9279_v3 = vpop.f32.mrf.mxu3  ;;  %v2240_v59 = vadd.f32 %v11213_v34, %v11212_v20  ;;  %11224 = vst [vmem:[#allocation22_spill] sm:$0xff] %v9329_v45 }
 0x64f   : > { %v2479_v2 = vpop.f32.mrf.mxu0 }
 0x650   : > { %v2754_v6 = vpop.f32.mrf.mxu1  ;;  %v2553_v55 = vadd.f32 %v2479_v2, %v2237_v32  ;;  %v9313_v32 = vld [vmem:[#allocation2 + $0x15a] sm:$0xff] }
 0x651   : > { %7219 = vmatmul.msk.f32.gmra.mxu2 %vm380_vm0, %v8733_v33  ;;  %11216 = vst [vmem:[#allocation4_spill] sm:$0xff] %v9313_v32 }
 0x652   : > { %7154 = vmatmul.msk.f32.gmra.mxu0 %vm380_vm0, %v9281_v58  ;;  %v2828_v37 = vadd.f32 %v2754_v6, %v2553_v55  ;;  %v11218_v6 = vld [vmem:[#allocation36_spill] sm:$0xff] }
 0x653   : > { %7187 = vmatmul.msk.f32.gmra.mxu1 %vm380_vm0, %v9041_v63  ;;  %7237 = vmatmul.msk.f32.gmra.mxu3 %vm380_vm0, %v11205_v26  ;;  %v11210_v63 = vld [vmem:[#allocation31_spill] sm:$0xff] }
 0x654   : > { %v3026_v7 = vpop.f32.mrf.mxu2 }
 0x655   : > { %v9293_v51 = vadd.f32 %v3026_v7, %v2827_v17 }
 0x656   : > { %v9295_v38 = vpop.f32.mrf.mxu3 }
 0x657   : > { %11208 = vst [vmem:[#allocation25_spill] sm:$0xff] %v9293_v51  ;;  %v2482_v33 = vpop.f32.mrf.mxu0 }
 0x658   : > { %v2757_v27 = vpop.f32.mrf.mxu1  ;;  %v2554_v7 = vadd.f32 %v2482_v33, %v2240_v59  ;;  %v11221_v33 = vld [vmem:[#allocation27_spill] sm:$0xff] }
 0x659   : > { %7220 = vmatmul.msk.f32.gmra.mxu2 %vm380_vm0, %v11209_v43  ;;  %v11217_v43 = vld [vmem:[#allocation5_spill] sm:$0xff] }
 0x65a   : > { %7155 = vmatmul.msk.f32.gmra.mxu0 %vm380_vm0, %v9297_v61  ;;  %v2829_v55 = vadd.f32 %v2757_v27, %v2554_v7  ;;  %v11226_v7 = vld [vmem:[#allocation40_spill] sm:$0xff] }
 0x65b   : > { %7188 = vmatmul.msk.f32.gmra.mxu1 %vm380_vm0, %v11210_v63  ;;  %7238 = vmatmul.msk.f32.gmra.mxu3 %vm380_vm0, %v11211_v62  ;;  %v11219_v63 = vld [vmem:[#allocation35_spill] sm:$0xff] }
 0x65c   : > { %v3029_v11 = vpop.f32.mrf.mxu2 }
 0x65d   : > { %v9309_v2 = vadd.f32 %v3029_v11, %v2828_v37  ;;  %v11220_v11 = vld [vmem:[#allocation26_spill] sm:$0xff] }
 0x65e   : > { %v9311_v17 = vpop.f32.mrf.mxu3  ;;  %v2243_v20 = vadd.f32 %v11221_v33, %v11220_v11  ;;  %v11229_v33 = vld [vmem:[#allocation6_spill] sm:$0xff] }
 0x65f   : > { %11214 = vst [vmem:[#allocation19_spill] sm:$0xff] %v9309_v2  ;;  %v2485_v54 = vpop.f32.mrf.mxu0 }
 0x660   : > { %11215 = vst [vmem:[#allocation20_spill] sm:$0xff] %v9311_v17  ;;  %v2760_v48 = vpop.f32.mrf.mxu1  ;;  %v2555_v2 = vadd.f32 %v2485_v54, %v2243_v20  ;;  %v11225_v17 = vld [vmem:[#allocation8_spill] sm:$0xff]  ;;  %v11228_v54 = vld [vmem:[#allocation33_spill] sm:$0xff]  ;;  %v11230_v20 = vld [vmem:[#allocation38_spill] sm:$0xff] }
 0x661   : > { %7221 = vmatmul.msk.f32.gmra.mxu2 %vm380_vm0, %v11217_v43 }
 0x662   : > { %7156 = vmatmul.msk.f32.gmra.mxu0 %vm380_vm0, %v9313_v32  ;;  %v2830_v27 = vadd.f32 %v2760_v48, %v2555_v2  ;;  %v9346_v2 = vld [vmem:[#allocation2 + $0x172] sm:$0xff]  ;;  %v2605_v48 = vld [vmem:[#allocation2 + $0x188] sm:$0xff] }
 0x663   : > { %7189 = vmatmul.msk.f32.gmra.mxu1 %vm380_vm0, %v11218_v6  ;;  %7239 = vmatmul.msk.f32.gmra.mxu3 %vm380_vm0, %v11219_v63 }
 0x664   : > { %v3032_v37 = vpop.f32.mrf.mxu2 }
 0x665   : > { %v9325_v34 = vadd.f32 %v3032_v37, %v2829_v55  ;;  %v11227_v55 = vld [vmem:[#allocation32_spill] sm:$0xff] }
 0x666   : > { %v9327_v59 = vpop.f32.mrf.mxu3  ;;  %v2246_v37 = vadd.f32 %v11228_v54, %v11227_v55 }
 0x667   : > { %11222 = vst [vmem:[#allocation31_spill] sm:$0xff] %v9325_v34  ;;  %v2488_v43 = vpop.f32.mrf.mxu0  ;;  %v2249_v34 = vadd.f32 %v11230_v20, %v11229_v33  ;;  %v3400_v20 = vld [vmem:[#allocation2 + $0x30] sm:$0xff] }
 0x668   : > { %11223 = vst [vmem:[#allocation29_spill] sm:$0xff] %v9327_v59  ;;  %v2763_v51 = vpop.f32.mrf.mxu1 }
 0x669   : > { %7222 = vmatmul.msk.f32.gmra.mxu2 %vm380_vm0, %v11225_v17  ;;  %v2556_v17 = vadd.f32 %v2488_v43, %v2246_v37 }
 0x66a   : > { %7157 = vmatmul.msk.f32.gmra.mxu0 %vm380_vm0, %v9329_v45 }
 0x66b   : > { %7190 = vmatmul.msk.f32.gmra.mxu1 %vm380_vm0, %v2604_v50  ;;  %7240 = vmatmul.msk.f32.gmra.mxu3 %vm380_vm0, %v11226_v7  ;;  %v2879_v50 = vld [vmem:[#allocation2 + $0x181] sm:$0xff] }
 0x66c   : > { %v3035_v6 = vpop.f32.mrf.mxu2 }
 0x66d   : > { %v9340_v11 = vadd.f32 %v3035_v6, %v2830_v27  ;;  %v2831_v27 = vadd.f32 %v2763_v51, %v2556_v17 }
 0x66e   : > { %v9344_v59 = vpop.f32.mrf.mxu3 }
 0x66f   : > { %v2491_v63 = vpop.f32.mrf.mxu0 }
 0x670   : > { %v2766_v45 = vpop.f32.mrf.mxu1  ;;  %v2557_v32 = vadd.f32 %v2491_v63, %v2249_v34  ;;  %v11231_v63 = vld [vmem:[#allocation7_spill] sm:$0xff]  ;;  %v11232_v34 = vld [vmem:[#allocation42_spill] sm:$0xff] }
 0x671   : > { %7223 = vmatmul.msk.f32.gmra.mxu2 %vm380_vm0, %v2879_v50  ;;  %v2252_v55 = vadd.f32 %v11232_v34, %v11231_v63  ;;  %v3675_v50 = vld [vmem:[#allocation2 + $0x31] sm:$0xff] }
 0x672   : > { %v2832_v7 = vadd.f32 %v2766_v45, %v2557_v32  ;;  %7158 = vmatmul.msk.f32.gmra.mxu0 %vm380_vm0, %v9346_v2  ;;  %v2880_v32 = vld [vmem:[#allocation2 + $0x189] sm:$0xff] }
 0x673   : > { %7191 = vmatmul.msk.f32.gmra.mxu1 %vm380_vm0, %v2605_v48  ;;  %7241 = vmatmul.msk.f32.gmra.mxu3 %vm380_vm0, %v9117_v9 }
 0x674   : > { %v3038_v43 = vpop.f32.mrf.mxu2 }
 0x675   : > { %v9354_v6 = vadd.f32 %v3038_v43, %v2831_v27  ;;  %v11233_v27 = vld [vmem:[#allocation9_spill] sm:$0xff] }
 0x676   : > { %v9358_v54 = vpop.f32.mrf.mxu3  ;;  %v2255_v43 = vadd.f32 %v9131_v23, %v11233_v27 }
 0x677   : > { %v2494_v37 = vpop.f32.mrf.mxu0 }
 0x678   : > { %v2769_v33 = vpop.f32.mrf.mxu1  ;;  %v2558_v45 = vadd.f32 %v2494_v37, %v2252_v55 }
 0x679   : > { %7224 = vmatmul.msk.f32.gmra.mxu2 %vm380_vm0, %v2880_v32  ;;  %v3676_v32 = vld [vmem:[#allocation2 + $0x39] sm:$0xff] }
 0x67a   : > { %v2833_v51 = vadd.f32 %v2769_v33, %v2558_v45  ;;  %7259 = vmatmul.msk.f32.vlgmr.msrb.gmra.mxu0 %vm380_vm0, %v3400_v20  ;;  %v3401_v45 = vld [vmem:[#allocation2 + $0x38] sm:$0xff] }
 0x67b   : > { %7292 = vmatmul.msk.f32.vlgmr.msra.gmra.mxu1 %vm380_vm0, %v3675_v50  ;;  %7242 = vmatmul.msk.f32.gmra.mxu3 %vm380_vm0, %v9135_v31 }
 0x67c   : > { %v3041_v17 = vpop.f32.mrf.mxu2 }
 0x67d   : > { %v9365_v48 = vadd.f32 %v3041_v17, %v2832_v7 }
 0x67e   : > { %v3271_v63 = vpop.f32.mrf.mxu3 }
 0x67f   : > { %v9370_v34 = vadd.f32 %v3271_v63, %v9129_v8  ;;  %v2497_v55 = vpop.f32.mrf.mxu0  ;;  %v11234_v8 = vld [vmem:[#allocation10_spill] sm:$0xff] }
 0x680   : > { %v2772_v37 = vpop.f32.mrf.mxu1  ;;  %v2559_v33 = vadd.f32 %v2497_v55, %v2255_v43  ;;  %v2258_v50 = vadd.f32 %v9149_v36, %v11234_v8  ;;  %v3402_v55 = vld [vmem:[#allocation2 + $0x48] sm:$0xff] }
 0x681   : > { %7325 = vmatmul.msk.f32.vlgmr.msrb.gmra.mxu2 %vm380_vm0, %v8881_v16 }
 0x682   : > { %v2834_v20 = vadd.f32 %v2772_v37, %v2559_v33  ;;  %7260 = vmatmul.msk.f32.gmra.mxu0 %vm380_vm0, %v3401_v45  ;;  %v3677_v37 = vld [vmem:[#allocation2 + $0x49] sm:$0xff] }
 0x683   : > { %7293 = vmatmul.msk.f32.gmra.mxu1 %vm380_vm0, %v3676_v32  ;;  %7243 = vmatmul.msk.f32.gmra.mxu3 %vm380_vm0, %v9151_v25 }
 0x684   : > { %v3044_v23 = vpop.f32.mrf.mxu2 }
 0x685   : > { %v9378_v7 = vadd.f32 %v3044_v23, %v2833_v51 }
 0x686   : > { %v3274_v17 = vpop.f32.mrf.mxu3 }
 0x687   : > { %v9383_v27 = vadd.f32 %v3274_v17, %v9147_v35  ;;  %v2500_v43 = vpop.f32.mrf.mxu0  ;;  %v11235_v35 = vld [vmem:[#allocation11_spill] sm:$0xff]  ;;  %v3403_v17 = vld [vmem:[#allocation2 + $0x50] sm:$0xff] }
 0x688   : > { %v2775_v16 = vpop.f32.mrf.mxu1  ;;  %v2560_v63 = vadd.f32 %v2500_v43, %v2258_v50  ;;  %v2261_v45 = vadd.f32 %v9165_v18, %v11235_v35  ;;  %v3678_v43 = vld [vmem:[#allocation2 + $0x51] sm:$0xff] }
 0x689   : > { %7326 = vmatmul.msk.f32.gmra.mxu2 %vm380_vm0, %v8899_v40 }
 0x68a   : > { %v2835_v33 = vadd.f32 %v2775_v16, %v2560_v63  ;;  %7261 = vmatmul.msk.f32.gmra.mxu0 %vm380_vm0, %v3402_v55 }
 0x68b   : > { %7294 = vmatmul.msk.f32.gmra.mxu1 %vm380_vm0, %v3677_v37  ;;  %7244 = vmatmul.msk.f32.gmra.mxu3 %vm380_vm0, %v9167_v39 }
 0x68c   : > { %v3047_v36 = vpop.f32.mrf.mxu2 }
 0x68d   : > { %v9391_v51 = vadd.f32 %v3047_v36, %v2834_v20 }
 0x68e   : > { %v3277_v32 = vpop.f32.mrf.mxu3 }
 0x68f   : > { %v9396_v23 = vadd.f32 %v3277_v32, %v9163_v49  ;;  %v2503_v8 = vpop.f32.mrf.mxu0  ;;  %v11236_v49 = vld [vmem:[#allocation12_spill] sm:$0xff] }
 0x690   : > { %v2778_v40 = vpop.f32.mrf.mxu1  ;;  %v2561_v50 = vadd.f32 %v2503_v8, %v2261_v45  ;;  %v2264_v63 = vadd.f32 %v9181_v44, %v11236_v49  ;;  %v3404_v45 = vld [vmem:[#allocation2 + $0x60] sm:$0xff]  ;;  %v3405_v49 = vld [vmem:[#allocation2 + $0x68] sm:$0xff] }
 0x691   : > { %7327 = vmatmul.msk.f32.gmra.mxu2 %vm380_vm0, %v8915_v1  ;;  %v3679_v32 = vld [vmem:[#allocation2 + $0x61] sm:$0xff] }
 0x692   : > { %v2836_v16 = vadd.f32 %v2778_v40, %v2561_v50  ;;  %7262 = vmatmul.msk.f32.gmra.mxu0 %vm380_vm0, %v3403_v17 }
 0x693   : > { %7295 = vmatmul.msk.f32.gmra.mxu1 %vm380_vm0, %v3678_v43  ;;  %7245 = vmatmul.msk.f32.gmra.mxu3 %vm380_vm0, %v9183_v13 }
 0x694   : > { %v3050_v18 = vpop.f32.mrf.mxu2 }
 0x695   : > { %v9404_v20 = vadd.f32 %v3050_v18, %v2835_v33 }
 0x696   : > { %v3280_v55 = vpop.f32.mrf.mxu3 }
 0x697   : > { %v9409_v37 = vadd.f32 %v3280_v55, %v9179_v10  ;;  %v2506_v36 = vpop.f32.mrf.mxu0  ;;  %v11237_v10 = vld [vmem:[#allocation13_spill] sm:$0xff] }
 0x698   : > { %v2781_v1 = vpop.f32.mrf.mxu1  ;;  %v2562_v35 = vadd.f32 %v2506_v36, %v2264_v63  ;;  %v2267_v40 = vadd.f32 %v9197_v60, %v11237_v10  ;;  %v3680_v63 = vld [vmem:[#allocation2 + $0x69] sm:$0xff]  ;;  %v3681_v10 = vld [vmem:[#allocation2 + $0x79] sm:$0xff] }
 0x699   : > { %7328 = vmatmul.msk.f32.gmra.mxu2 %vm380_vm0, %v8933_v46 }
 0x69a   : > { %v2837_v8 = vadd.f32 %v2781_v1, %v2562_v35  ;;  %7263 = vmatmul.msk.f32.gmra.mxu0 %vm380_vm0, %v3404_v45 }
 0x69b   : > { %7296 = vmatmul.msk.f32.gmra.mxu1 %vm380_vm0, %v3679_v32  ;;  %7246 = vmatmul.msk.f32.gmra.mxu3 %vm380_vm0, %v9201_v30 }
 0x69c   : > { %v3053_v44 = vpop.f32.mrf.mxu2 }
 0x69d   : > { %v9417_v33 = vadd.f32 %v3053_v44, %v2836_v16  ;;  %v3406_v44 = vld [vmem:[#allocation2 + $0x78] sm:$0xff] }
 0x69e   : > { %v3283_v50 = vpop.f32.mrf.mxu3 }
 0x69f   : > { %v9422_v17 = vadd.f32 %v3283_v50, %v9195_v22  ;;  %v2509_v43 = vpop.f32.mrf.mxu0  ;;  %v11238_v22 = vld [vmem:[#allocation14_spill] sm:$0xff] }
 0x6a0   : > { %v2784_v46 = vpop.f32.mrf.mxu1  ;;  %v2563_v18 = vadd.f32 %v2509_v43, %v2267_v40  ;;  %v2270_v36 = vadd.f32 %v9215_v19, %v11238_v22 }
 0x6a1   : > { %7329 = vmatmul.msk.f32.gmra.mxu2 %vm380_vm0, %v8951_v14 }
 0x6a2   : > { %v2838_v55 = vadd.f32 %v2784_v46, %v2563_v18  ;;  %7264 = vmatmul.msk.f32.gmra.mxu0 %vm380_vm0, %v3405_v49 }
 0x6a3   : > { %7297 = vmatmul.msk.f32.gmra.mxu1 %vm380_vm0, %v3680_v63  ;;  %7247 = vmatmul.msk.f32.gmra.mxu3 %vm380_vm0, %v9217_v21  ;;  %v3407_v63 = vld [vmem:[#allocation2 + $0x80] sm:$0xff] }
 0x6a4   : > { %v3056_v60 = vpop.f32.mrf.mxu2 }
 0x6a5   : > { %v9430_v16 = vadd.f32 %v3056_v60, %v2837_v8  ;;  %v3682_v60 = vld [vmem:[#allocation2 + $0x81] sm:$0xff] }
 0x6a6   : > { %v3286_v1 = vpop.f32.mrf.mxu3 }
 0x6a7   : > { %v9435_v35 = vadd.f32 %v3286_v1, %v9213_v0  ;;  %v2512_v45 = vpop.f32.mrf.mxu0  ;;  %v11239_v0 = vld [vmem:[#allocation15_spill] sm:$0xff] }
 0x6a8   : > { %v2787_v14 = vpop.f32.mrf.mxu1  ;;  %v2564_v32 = vadd.f32 %v2512_v45, %v2270_v36  ;;  %v2273_v50 = vadd.f32 %v9231_v28, %v11239_v0 }
 0x6a9   : > { %7330 = vmatmul.msk.f32.gmra.mxu2 %vm380_vm0, %v8965_v41 }
 0x6aa   : > { %v2839_v40 = vadd.f32 %v2787_v14, %v2564_v32  ;;  %7265 = vmatmul.msk.f32.gmra.mxu0 %vm380_vm0, %v3406_v44  ;;  %v3408_v44 = vld [vmem:[#allocation2 + $0x90] sm:$0xff] }
 0x6ab   : > { %7298 = vmatmul.msk.f32.gmra.mxu1 %vm380_vm0, %v3681_v10  ;;  %7248 = vmatmul.msk.f32.gmra.mxu3 %vm380_vm0, %v9233_v57  ;;  %v3683_v10 = vld [vmem:[#allocation2 + $0x91] sm:$0xff] }
 0x6ac   : > { %v3059_v19 = vpop.f32.mrf.mxu2 }
 0x6ad   : > { %v9443_v8 = vadd.f32 %v3059_v19, %v2838_v55 }
 0x6ae   : > { %v3289_v43 = vpop.f32.mrf.mxu3 }
 0x6af   : > { %v9448_v46 = vadd.f32 %v3289_v43, %v9229_v12  ;;  %v2515_v18 = vpop.f32.mrf.mxu0  ;;  %v11240_v12 = vld [vmem:[#allocation16_spill] sm:$0xff] }
 0x6b0   : > { %v2790_v41 = vpop.f32.mrf.mxu1  ;;  %v2565_v49 = vadd.f32 %v2515_v18, %v2273_v50  ;;  %v2276_v36 = vadd.f32 %v9247_v47, %v11240_v12 }
 0x6b1   : > { %7331 = vmatmul.msk.f32.gmra.mxu2 %vm380_vm0, %v8983_v29 }
 0x6b2   : > { %v2840_v22 = vadd.f32 %v2790_v41, %v2565_v49  ;;  %7266 = vmatmul.msk.f32.gmra.mxu0 %vm380_vm0, %v3407_v63  ;;  %v3409_v49 = vld [vmem:[#allocation2 + $0x98] sm:$0xff] }
 0x6b3   : > { %7299 = vmatmul.msk.f32.gmra.mxu1 %vm380_vm0, %v3682_v60  ;;  %7249 = vmatmul.msk.f32.gmra.mxu3 %vm380_vm0, %v9249_v5  ;;  %v3684_v63 = vld [vmem:[#allocation2 + $0x99] sm:$0xff] }
 0x6b4   : > { %v3062_v28 = vpop.f32.mrf.mxu2 }
 0x6b5   : > { %v9456_v55 = vadd.f32 %v3062_v28, %v2839_v40 }
 0x6b6   : > { %v3292_v1 = vpop.f32.mrf.mxu3 }
 0x6b7   : > { %v9461_v45 = vadd.f32 %v3292_v1, %v9245_v52  ;;  %v2518_v14 = vpop.f32.mrf.mxu0  ;;  %v11241_v52 = vld [vmem:[#allocation17_spill] sm:$0xff] }
 0x6b8   : > { %v2793_v29 = vpop.f32.mrf.mxu1  ;;  %v2566_v32 = vadd.f32 %v2518_v14, %v2276_v36  ;;  %v2279_v0 = vadd.f32 %v9263_v15, %v11241_v52 }
 0x6b9   : > { %7332 = vmatmul.msk.f32.gmra.mxu2 %vm380_vm0, %v9001_v53 }
 0x6ba   : > { %v2841_v19 = vadd.f32 %v2793_v29, %v2566_v32  ;;  %7267 = vmatmul.msk.f32.gmra.mxu0 %vm380_vm0, %v3408_v44  ;;  %v3410_v29 = vld [vmem:[#allocation2 + $0xa8] sm:$0xff] }
 0x6bb   : > { %7300 = vmatmul.msk.f32.gmra.mxu1 %vm380_vm0, %v3683_v10  ;;  %7250 = vmatmul.msk.f32.gmra.mxu3 %vm380_vm0, %v9265_v24  ;;  %v3685_v32 = vld [vmem:[#allocation2 + $0xa9] sm:$0xff] }
 0x6bc   : > { %v3065_v47 = vpop.f32.mrf.mxu2 }
 0x6bd   : > { %v9469_v40 = vadd.f32 %v3065_v47, %v2840_v22 }
 0x6be   : > { %v3295_v50 = vpop.f32.mrf.mxu3 }
 0x6bf   : > { %v9474_v43 = vadd.f32 %v3295_v50, %v9261_v4  ;;  %v2521_v18 = vpop.f32.mrf.mxu0  ;;  %v11242_v4 = vld [vmem:[#allocation18_spill] sm:$0xff] }
 0x6c0   : > { %v2796_v53 = vpop.f32.mrf.mxu1  ;;  %v2567_v41 = vadd.f32 %v2521_v18, %v2279_v0  ;;  %v2282_v28 = vadd.f32 %v9279_v3, %v11242_v4 }
 0x6c1   : > { %7333 = vmatmul.msk.f32.gmra.mxu2 %vm380_vm0, %v9019_v42 }
 0x6c2   : > { %v2842_v60 = vadd.f32 %v2796_v53, %v2567_v41  ;;  %7268 = vmatmul.msk.f32.gmra.mxu0 %vm380_vm0, %v3409_v49  ;;  %v11244_v53 = vld [vmem:[#allocation28_spill] sm:$0xff] }
 0x6c3   : > { %7301 = vmatmul.msk.f32.gmra.mxu1 %vm380_vm0, %v3684_v63  ;;  %7251 = vmatmul.msk.f32.gmra.mxu3 %vm380_vm0, %v9281_v58  ;;  %v11246_v49 = vld [vmem:[#allocation24_spill] sm:$0xff] }
 0x6c4   : > { %v3068_v15 = vpop.f32.mrf.mxu2  ;;  %v11247_v63 = vld [vmem:[#allocation20_spill] sm:$0xff] }
 0x6c5   : > { %v9482_v22 = vadd.f32 %v3068_v15, %v2841_v19 }
 0x6c6   : > { %v3298_v12 = vpop.f32.mrf.mxu3 }
 0x6c7   : > { %v9487_v36 = vadd.f32 %v3298_v12, %v9277_v56  ;;  %v2524_v1 = vpop.f32.mrf.mxu0  ;;  %v11243_v56 = vld [vmem:[#allocation21_spill] sm:$0xff]  ;;  %v3412_v12 = vld [vmem:[#allocation2 + $0xc0] sm:$0xff] }
 0x6c8   : > { %v2799_v42 = vpop.f32.mrf.mxu1  ;;  %v2568_v14 = vadd.f32 %v2524_v1, %v2282_v28  ;;  %v2285_v19 = vadd.f32 %v9295_v38, %v11243_v56  ;;  %v11248_v1 = vld [vmem:[#allocation35_spill] sm:$0xff]  ;;  %v11252_v56 = vld [vmem:[#allocation29_spill] sm:$0xff] }
 0x6c9   : > { %7334 = vmatmul.msk.f32.gmra.mxu2 %vm380_vm0, %v11205_v26  ;;  %v3411_v26 = vld [vmem:[#allocation2 + $0xb0] sm:$0xff] }
 0x6ca   : > { %v2843_v44 = vadd.f32 %v2799_v42, %v2568_v14  ;;  %7269 = vmatmul.msk.f32.gmra.mxu0 %vm380_vm0, %v3410_v29  ;;  %v11249_v14 = vld [vmem:[#allocation34_spill] sm:$0xff] }
 0x6cb   : > { %7302 = vmatmul.msk.f32.gmra.mxu1 %vm380_vm0, %v3685_v32  ;;  %7252 = vmatmul.msk.f32.gmra.mxu3 %vm380_vm0, %v9297_v61  ;;  %v11245_v61 = vld [vmem:[#allocation4_spill] sm:$0xff]  ;;  %v11250_v29 = vld [vmem:[#allocation22_spill] sm:$0xff] }
 0x6cc   : > { %v3071_v3 = vpop.f32.mrf.mxu2 }
 0x6cd   : > { %v9495_v10 = vadd.f32 %v3071_v3, %v2842_v60  ;;  %v2288_v60 = vadd.f32 %v11247_v63, %v11246_v49  ;;  %v11251_v3 = vld [vmem:[#allocation30_spill] sm:$0xff]  ;;  %v11254_v49 = vld [vmem:[#allocation39_spill] sm:$0xff] }
 0x6ce   : > { %v9499_v47 = vpop.f32.mrf.mxu3 }
 0x6cf   : > { %v2527_v52 = vpop.f32.mrf.mxu0 }
 0x6d0   : > { %v2802_v0 = vpop.f32.mrf.mxu1  ;;  %v2569_v50 = vadd.f32 %v2527_v52, %v2285_v19  ;;  %v2291_v19 = vadd.f32 %v11252_v56, %v11251_v3  ;;  %v11257_v3 = vmov 0.0  }
 0x6d1   : > { %7335 = vmatmul.msk.f32.gmra.mxu2 %vm380_vm0, %v11211_v62  ;;  %430 = vst.msk [vmem:[#allocation3 + $0x10] sm:$0x3] %vm429_vm9, %v11257_v3 }
 0x6d2   : > { %v2844_v18 = vadd.f32 %v2802_v0, %v2569_v50  ;;  %7270 = vmatmul.msk.f32.gmra.mxu0 %vm380_vm0, %v3411_v26  ;;  %434 = vst.msk [vmem:[#allocation3 + $0x1a8] sm:$0x3] %vm429_vm9, %v11257_v3 }
 0x6d3   : > { %7303 = vmatmul.msk.f32.gmra.mxu1 %vm380_vm0, %v11244_v53  ;;  %7253 = vmatmul.msk.f32.gmra.mxu3 %vm380_vm0, %v11245_v61  ;;  %v3413_v53 = vld [vmem:[#allocation2 + $0xc8] sm:$0xff]  ;;  %v11253_v61 = vld [vmem:[#allocation40_spill] sm:$0xff]  ;;  %436 = vst.msk [vmem:[#allocation3] sm:$0x1] %vm435_vm10, %v11257_v3 }
 0x6d4   : > { %v3074_v41 = vpop.f32.mrf.mxu2  ;;  %437 = vst.msk [vmem:[#allocation3 + $0x18] sm:$0x1] %vm435_vm10, %v11257_v3 }
 0x6d5   : > { %v9508_v38 = vadd.f32 %v3074_v41, %v2843_v44  ;;  %438 = vst.msk [vmem:[#allocation3 + $0x30] sm:$0x1] %vm435_vm10, %v11257_v3 }
 0x6d6   : > { %v9512_v15 = vpop.f32.mrf.mxu3  ;;  %439 = vst.msk [vmem:[#allocation3 + $0x48] sm:$0x1] %vm435_vm10, %v11257_v3 }
 0x6d7   : > { %v2530_v4 = vpop.f32.mrf.mxu0  ;;  %440 = vst.msk [vmem:[#allocation3 + $0x60] sm:$0x1] %vm435_vm10, %v11257_v3 }
 0x6d8   : > { %v2805_v28 = vpop.f32.mrf.mxu1  ;;  %v2570_v62 = vadd.f32 %v2530_v4, %v2288_v60  ;;  %v11255_v4 = vld [vmem:[#allocation37_spill] sm:$0xff]  ;;  %441 = vst.msk [vmem:[#allocation3 + $0x78] sm:$0x1] %vm435_vm10, %v11257_v3 }
 0x6d9   : > { %7336 = vmatmul.msk.f32.gmra.mxu2 %vm380_vm0, %v11248_v1  ;;  %442 = vst.msk [vmem:[#allocation3 + $0x90] sm:$0x1] %vm435_vm10, %v11257_v3 }
 0x6da   : > { %v2845_v42 = vadd.f32 %v2805_v28, %v2570_v62  ;;  %7271 = vmatmul.msk.f32.gmra.mxu0 %vm380_vm0, %v3412_v12  ;;  %v2294_v28 = vadd.f32 %v9344_v59, %v11255_v4  ;;  %v9575_v4 = vld [vmem:[#allocation2 + $0x18a] sm:$0xff]  ;;  %443 = vst.msk [vmem:[#allocation3 + $0xa8] sm:$0x1] %vm435_vm10, %v11257_v3 }
 0x6db   : > { %7304 = vmatmul.msk.f32.gmra.mxu1 %vm380_vm0, %v11249_v14  ;;  %7254 = vmatmul.msk.f32.gmra.mxu3 %vm380_vm0, %v11250_v29  ;;  %v3414_v29 = vld [vmem:[#allocation2 + $0xd8] sm:$0xff]  ;;  %444 = vst.msk [vmem:[#allocation3 + $0xc0] sm:$0x1] %vm435_vm10, %v11257_v3 }
 0x6dc   : > { %v3077_v32 = vpop.f32.mrf.mxu2  ;;  %445 = vst.msk [vmem:[#allocation3 + $0xd8] sm:$0x1] %vm435_vm10, %v11257_v3 }
 0x6dd   : > { %v9521_v44 = vadd.f32 %v3077_v32, %v2844_v18  ;;  %v7458_v18 = vld [vmem:[%s11071_s7 + $0xc] sm:$0xf]  ;;  %446 = vst.msk [vmem:[#allocation3 + $0xf0] sm:$0x1] %vm435_vm10, %v11257_v3 }
 0x6de   : > { %v9525_v52 = vpop.f32.mrf.mxu3  ;;  %7459 = vmatpush.msk.msra.mxu2 %vm4525_vm8, %v7458_v18  ;;  %v3415_v18 = vld [vmem:[#allocation2 + $0xe0] sm:$0xff]  ;;  %447 = vst.msk [vmem:[#allocation3 + $0x108] sm:$0x1] %vm435_vm10, %v11257_v3 }
 0x6df   : > { %v2533_v0 = vpop.f32.mrf.mxu0  ;;  %448 = vst.msk [vmem:[#allocation3 + $0x120] sm:$0x1] %vm435_vm10, %v11257_v3 }
 0x6e0   : > { %v2808_v50 = vpop.f32.mrf.mxu1  ;;  %v2571_v26 = vadd.f32 %v2533_v0, %v2291_v19  ;;  %v7492_v19 = vld [vmem:[%s11071_s7 + $0x10] sm:$0xf]  ;;  %v7424_v0 = vld [vmem:[%s11071_s7 + $0x8] sm:$0xf]  ;;  %449 = vst.msk [vmem:[#allocation3 + $0x138] sm:$0x1] %vm435_vm10, %v11257_v3 }
 0x6e1   : > { %7337 = vmatmul.msk.f32.gmra.mxu2 %vm380_vm0, %v11253_v61  ;;  %7493 = vmatpush.msk.msra.mxu3 %vm4525_vm8, %v7492_v19  ;;  %450 = vst.msk [vmem:[#allocation3 + $0x150] sm:$0x1] %vm435_vm10, %v11257_v3 }
 0x6e2   : > { %v2846_v41 = vadd.f32 %v2808_v50, %v2571_v26  ;;  %7272 = vmatmul.msk.f32.gmra.mxu0 %vm380_vm0, %v3413_v53  ;;  %v11258_v50 = vld [vmem:[#allocation41_spill] sm:$0xff]  ;;  %7425 = vmatpush.msk.msrb.mxu1 %vm4525_vm8, %v7424_v0  ;;  %451 = vst.msk [vmem:[#allocation3 + $0x168] sm:$0x1] %vm435_vm10, %v11257_v3 }
 0x6e3   : > { %7305 = vmatmul.msk.f32.gmra.mxu1 %vm380_vm0, %v11254_v49  ;;  %7255 = vmatmul.msk.f32.gmra.mxu3 %vm380_vm0, %v9346_v2  ;;  %v9546_v2 = vld [vmem:[#allocation2 + $0x182] sm:$0xff]  ;;  %v2297_v26 = vadd.f32 %v9358_v54, %v11258_v50  ;;  %452 = vst.msk [vmem:[#allocation3 + $0x180] sm:$0x1] %vm435_vm10, %v11257_v3 }
 0x6e4   : > { %v3080_v63 = vpop.f32.mrf.mxu2  ;;  %v11259_v54 = vld [vmem:[#allocation44_spill] sm:$0xff]  ;;  %453 = vst.msk [vmem:[#allocation3 + $0x198] sm:$0x1] %vm435_vm10, %v11257_v3 }
 0x6e5   : > { %v9538_v60 = vadd.f32 %v3080_v63, %v2845_v42  ;;  %v11256_v42 = vld [vmem:[#allocation43_spill] sm:$0xff]  ;;  %454 = vst.msk [vmem:[#allocation3 + $0x11] sm:$0x1] %vm435_vm10, %v11257_v3 }
 0x6e6   : > { %v9542_v62 = vpop.f32.mrf.mxu3  ;;  %455 = vst.msk [vmem:[#allocation3 + $0x29] sm:$0x1] %vm435_vm10, %v11257_v3 }
 0x6e7   : > { %v2536_v12 = vpop.f32.mrf.mxu0  ;;  %456 = vst.msk [vmem:[#allocation3 + $0x41] sm:$0x1] %vm435_vm10, %v11257_v3 }
 0x6e8   : > { %v2811_v1 = vpop.f32.mrf.mxu1  ;;  %v2572_v14 = vadd.f32 %v2536_v12, %v2294_v28  ;;  %457 = vst.msk [vmem:[#allocation3 + $0x59] sm:$0x1] %vm435_vm10, %v11257_v3 }
 0x6e9   : > { %7338 = vmatmul.msk.f32.gmra.mxu2 %vm380_vm0, %v9117_v9  ;;  %v4394_v9 = vld [vmem:[%s11071_s7] sm:$0xf]  ;;  %458 = vst.msk [vmem:[#allocation3 + $0x71] sm:$0x1] %vm435_vm10, %v11257_v3 }
 0x6ea   : > { %v2847_v32 = vadd.f32 %v2811_v1, %v2572_v14  ;;  %7273 = vmatmul.msk.f32.gmra.mxu0 %vm380_vm0, %v3414_v29  ;;  %v4395_v29 = vld [vmem:[#allocation3 + $0x1] sm:$0xff]  ;;  %459 = vst.msk [vmem:[#allocation3 + $0x89] sm:$0x1] %vm435_vm10, %v11257_v3 }
 0x6eb   : > { %7306 = vmatmul.msk.f32.gmra.mxu1 %vm380_vm0, %v11256_v42  ;;  %7256 = vmatmul.msk.f32.gmra.mxu3 %vm380_vm0, %v9546_v2  ;;  %v3416_v42 = vld [vmem:[#allocation2 + $0xf0] sm:$0xff]  ;;  %460 = vst.msk [vmem:[#allocation3 + $0xa1] sm:$0x1] %vm435_vm10, %v11257_v3 }
 0x6ec   : > { %v3083_v59 = vpop.f32.mrf.mxu2  ;;  %7391 = vmatpush.msk.msra.mxu0 %vm4525_vm8, %v4394_v9  ;;  %461 = vst.msk [vmem:[#allocation3 + $0xb9] sm:$0x1] %vm435_vm10, %v11257_v3 }
 0x6ed   : > { %v9555_v56 = vadd.f32 %v3083_v59, %v2846_v41  ;;  %462 = vst.msk [vmem:[#allocation3 + $0xd1] sm:$0x1] %vm435_vm10, %v11257_v3 }
 0x6ee   : > { %v9568_v53 = vpop.f32.mrf.mxu3  ;;  %463 = vst.msk [vmem:[#allocation3 + $0xe9] sm:$0x1] %vm435_vm10, %v11257_v3 }
 0x6ef   : > { %v2539_v61 = vpop.f32.mrf.mxu0  ;;  %464 = vst.msk [vmem:[#allocation3 + $0x101] sm:$0x1] %vm435_vm10, %v11257_v3 }
 0x6f0   : > { %v2814_v41 = vpop.f32.mrf.mxu1  ;;  %v2573_v49 = vadd.f32 %v2539_v61, %v2297_v26  ;;  %v4396_v26 = vld [vmem:[#allocation3 + $0x9] sm:$0xff]  ;;  %465 = vst.msk [vmem:[#allocation3 + $0x119] sm:$0x1] %vm435_vm10, %v11257_v3 }
 0x6f1   : > { %7339 = vmatmul.msk.f32.gmra.mxu2 %vm380_vm0, %v9135_v31  ;;  %v3417_v61 = vld [vmem:[#allocation2 + $0xf8] sm:$0xff]  ;;  %466 = vst.msk [vmem:[#allocation3 + $0x131] sm:$0x1] %vm435_vm10, %v11257_v3 }
 0x6f2   : > { %v2848_v63 = vadd.f32 %v2814_v41, %v2573_v49  ;;  %7274 = vmatmul.msk.f32.gmra.mxu0 %vm380_vm0, %v3415_v18  ;;  %v3692_v41 = vld [vmem:[#allocation2 + $0xf9] sm:$0xff]  ;;  %v9637_v49 = vld [vmem:[%s11069_s5] ss:$0 sm:$0xff]  ;;  %467 = vst.msk [vmem:[#allocation3 + $0x149] sm:$0x1] %vm435_vm10, %v11257_v3 }
 0x6f3   : > { %7307 = vmatmul.msk.f32.gmra.mxu1 %vm380_vm0, %v11259_v54  ;;  %7257 = vmatmul.msk.f32.gmra.mxu3 %vm380_vm0, %v9575_v4  ;;  %468 = vst.msk [vmem:[#allocation3 + $0x161] sm:$0x1] %vm435_vm10, %v11257_v3 }
 0x6f4   : > { %v3086_v28 = vpop.f32.mrf.mxu2  ;;  %469 = vst.msk [vmem:[#allocation3 + $0x179] sm:$0x1] %vm435_vm10, %v11257_v3 }
 0x6f5   : > { %v9588_v31 = vadd.f32 %v3086_v28, %v2847_v32  ;;  %v3691_v32 = vld [vmem:[#allocation2 + $0xf1] sm:$0xff]  ;;  %470 = vst.msk [vmem:[#allocation3 + $0x191] sm:$0x1] %vm435_vm10, %v11257_v3 }
 0x6f6   : > { %v9592_v12 = vpop.f32.mrf.mxu3  ;;  %471 = vst.msk [vmem:[#allocation3 + $0x1a9] sm:$0x1] %vm435_vm10, %v11257_v3 }
 0x6f7   : > { %v3547_v1 = vpop.f32.mrf.mxu0 }
 0x6f8   : > { %v3822_v14 = vpop.f32.mrf.mxu1  ;;  %v3643_v19 = vadd.f32 %v3547_v1, %v9370_v34 }
 0x6f9   : > { %7340 = vmatmul.msk.f32.gmra.mxu2 %vm380_vm0, %v9151_v25 }
 0x6fa   : > { %7275 = vmatmul.msk.f32.gmra.mxu0 %vm380_vm0, %v3416_v42  ;;  %v3918_v34 = vadd.f32 %v3822_v14, %v3643_v19 }
 0x6fb   : > { %7308 = vmatmul.msk.f32.gmra.mxu1 %vm380_vm0, %v3691_v32  ;;  %7359 = vmatmul.msk.f32.vlgmr.msrb.gmra.mxu3 %vm426_vm4, %v4395_v29  ;;  %v3418_v32 = vld [vmem:[#allocation2 + $0x108] sm:$0xff] }
 0x6fc   : > { %v3089_v59 = vpop.f32.mrf.mxu2 }
 0x6fd   : > { %v9613_v25 = vadd.f32 %v3089_v59, %v2848_v63  ;;  %v9647_v63 = vld [vmem:[%s11070_s6] ss:$0 sm:$0xff]  ;;  %v3693_v59 = vld [vmem:[#allocation2 + $0x109] sm:$0xff] }
 0x6fe   : > { %v9617_v9 = vpop.f32.mrf.mxu3 }
 0x6ff   : > { %v3550_v0 = vpop.f32.mrf.mxu0 }
 0x700   : > { %v3825_v50 = vpop.f32.mrf.mxu1  ;;  %v3644_v28 = vadd.f32 %v3550_v0, %v9383_v27 }
 0x701   : > { %7341 = vmatmul.msk.f32.gmra.mxu2 %vm380_vm0, %v9167_v39 }
 0x702   : > { %7276 = vmatmul.msk.f32.gmra.mxu0 %vm380_vm0, %v3417_v61  ;;  %v3919_v27 = vadd.f32 %v3825_v50, %v3644_v28 }
 0x703   : > { %7309 = vmatmul.msk.f32.gmra.mxu1 %vm380_vm0, %v3692_v41  ;;  %7360 = vmatmul.msk.f32.gmra.mxu3 %vm426_vm4, %v4396_v26 }
 0x704   : > { %v4097_v39 = vpop.f32.mrf.mxu2 }
 0x705   : > { %v4193_v18 = vadd.f32 %v4097_v39, %v3918_v34 }
 0x706   : > { %v9651_v54 = vpop.f32.mrf.mxu3 }
 0x707   : > { %v4229_v1 = vmul.f32 %v9637_v49, %v4193_v18  ;;  %v3553_v14 = vpop.f32.mrf.mxu0  ;;  %v3419_v18 = vld [vmem:[#allocation2 + $0x110] sm:$0xff] }
 0x708   : > { %v3828_v29 = vpop.f32.mrf.mxu1  ;;  %v3645_v61 = vadd.f32 %v3553_v14, %v9396_v23  ;;  %v11260_v23 = vld [vmem:[#allocation45_spill] sm:$0xff] }
 0x709   : > { %v4265_v42 = vadd.f32 %v9647_v63, %v4229_v1  ;;  %7342 = vmatmul.msk.f32.gmra.mxu2 %vm380_vm0, %v9183_v13 }
 0x70a   : > { %7277 = vmatmul.msk.f32.gmra.mxu0 %vm380_vm0, %v3418_v32  ;;  %v3920_v28 = vadd.f32 %v3828_v29, %v3645_v61  ;;  %v3695_v61 = vld [vmem:[#allocation2 + $0x121] sm:$0xff] }
 0x70b   : > { %7310 = vmatmul.msk.f32.gmra.mxu1 %vm380_vm0, %v3693_v59  ;;  %v4297_v19 = vmax.f32 %v4265_v42, 0.0 }
 0x70c   : > { %v4100_v0 = vpop.f32.mrf.mxu2 }
 0x70d   : > { %4330 = vst.msk [vmem:[#allocation3 + $0x19] sm:$0xff] %vm426_vm4, %v4297_v19  ;;  %v4194_v13 = vadd.f32 %v4100_v0, %v3919_v27 }
 0x70e   : > { %v9675_v26 = vpop.f32.mrf.mxu3 }
 0x70f   : > { %v4230_v50 = vmul.f32 %v9637_v49, %v4194_v13  ;;  %v3556_v41 = vpop.f32.mrf.mxu0  ;;  %v3420_v13 = vld [vmem:[#allocation2 + $0x120] sm:$0xff] }
 0x710   : > { %v3831_v34 = vpop.f32.mrf.mxu1  ;;  %v3646_v29 = vadd.f32 %v3556_v41, %v9409_v37 }
 0x711   : > { %v4266_v39 = vadd.f32 %v9647_v63, %v4230_v50  ;;  %7343 = vmatmul.msk.f32.gmra.mxu2 %vm380_vm0, %v9201_v30 }
 0x712   : > { %7278 = vmatmul.msk.f32.gmra.mxu0 %vm380_vm0, %v3419_v18  ;;  %v3921_v50 = vadd.f32 %v3831_v34, %v3646_v29  ;;  %v3696_v34 = vld [vmem:[#allocation2 + $0x129] sm:$0xff] }
 0x713   : > { %7311 = vmatmul.msk.f32.gmra.mxu1 %vm380_vm0, %v11260_v23  ;;  %v4298_v1 = vmax.f32 %v4266_v39, 0.0 }
 0x714   : > { %v4103_v14 = vpop.f32.mrf.mxu2  ;;  %v4397_v42 = vld [vmem:[#allocation3 + $0x19] sm:$0xff] }
 0x715   : > { %4331 = vst.msk [vmem:[#allocation3 + $0x21] sm:$0xff] %vm426_vm4, %v4298_v1  ;;  %v4195_v30 = vadd.f32 %v4103_v14, %v3920_v28  ;;  %7361 = vmatmul.msk.f32.gmra.mxu3 %vm426_vm4, %v4397_v42  ;;  %v3421_v42 = vld [vmem:[#allocation2 + $0x128] sm:$0xff] }
 0x716   : > { %v9701_v32 = vpop.f32.mrf.mxu3 }
 0x717   : > { %v4231_v59 = vmul.f32 %v9637_v49, %v4195_v30  ;;  %v3559_v27 = vpop.f32.mrf.mxu0 }
 0x718   : > { %v3834_v19 = vpop.f32.mrf.mxu1  ;;  %v3647_v23 = vadd.f32 %v3559_v27, %v9422_v17 }
 0x719   : > { %v4267_v0 = vadd.f32 %v9647_v63, %v4231_v59  ;;  %7344 = vmatmul.msk.f32.gmra.mxu2 %vm380_vm0, %v9217_v21 }
 0x71a   : > { %7279 = vmatmul.msk.f32.gmra.mxu0 %vm380_vm0, %v3420_v13  ;;  %v3922_v30 = vadd.f32 %v3834_v19, %v3647_v23  ;;  %v3697_v19 = vld [vmem:[#allocation2 + $0x139] sm:$0xff] }
 0x71b   : > { %7312 = vmatmul.msk.f32.gmra.mxu1 %vm380_vm0, %v3695_v61  ;;  %v4299_v37 = vmax.f32 %v4267_v0, 0.0 }
 0x71c   : > { %v4106_v41 = vpop.f32.mrf.mxu2  ;;  %v4398_v39 = vld [vmem:[#allocation3 + $0x21] sm:$0xff] }
 0x71d   : > { %4332 = vst.msk [vmem:[#allocation3 + $0x31] sm:$0xff] %vm426_vm4, %v4299_v37  ;;  %v4196_v18 = vadd.f32 %v4106_v41, %v3921_v50  ;;  %7362 = vmatmul.msk.f32.gmra.mxu3 %vm426_vm4, %v4398_v39  ;;  %v3422_v41 = vld [vmem:[#allocation2 + $0x138] sm:$0xff] }
 0x71e   : > { %v9716_v3 = vpop.f32.mrf.mxu3 }
 0x71f   : > { %v4232_v28 = vmul.f32 %v9637_v49, %v4196_v18  ;;  %v3562_v21 = vpop.f32.mrf.mxu0 }
 0x720   : > { %v3837_v1 = vpop.f32.mrf.mxu1  ;;  %v3648_v13 = vadd.f32 %v3562_v21, %v9435_v35 }
 0x721   : > { %v4268_v14 = vadd.f32 %v9647_v63, %v4232_v28  ;;  %7345 = vmatmul.msk.f32.gmra.mxu2 %vm380_vm0, %v9233_v57 }
 0x722   : > { %7280 = vmatmul.msk.f32.gmra.mxu0 %vm380_vm0, %v3421_v42  ;;  %v3923_v39 = vadd.f32 %v3837_v1, %v3648_v13  ;;  %v3698_v1 = vld [vmem:[#allocation2 + $0x141] sm:$0xff] }
 0x723   : > { %7313 = vmatmul.msk.f32.gmra.mxu1 %vm380_vm0, %v3696_v34  ;;  %v4300_v29 = vmax.f32 %v4268_v14, 0.0 }
 0x724   : > { %v4109_v59 = vpop.f32.mrf.mxu2  ;;  %v4399_v0 = vld [vmem:[#allocation3 + $0x31] sm:$0xff] }
 0x725   : > { %4333 = vst.msk [vmem:[#allocation3 + $0x39] sm:$0xff] %vm426_vm4, %v4300_v29  ;;  %v4197_v17 = vadd.f32 %v4109_v59, %v3922_v30  ;;  %7363 = vmatmul.msk.f32.gmra.mxu3 %vm426_vm4, %v4399_v0  ;;  %v3423_v29 = vld [vmem:[#allocation2 + $0x140] sm:$0xff] }
 0x726   : > { %v9727_v27 = vpop.f32.mrf.mxu3 }
 0x727   : > { %v4233_v61 = vmul.f32 %v9637_v49, %v4197_v17  ;;  %v3565_v57 = vpop.f32.mrf.mxu0 }
 0x728   : > { %v3840_v50 = vpop.f32.mrf.mxu1  ;;  %v3649_v14 = vadd.f32 %v3565_v57, %v9448_v46 }
 0x729   : > { %v4269_v37 = vadd.f32 %v9647_v63, %v4233_v61  ;;  %7346 = vmatmul.msk.f32.gmra.mxu2 %vm380_vm0, %v9249_v5 }
 0x72a   : > { %7281 = vmatmul.msk.f32.gmra.mxu0 %vm380_vm0, %v3422_v41  ;;  %v3924_v59 = vadd.f32 %v3840_v50, %v3649_v14  ;;  %v3699_v50 = vld [vmem:[#allocation2 + $0x151] sm:$0xff] }
 0x72b   : > { %7314 = vmatmul.msk.f32.gmra.mxu1 %vm380_vm0, %v3697_v19  ;;  %v4301_v18 = vmax.f32 %v4269_v37, 0.0 }
 0x72c   : > { %v4112_v23 = vpop.f32.mrf.mxu2  ;;  %v4400_v28 = vld [vmem:[#allocation3 + $0x39] sm:$0xff] }
 0x72d   : > { %4334 = vst.msk [vmem:[#allocation3 + $0x49] sm:$0xff] %vm426_vm4, %v4301_v18  ;;  %v4198_v35 = vadd.f32 %v4112_v23, %v3923_v39  ;;  %7364 = vmatmul.msk.f32.gmra.mxu3 %vm426_vm4, %v4400_v28  ;;  %v3424_v39 = vld [vmem:[#allocation2 + $0x150] sm:$0xff] }
 0x72e   : > { %v9738_v21 = vpop.f32.mrf.mxu3 }
 0x72f   : > { %v4234_v42 = vmul.f32 %v9637_v49, %v4198_v35  ;;  %v3568_v5 = vpop.f32.mrf.mxu0 }
 0x730   : > { %v3843_v34 = vpop.f32.mrf.mxu1  ;;  %v3650_v57 = vadd.f32 %v3568_v5, %v9461_v45 }
 0x731   : > { %v4270_v30 = vadd.f32 %v9647_v63, %v4234_v42  ;;  %7347 = vmatmul.msk.f32.gmra.mxu2 %vm380_vm0, %v9265_v24 }
 0x732   : > { %7282 = vmatmul.msk.f32.gmra.mxu0 %vm380_vm0, %v3423_v29  ;;  %v3925_v18 = vadd.f32 %v3843_v34, %v3650_v57  ;;  %v3974_v29 = vld [vmem:[#allocation2 + $0x152] sm:$0xff] }
 0x733   : > { %7315 = vmatmul.msk.f32.gmra.mxu1 %vm380_vm0, %v3698_v1  ;;  %v4302_v0 = vmax.f32 %v4270_v30, 0.0  ;;  %v3425_v34 = vld [vmem:[#allocation2 + $0x158] sm:$0xff] }
 0x734   : > { %v4115_v17 = vpop.f32.mrf.mxu2  ;;  %v4401_v13 = vld [vmem:[#allocation3 + $0x49] sm:$0xff] }
 0x735   : > { %4335 = vst.msk [vmem:[#allocation3 + $0x51] sm:$0xff] %vm426_vm4, %v4302_v0  ;;  %v4199_v46 = vadd.f32 %v4115_v17, %v3924_v59  ;;  %7365 = vmatmul.msk.f32.gmra.mxu3 %vm426_vm4, %v4401_v13  ;;  %v3700_v59 = vld [vmem:[#allocation2 + $0x159] sm:$0xff] }
 0x736   : > { %v9749_v61 = vpop.f32.mrf.mxu3 }
 0x737   : > { %v4235_v37 = vmul.f32 %v9637_v49, %v4199_v46  ;;  %v3571_v24 = vpop.f32.mrf.mxu0 }
 0x738   : > { %v3846_v41 = vpop.f32.mrf.mxu1  ;;  %v3651_v42 = vadd.f32 %v3571_v24, %v9474_v43 }
 0x739   : > { %v4271_v19 = vadd.f32 %v9647_v63, %v4235_v37  ;;  %7348 = vmatmul.msk.f32.gmra.mxu2 %vm380_vm0, %v9281_v58 }
 0x73a   : > { %7283 = vmatmul.msk.f32.gmra.mxu0 %vm380_vm0, %v3424_v39  ;;  %v3926_v0 = vadd.f32 %v3846_v41, %v3651_v42  ;;  %v3426_v41 = vld [vmem:[#allocation2 + $0x168] sm:$0xff] }
 0x73b   : > { %7316 = vmatmul.msk.f32.gmra.mxu1 %vm380_vm0, %v3699_v50  ;;  %v4303_v23 = vmax.f32 %v4271_v19, 0.0  ;;  %v3975_v50 = vld [vmem:[#allocation2 + $0x15a] sm:$0xff] }
 0x73c   : > { %v4118_v28 = vpop.f32.mrf.mxu2  ;;  %v4402_v35 = vld [vmem:[#allocation3 + $0x51] sm:$0xff] }
 0x73d   : > { %4336 = vst.msk [vmem:[#allocation3 + $0x61] sm:$0xff] %vm426_vm4, %v4303_v23  ;;  %v4200_v45 = vadd.f32 %v4118_v28, %v3925_v18  ;;  %7366 = vmatmul.msk.f32.gmra.mxu3 %vm426_vm4, %v4402_v35  ;;  %v3701_v23 = vld [vmem:[#allocation2 + $0x169] sm:$0xff] }
 0x73e   : > { %v9760_v14 = vpop.f32.mrf.mxu3 }
 0x73f   : > { %v4236_v5 = vmul.f32 %v9637_v49, %v4200_v45  ;;  %v3574_v58 = vpop.f32.mrf.mxu0 }
 0x740   : > { %v3849_v30 = vpop.f32.mrf.mxu1  ;;  %v3652_v37 = vadd.f32 %v3574_v58, %v9487_v36  ;;  %v11261_v36 = vld [vmem:[#allocation25_spill] sm:$0xff] }
 0x741   : > { %v4272_v1 = vadd.f32 %v9647_v63, %v4236_v5  ;;  %7349 = vmatmul.msk.f32.gmra.mxu2 %vm380_vm0, %v3974_v29  ;;  %v3377_v5 = vadd.f32 %v9499_v47, %v11261_v36  ;;  %v3428_v36 = vld [vmem:[#allocation2 + $0x180] sm:$0xff] }
 0x742   : > { %7284 = vmatmul.msk.f32.gmra.mxu0 %vm380_vm0, %v3425_v34  ;;  %v3927_v28 = vadd.f32 %v3849_v30, %v3652_v37 }
 0x743   : > { %7317 = vmatmul.msk.f32.gmra.mxu1 %vm380_vm0, %v3700_v59  ;;  %v4304_v17 = vmax.f32 %v4272_v1, 0.0 }
 0x744   : > { %v4121_v13 = vpop.f32.mrf.mxu2  ;;  %v4403_v46 = vld [vmem:[#allocation3 + $0x61] sm:$0xff] }
 0x745   : > { %4337 = vst.msk [vmem:[#allocation3 + $0x69] sm:$0xff] %vm426_vm4, %v4304_v17  ;;  %v4201_v43 = vadd.f32 %v4121_v13, %v3926_v0  ;;  %7367 = vmatmul.msk.f32.gmra.mxu3 %vm426_vm4, %v4403_v46  ;;  %v3976_v17 = vld [vmem:[#allocation2 + $0x16a] sm:$0xff] }
 0x746   : > { %v9770_v57 = vpop.f32.mrf.mxu3  ;;  %v3427_v13 = vld [vmem:[#allocation2 + $0x170] sm:$0xff] }
 0x747   : > { %v4237_v24 = vmul.f32 %v9637_v49, %v4201_v43  ;;  %v3577_v19 = vpop.f32.mrf.mxu0  ;;  %v3702_v46 = vld [vmem:[#allocation2 + $0x171] sm:$0xff] }
 0x748   : > { %v3852_v39 = vpop.f32.mrf.mxu1  ;;  %v3653_v1 = vadd.f32 %v3577_v19, %v3377_v5  ;;  %v11262_v19 = vld [vmem:[#allocation19_spill] sm:$0xff]  ;;  %v3703_v5 = vld [vmem:[#allocation2 + $0x181] sm:$0xff] }
 0x749   : > { %v4273_v18 = vadd.f32 %v9647_v63, %v4237_v24  ;;  %7350 = vmatmul.msk.f32.gmra.mxu2 %vm380_vm0, %v3975_v50  ;;  %v3378_v50 = vadd.f32 %v9512_v15, %v11262_v19  ;;  %v3704_v19 = vld [vmem:[#allocation2 + $0x189] sm:$0xff] }
 0x74a   : > { %7285 = vmatmul.msk.f32.gmra.mxu0 %vm380_vm0, %v3426_v41  ;;  %v3928_v47 = vadd.f32 %v3852_v39, %v3653_v1 }
 0x74b   : > { %7318 = vmatmul.msk.f32.gmra.mxu1 %vm380_vm0, %v3701_v23  ;;  %v4305_v35 = vmax.f32 %v4273_v18, 0.0 }
 0x74c   : > { %v4124_v45 = vpop.f32.mrf.mxu2  ;;  %v4404_v42 = vld [vmem:[#allocation3 + $0x69] sm:$0xff] }
 0x74d   : > { %4338 = vst.msk [vmem:[#allocation3 + $0x79] sm:$0xff] %vm426_vm4, %v4305_v35  ;;  %v4202_v58 = vadd.f32 %v4124_v45, %v3927_v28  ;;  %7368 = vmatmul.msk.f32.gmra.mxu3 %vm426_vm4, %v4404_v42  ;;  %v3977_v42 = vld [vmem:[#allocation2 + $0x172] sm:$0xff] }
 0x74e   : > { %v9782_v29 = vpop.f32.mrf.mxu3 }
 0x74f   : > { %v4238_v34 = vmul.f32 %v9637_v49, %v4202_v58  ;;  %v3580_v59 = vpop.f32.mrf.mxu0 }
 0x750   : > { %v3855_v0 = vpop.f32.mrf.mxu1  ;;  %v3654_v23 = vadd.f32 %v3580_v59, %v3378_v50  ;;  %v11263_v59 = vld [vmem:[#allocation31_spill] sm:$0xff] }
 0x751   : > { %v4274_v30 = vadd.f32 %v9647_v63, %v4238_v34  ;;  %7351 = vmatmul.msk.f32.gmra.mxu2 %vm380_vm0, %v3976_v17  ;;  %v3379_v17 = vadd.f32 %v9525_v52, %v11263_v59  ;;  %v3381_v59 = vadd.f32 %v9568_v53, %v9354_v6 }
 0x752   : > { %7286 = vmatmul.msk.f32.gmra.mxu0 %vm380_vm0, %v3427_v13  ;;  %v3929_v15 = vadd.f32 %v3855_v0, %v3654_v23 }
 0x753   : > { %7319 = vmatmul.msk.f32.gmra.mxu1 %vm380_vm0, %v3702_v46  ;;  %v4306_v43 = vmax.f32 %v4274_v30, 0.0 }
 0x754   : > { %v4127_v37 = vpop.f32.mrf.mxu2  ;;  %v4405_v24 = vld [vmem:[#allocation3 + $0x79] sm:$0xff] }
 0x755   : > { %4339 = vst.msk [vmem:[#allocation3 + $0x81] sm:$0xff] %vm426_vm4, %v4306_v43  ;;  %v4203_v18 = vadd.f32 %v4127_v37, %v3928_v47  ;;  %7369 = vmatmul.msk.f32.gmra.mxu3 %vm426_vm4, %v4405_v24  ;;  %v3429_v24 = vld [vmem:[#allocation2 + $0x188] sm:$0xff] }
 0x756   : > { %v9793_v41 = vpop.f32.mrf.mxu3 }
 0x757   : > { %v4239_v28 = vmul.f32 %v9637_v49, %v4203_v18  ;;  %v3583_v35 = vpop.f32.mrf.mxu0 }
 0x758   : > { %v3858_v45 = vpop.f32.mrf.mxu1  ;;  %v3655_v46 = vadd.f32 %v3583_v35, %v3379_v17 }
 0x759   : > { %v4275_v39 = vadd.f32 %v9647_v63, %v4239_v28  ;;  %7352 = vmatmul.msk.f32.gmra.mxu2 %vm380_vm0, %v3977_v42  ;;  %v3380_v28 = vadd.f32 %v9542_v62, %v9340_v11 }
 0x75a   : > { %7287 = vmatmul.msk.f32.gmra.mxu0 %vm380_vm0, %v3428_v36  ;;  %v3930_v52 = vadd.f32 %v3858_v45, %v3655_v46 }
 0x75b   : > { %7320 = vmatmul.msk.f32.gmra.mxu1 %vm380_vm0, %v3703_v5  ;;  %v4307_v58 = vmax.f32 %v4275_v39, 0.0  ;;  %v3430_v5 = vld [vmem:[#allocation2 + $0x198] sm:$0xff] }
 0x75c   : > { %v4130_v1 = vpop.f32.mrf.mxu2  ;;  %v4406_v34 = vld [vmem:[#allocation3 + $0x81] sm:$0xff] }
 0x75d   : > { %4340 = vst.msk [vmem:[#allocation3 + $0x91] sm:$0xff] %vm426_vm4, %v4307_v58  ;;  %v4204_v30 = vadd.f32 %v4130_v1, %v3929_v15  ;;  %7370 = vmatmul.msk.f32.gmra.mxu3 %vm426_vm4, %v4406_v34  ;;  %v3705_v15 = vld [vmem:[#allocation2 + $0x199] sm:$0xff] }
 0x75e   : > { %v9804_v13 = vpop.f32.mrf.mxu3 }
 0x75f   : > { %v4240_v47 = vmul.f32 %v9637_v49, %v4204_v30  ;;  %v3586_v43 = vpop.f32.mrf.mxu0  ;;  %v3980_v30 = vld [vmem:[#allocation2 + $0x19a] sm:$0xff] }
 0x760   : > { %v3861_v37 = vpop.f32.mrf.mxu1  ;;  %v3656_v42 = vadd.f32 %v3586_v43, %v3380_v28  ;;  %v3981_v28 = vld [vmem:[#allocation2 + $0x1a2] sm:$0xff] }
 0x761   : > { %v4276_v0 = vadd.f32 %v9647_v63, %v4240_v47  ;;  %7353 = vmatmul.msk.f32.gmra.mxu2 %vm380_vm0, %v9546_v2 }
 0x762   : > { %7288 = vmatmul.msk.f32.gmra.mxu0 %vm380_vm0, %v3429_v24  ;;  %v3931_v11 = vadd.f32 %v3861_v37, %v3656_v42  ;;  %v3706_v24 = vld [vmem:[#allocation2 + $0x1a1] sm:$0xff] }
 0x763   : > { %7321 = vmatmul.msk.f32.gmra.mxu1 %vm380_vm0, %v3704_v19  ;;  %v4308_v50 = vmax.f32 %v4276_v0, 0.0  ;;  %v3431_v0 = vld [vmem:[#allocation2 + $0x1a0] sm:$0xff] }
 0x764   : > { %v4133_v18 = vpop.f32.mrf.mxu2  ;;  %v4407_v23 = vld [vmem:[#allocation3 + $0x91] sm:$0xff] }
 0x765   : > { %4341 = vst.msk [vmem:[#allocation3 + $0x99] sm:$0xff] %vm426_vm4, %v4308_v50  ;;  %v4205_v35 = vadd.f32 %v4133_v18, %v3930_v52  ;;  %7371 = vmatmul.msk.f32.gmra.mxu3 %vm426_vm4, %v4407_v23  ;;  %v3382_v18 = vadd.f32 %v9592_v12, %v9365_v48 }
 0x766   : > { %v9817_v58 = vpop.f32.mrf.mxu3 }
 0x767   : > { %v4241_v39 = vmul.f32 %v9637_v49, %v4205_v35  ;;  %v3589_v2 = vpop.f32.mrf.mxu0 }
 0x768   : > { %v3864_v36 = vpop.f32.mrf.mxu1  ;;  %v3657_v46 = vadd.f32 %v3589_v2, %v3381_v59 }
 0x769   : > { %v4277_v45 = vadd.f32 %v9647_v63, %v4241_v39  ;;  %7354 = vmatmul.msk.f32.gmra.mxu2 %vm380_vm0, %v9575_v4 }
 0x76a   : > { %7289 = vmatmul.msk.f32.gmra.mxu0 %vm380_vm0, %v3430_v5  ;;  %v3932_v6 = vadd.f32 %v3864_v36, %v3657_v46  ;;  %v4362_v5 = vld [vmem:[#allocation3] sm:$0xff] }
 0x76b   : > { %7322 = vmatmul.msk.f32.gmra.mxu1 %vm380_vm0, %v3705_v15  ;;  %v4309_v62 = vmax.f32 %v4277_v45, 0.0  ;;  %v4854_v15 = vld [vmem:[#allocation3 + $0x2] sm:$0xff] }
 0x76c   : > { %v4136_v1 = vpop.f32.mrf.mxu2  ;;  %v4408_v34 = vld [vmem:[#allocation3 + $0x99] sm:$0xff] }
 0x76d   : > { %4342 = vst.msk [vmem:[#allocation3 + $0xa9] sm:$0xff] %vm426_vm4, %v4309_v62  ;;  %v4206_v17 = vadd.f32 %v4136_v1, %v3931_v11  ;;  %7372 = vmatmul.msk.f32.gmra.mxu3 %vm426_vm4, %v4408_v34  ;;  %v3383_v1 = vadd.f32 %v9617_v9, %v9378_v7 }
 0x76e   : > { %v9831_v19 = vpop.f32.mrf.mxu3 }
 0x76f   : > { %v4242_v4 = vmul.f32 %v9637_v49, %v4206_v17  ;;  %v3592_v47 = vpop.f32.mrf.mxu0 }
 0x770   : > { %v3867_v43 = vpop.f32.mrf.mxu1  ;;  %v3658_v35 = vadd.f32 %v3592_v47, %v3382_v18  ;;  %v4855_v47 = vld [vmem:[#allocation3 + $0xa] sm:$0xff] }
 0x771   : > { %v4278_v37 = vadd.f32 %v9647_v63, %v4242_v4  ;;  %7355 = vmatmul.msk.f32.gmra.mxu2 %vm380_vm0, %v3980_v30  ;;  %v4363_v4 = vld [vmem:[#allocation3 + $0x8] sm:$0xff] }
 0x772   : > { %7290 = vmatmul.msk.f32.gmra.mxu0 %vm380_vm0, %v3431_v0  ;;  %v3933_v48 = vadd.f32 %v3867_v43, %v3658_v35  ;;  %v5132_v43 = vld [vmem:[#allocation3 + $0x18] sm:$0xff]  ;;  %v5133_v35 = vld [vmem:[#allocation3 + $0x20] sm:$0xff] }
 0x773   : > { %7323 = vmatmul.msk.f32.gmra.mxu1 %vm380_vm0, %v3706_v24  ;;  %v4310_v53 = vmax.f32 %v4278_v37, 0.0 }
 0x774   : > { %v4139_v52 = vpop.f32.mrf.mxu2  ;;  %v4409_v50 = vld [vmem:[#allocation3 + $0xa9] sm:$0xff] }
 0x775   : > { %4343 = vst.msk [vmem:[#allocation3 + $0xb1] sm:$0xff] %vm426_vm4, %v4310_v53  ;;  %v4207_v23 = vadd.f32 %v4139_v52, %v3932_v6  ;;  %7373 = vmatmul.msk.f32.gmra.mxu3 %vm426_vm4, %v4409_v50  ;;  %v3384_v53 = vadd.f32 %v9651_v54, %v9391_v51 }
 0x776   : > { %v9844_v45 = vpop.f32.mrf.mxu3 }
 0x777   : > { %v4243_v42 = vmul.f32 %v9637_v49, %v4207_v23  ;;  %v3595_v39 = vpop.f32.mrf.mxu0 }
 0x778   : > { %v3870_v2 = vpop.f32.mrf.mxu1  ;;  %v3659_v59 = vadd.f32 %v3595_v39, %v3383_v1  ;;  %v4856_v39 = vld [vmem:[#allocation3 + $0x1a] sm:$0xff] }
 0x779   : > { %v4279_v36 = vadd.f32 %v9647_v63, %v4243_v42  ;;  %7356 = vmatmul.msk.f32.gmra.mxu2 %vm380_vm0, %v3981_v28 }
 0x77a   : > { %7392 = vmatmul.msk.f32.vlgmr.msra.gmra.mxu0 %vm426_vm4, %v4362_v5  ;;  %v3934_v7 = vadd.f32 %v3870_v2, %v3659_v59 }
 0x77b   : > { %7426 = vmatmul.msk.f32.vlgmr.msrb.gmra.mxu1 %vm426_vm4, %v4854_v15  ;;  %v4311_v12 = vmax.f32 %v4279_v36, 0.0  ;;  %v3385_v15 = vadd.f32 %v9675_v26, %v9404_v20 }
 0x77c   : > { %v4142_v11 = vpop.f32.mrf.mxu2  ;;  %v4410_v62 = vld [vmem:[#allocation3 + $0xb1] sm:$0xff] }
 0x77d   : > { %4344 = vst.msk [vmem:[#allocation3 + $0xc1] sm:$0xff] %vm426_vm4, %v4311_v12  ;;  %v4208_v34 = vadd.f32 %v4142_v11, %v3933_v48  ;;  %7374 = vmatmul.msk.f32.gmra.mxu3 %vm426_vm4, %v4410_v62 }
 0x77e   : > { %v9855_v6 = vpop.f32.mrf.mxu3 }
 0x77f   : > { %v4244_v17 = vmul.f32 %v9637_v49, %v4208_v34  ;;  %v3598_v30 = vpop.f32.mrf.mxu0  ;;  %v9873_v34 = vld [vmem:[#allocation3 + $0x30] sm:$0xff] }
 0x780   : > { %v3873_v46 = vpop.f32.mrf.mxu1  ;;  %v3660_v50 = vadd.f32 %v3598_v30, %v3384_v53 }
 0x781   : > { %v4280_v0 = vadd.f32 %v9647_v63, %v4244_v17  ;;  %7460 = vmatmul.msk.f32.vlgmr.msra.gmra.mxu2 %vm426_vm4, %v5132_v43  ;;  %v9876_v17 = vld [vmem:[#allocation3 + $0x22] sm:$0xff] }
 0x782   : > { %7393 = vmatmul.msk.f32.gmra.mxu0 %vm426_vm4, %v4363_v4  ;;  %v3935_v51 = vadd.f32 %v3873_v46, %v3660_v50  ;;  %v3386_v4 = vadd.f32 %v9701_v32, %v9417_v33 }
 0x783   : > { %7427 = vmatmul.msk.f32.gmra.mxu1 %vm426_vm4, %v4855_v47  ;;  %v4312_v9 = vmax.f32 %v4280_v0, 0.0 }
 0x784   : > { %v4145_v24 = vpop.f32.mrf.mxu2  ;;  %v4411_v37 = vld [vmem:[#allocation3 + $0xc1] sm:$0xff] }
 0x785   : > { %4345 = vst.msk [vmem:[#allocation3 + $0xc9] sm:$0xff] %vm426_vm4, %v4312_v9  ;;  %v4209_v52 = vadd.f32 %v4145_v24, %v3934_v7  ;;  %7375 = vmatmul.msk.f32.gmra.mxu3 %vm426_vm4, %v4411_v37  ;;  %v9893_v37 = vld [vmem:[#allocation3 + $0x38] sm:$0xff] }
 0x786   : > { %v9870_v48 = vpop.f32.mrf.mxu3 }
 0x787   : > { %v4245_v18 = vmul.f32 %v9637_v49, %v4209_v52  ;;  %v3601_v23 = vpop.f32.mrf.mxu0  ;;  %v9896_v52 = vld [vmem:[#allocation3 + $0x32] sm:$0xff] }
 0x788   : > { %v3876_v28 = vpop.f32.mrf.mxu1  ;;  %v3661_v12 = vadd.f32 %v3601_v23, %v3385_v15  ;;  %v3387_v23 = vadd.f32 %v9716_v3, %v9430_v16  ;;  %v9917_v15 = vld [vmem:[#allocation3 + $0x3a] sm:$0xff] }
 0x789   : > { %v4281_v42 = vadd.f32 %v9647_v63, %v4245_v18  ;;  %7461 = vmatmul.msk.f32.gmra.mxu2 %vm426_vm4, %v5133_v35 }
 0x78a   : > { %7394 = vmatmul.msk.f32.gmra.mxu0 %vm426_vm4, %v5132_v43  ;;  %v3936_v20 = vadd.f32 %v3876_v28, %v3661_v12 }
 0x78b   : > { %7428 = vmatmul.msk.f32.gmra.mxu1 %vm426_vm4, %v4856_v39  ;;  %v4313_v54 = vmax.f32 %v4281_v42, 0.0 }
 0x78c   : > { %v4148_v2 = vpop.f32.mrf.mxu2  ;;  %v4412_v5 = vld [vmem:[#allocation3 + $0xc9] sm:$0xff] }
 0x78d   : > { %4346 = vst.msk [vmem:[#allocation3 + $0xd9] sm:$0xff] %vm426_vm4, %v4313_v54  ;;  %v4210_v36 = vadd.f32 %v4148_v2, %v3935_v51  ;;  %7376 = vmatmul.msk.f32.gmra.mxu3 %vm426_vm4, %v4412_v5  ;;  %v9914_v2 = vld [vmem:[#allocation3 + $0x48] sm:$0xff] }
 0x78f   : > { %v4246_v11 = vmul.f32 %v9637_v49, %v4210_v36  ;;  %v3604_v62 = vpop.f32.mrf.mxu0 }
 0x790   : > { %v3879_v1 = vpop.f32.mrf.mxu1  ;;  %v3662_v43 = vadd.f32 %v3604_v62, %v3386_v4  ;;  %v9935_v4 = vld [vmem:[#allocation3 + $0x50] sm:$0xff] }
 0x791   : > { %v4282_v59 = vadd.f32 %v9647_v63, %v4246_v11  ;;  %7462 = vmatmul.msk.f32.gmra.mxu2 %vm426_vm4, %v9873_v34  ;;  %v3388_v11 = vadd.f32 %v9727_v27, %v9443_v8 }
 0x792   : > { %7395 = vmatmul.msk.f32.gmra.mxu0 %vm426_vm4, %v5133_v35  ;;  %v3937_v33 = vadd.f32 %v3879_v1, %v3662_v43  ;;  %v9938_v43 = vld [vmem:[#allocation3 + $0x4a] sm:$0xff] }
 0x793   : > { %7429 = vmatmul.msk.f32.gmra.mxu1 %vm426_vm4, %v9876_v17  ;;  %v4314_v26 = vmax.f32 %v4282_v59, 0.0 }
 0x794   : > { %v4151_v30 = vpop.f32.mrf.mxu2  ;;  %v9883_v46 = vld [vmem:[#allocation3 + $0xd9] sm:$0xff] }
 0x795   : > { %4347 = vst.msk [vmem:[#allocation3 + $0xe1] sm:$0xff] %vm426_vm4, %v4314_v26  ;;  %v4211_v47 = vadd.f32 %v4151_v30, %v3936_v20  ;;  %7377 = vmatmul.msk.f32.gmra.mxu3 %vm426_vm4, %v9883_v46 }
 0x797   : > { %v4247_v0 = vmul.f32 %v9637_v49, %v4211_v47  ;;  %v3607_v7 = vpop.f32.mrf.mxu0 }
 0x798   : > { %v3882_v9 = vpop.f32.mrf.mxu1  ;;  %v9891_v24 = vpop.f32.mrf.mxu3  ;;  %v3663_v35 = vadd.f32 %v3607_v7, %v3387_v23 }
 0x799   : > { %v4283_v53 = vadd.f32 %v9647_v63, %v4247_v0  ;;  %7463 = vmatmul.msk.f32.gmra.mxu2 %vm426_vm4, %v9893_v37 }
 0x79a   : > { %7396 = vmatmul.msk.f32.gmra.mxu0 %vm426_vm4, %v9873_v34  ;;  %v3938_v16 = vadd.f32 %v3882_v9, %v3663_v35  ;;  %v3389_v9 = vadd.f32 %v9738_v21, %v9456_v55  ;;  %v9956_v35 = vld [vmem:[#allocation3 + $0x60] sm:$0xff] }
 0x79b   : > { %7430 = vmatmul.msk.f32.gmra.mxu1 %vm426_vm4, %v9896_v52  ;;  %v4315_v32 = vmax.f32 %v4283_v53, 0.0 }
 0x79c   : > { %v4154_v50 = vpop.f32.mrf.mxu2  ;;  %v9904_v18 = vld [vmem:[#allocation3 + $0xe1] sm:$0xff] }
 0x79d   : > { %4348 = vst.msk [vmem:[#allocation3 + $0xf1] sm:$0xff] %vm426_vm4, %v4315_v32  ;;  %v4212_v28 = vadd.f32 %v4154_v50, %v3937_v33  ;;  %7378 = vmatmul.msk.f32.gmra.mxu3 %vm426_vm4, %v9904_v18 }
 0x79f   : > { %v4248_v42 = vmul.f32 %v9637_v49, %v4212_v28  ;;  %v3610_v39 = vpop.f32.mrf.mxu0 }
 0x7a0   : > { %v3885_v51 = vpop.f32.mrf.mxu1  ;;  %v9912_v54 = vpop.f32.mrf.mxu3  ;;  %v3664_v1 = vadd.f32 %v3610_v39, %v3388_v11  ;;  %v9959_v39 = vld [vmem:[#allocation3 + $0x52] sm:$0xff] }
 0x7a1   : > { %v4284_v5 = vadd.f32 %v9647_v63, %v4248_v42  ;;  %7464 = vmatmul.msk.f32.gmra.mxu2 %vm426_vm4, %v9914_v2 }
 0x7a2   : > { %7397 = vmatmul.msk.f32.gmra.mxu0 %vm426_vm4, %v9893_v37  ;;  %v3939_v8 = vadd.f32 %v3885_v51, %v3664_v1 }
 0x7a3   : > { %7431 = vmatmul.msk.f32.gmra.mxu1 %vm426_vm4, %v9917_v15  ;;  %v4316_v3 = vmax.f32 %v4284_v5, 0.0 }
 0x7a4   : > { %v4157_v36 = vpop.f32.mrf.mxu2  ;;  %v9925_v12 = vld [vmem:[#allocation3 + $0xf1] sm:$0xff] }
 0x7a5   : > { %4349 = vst.msk [vmem:[#allocation3 + $0xf9] sm:$0xff] %vm426_vm4, %v4316_v3  ;;  %v4213_v62 = vadd.f32 %v4157_v36, %v3938_v16  ;;  %7379 = vmatmul.msk.f32.gmra.mxu3 %vm426_vm4, %v9925_v12  ;;  %v3390_v16 = vadd.f32 %v9749_v61, %v9469_v40 }
 0x7a7   : > { %v4249_v59 = vmul.f32 %v9637_v49, %v4213_v62  ;;  %v3613_v20 = vpop.f32.mrf.mxu0 }
 0x7a8   : > { %v3888_v26 = vpop.f32.mrf.mxu1  ;;  %v9933_v30 = vpop.f32.mrf.mxu3  ;;  %v3665_v33 = vadd.f32 %v3613_v20, %v3389_v9  ;;  %v9977_v20 = vld [vmem:[#allocation3 + $0x68] sm:$0xff] }
 0x7a9   : > { %v4285_v47 = vadd.f32 %v9647_v63, %v4249_v59  ;;  %7465 = vmatmul.msk.f32.gmra.mxu2 %vm426_vm4, %v9935_v4 }
 0x7aa   : > { %7398 = vmatmul.msk.f32.gmra.mxu0 %vm426_vm4, %v9914_v2  ;;  %v3940_v55 = vadd.f32 %v3888_v26, %v3665_v33 }
 0x7ab   : > { %7432 = vmatmul.msk.f32.gmra.mxu1 %vm426_vm4, %v9938_v43  ;;  %v4317_v27 = vmax.f32 %v4285_v47, 0.0  ;;  %v9980_v47 = vld [vmem:[#allocation3 + $0x62] sm:$0xff] }
 0x7ac   : > { %v4160_v0 = vpop.f32.mrf.mxu2  ;;  %v9946_v7 = vld [vmem:[#allocation3 + $0xf9] sm:$0xff] }
 0x7ad   : > { %4350 = vst.msk [vmem:[#allocation3 + $0x109] sm:$0xff] %vm426_vm4, %v4317_v27  ;;  %v4214_v53 = vadd.f32 %v4160_v0, %v3939_v8  ;;  %7380 = vmatmul.msk.f32.gmra.mxu3 %vm426_vm4, %v9946_v7  ;;  %v3391_v0 = vadd.f32 %v9760_v14, %v9482_v22 }
 0x7af   : > { %v4250_v32 = vmul.f32 %v9637_v49, %v4214_v53  ;;  %v3616_v50 = vpop.f32.mrf.mxu0 }
 0x7b0   : > { %v3891_v23 = vpop.f32.mrf.mxu1  ;;  %v9954_v28 = vpop.f32.mrf.mxu3  ;;  %v3666_v36 = vadd.f32 %v3616_v50, %v3390_v16 }
 0x7b1   : > { %v4286_v42 = vadd.f32 %v9647_v63, %v4250_v32  ;;  %7466 = vmatmul.msk.f32.gmra.mxu2 %vm426_vm4, %v9956_v35 }
 0x7b2   : > { %7399 = vmatmul.msk.f32.gmra.mxu0 %vm426_vm4, %v9935_v4  ;;  %v3941_v40 = vadd.f32 %v3891_v23, %v3666_v36  ;;  %v9998_v23 = vld [vmem:[#allocation3 + $0x78] sm:$0xff] }
 0x7b3   : > { %7433 = vmatmul.msk.f32.gmra.mxu1 %vm426_vm4, %v9959_v39  ;;  %v4318_v21 = vmax.f32 %v4286_v42, 0.0 }
 0x7b4   : > { %v4163_v51 = vpop.f32.mrf.mxu2  ;;  %v9967_v5 = vld [vmem:[#allocation3 + $0x109] sm:$0xff] }
 0x7b5   : > { %4351 = vst.msk [vmem:[#allocation3 + $0x111] sm:$0xff] %vm426_vm4, %v4318_v21  ;;  %v4215_v3 = vadd.f32 %v4163_v51, %v3940_v55  ;;  %7381 = vmatmul.msk.f32.gmra.mxu3 %vm426_vm4, %v9967_v5  ;;  %v10001_v21 = vld [vmem:[#allocation3 + $0x6a] sm:$0xff] }
 0x7b7   : > { %v4251_v11 = vmul.f32 %v9637_v49, %v4215_v3  ;;  %v3619_v62 = vpop.f32.mrf.mxu0  ;;  %v3392_v3 = vadd.f32 %v9770_v57, %v9495_v10 }
 0x7b8   : > { %v3894_v1 = vpop.f32.mrf.mxu1  ;;  %v9975_v59 = vpop.f32.mrf.mxu3  ;;  %v3667_v53 = vadd.f32 %v3619_v62, %v3391_v0  ;;  %v10022_v0 = vld [vmem:[#allocation3 + $0x7a] sm:$0xff] }
 0x7b9   : > { %v4287_v26 = vadd.f32 %v9647_v63, %v4251_v11  ;;  %7467 = vmatmul.msk.f32.gmra.mxu2 %vm426_vm4, %v9977_v20  ;;  %11264 = vst [vmem:[#allocation23_spill] sm:$0xff] %v10022_v0 }
 0x7ba   : > { %7400 = vmatmul.msk.f32.gmra.mxu0 %vm426_vm4, %v9956_v35  ;;  %v3942_v22 = vadd.f32 %v3894_v1, %v3667_v53  ;;  %v10019_v1 = vld [vmem:[#allocation3 + $0x80] sm:$0xff] }
 0x7bb   : > { %7434 = vmatmul.msk.f32.gmra.mxu1 %vm426_vm4, %v9980_v47  ;;  %v4319_v61 = vmax.f32 %v4287_v26, 0.0 }
 0x7bc   : > { %v4166_v8 = vpop.f32.mrf.mxu2  ;;  %v9988_v27 = vld [vmem:[#allocation3 + $0x111] sm:$0xff] }
 0x7bd   : > { %4352 = vst.msk [vmem:[#allocation3 + $0x121] sm:$0xff] %vm426_vm4, %v4319_v61  ;;  %v4216_v9 = vadd.f32 %v4166_v8, %v3941_v40  ;;  %7382 = vmatmul.msk.f32.gmra.mxu3 %vm426_vm4, %v9988_v27 }
 0x7bf   : > { %v4252_v33 = vmul.f32 %v9637_v49, %v4216_v9  ;;  %v3622_v32 = vpop.f32.mrf.mxu0 }
 0x7c0   : > { %v3897_v50 = vpop.f32.mrf.mxu1  ;;  %v9996_v42 = vpop.f32.mrf.mxu3  ;;  %v3668_v11 = vadd.f32 %v3622_v32, %v3392_v3 }
 0x7c1   : > { %v4288_v55 = vadd.f32 %v9647_v63, %v4252_v33  ;;  %7468 = vmatmul.msk.f32.gmra.mxu2 %vm426_vm4, %v9998_v23  ;;  %v3393_v33 = vadd.f32 %v9782_v29, %v9508_v38 }
 0x7c2   : > { %7401 = vmatmul.msk.f32.gmra.mxu0 %vm426_vm4, %v9977_v20  ;;  %v3943_v10 = vadd.f32 %v3897_v50, %v3668_v11  ;;  %v10040_v50 = vld [vmem:[#allocation3 + $0x90] sm:$0xff]  ;;  %v10043_v11 = vld [vmem:[#allocation3 + $0x82] sm:$0xff] }
 0x7c3   : > { %7435 = vmatmul.msk.f32.gmra.mxu1 %vm426_vm4, %v10001_v21  ;;  %v4320_v14 = vmax.f32 %v4288_v55, 0.0  ;;  %11266 = vst [vmem:[#allocation36_spill] sm:$0xff] %v10040_v50 }
 0x7c4   : > { %v4169_v51 = vpop.f32.mrf.mxu2  ;;  %v10009_v16 = vld [vmem:[#allocation3 + $0x121] sm:$0xff]  ;;  %11267 = vst [vmem:[#allocation26_spill] sm:$0xff] %v10043_v11 }
 0x7c5   : > { %4353 = vst.msk [vmem:[#allocation3 + $0x129] sm:$0xff] %vm426_vm4, %v4320_v14  ;;  %v4217_v36 = vadd.f32 %v4169_v51, %v3942_v22  ;;  %7383 = vmatmul.msk.f32.gmra.mxu3 %vm426_vm4, %v10009_v16 }
 0x7c7   : > { %v4253_v62 = vmul.f32 %v9637_v49, %v4217_v36  ;;  %v3625_v26 = vpop.f32.mrf.mxu0 }
 0x7c8   : > { %v3900_v40 = vpop.f32.mrf.mxu1  ;;  %v10017_v61 = vpop.f32.mrf.mxu3  ;;  %v3669_v55 = vadd.f32 %v3625_v26, %v3393_v33  ;;  %v3394_v26 = vadd.f32 %v9793_v41, %v9521_v44  ;;  %v10071_v44 = vld [vmem:[%s11070_s6] ss:$0 sm:$0xff] }
 0x7c9   : > { %v4289_v8 = vadd.f32 %v9647_v63, %v4253_v62  ;;  %7469 = vmatmul.msk.f32.gmra.mxu2 %vm426_vm4, %v10019_v1 }
 0x7ca   : > { %7402 = vmatmul.msk.f32.gmra.mxu0 %vm426_vm4, %v9998_v23  ;;  %v3944_v38 = vadd.f32 %v3900_v40, %v3669_v55  ;;  %v10074_v55 = vld [vmem:[#allocation3 + $0x92] sm:$0xff] }
 0x7cb   : > { %7436 = vmatmul.msk.f32.gmra.mxu1 %vm426_vm4, %v10022_v0  ;;  %v4321_v57 = vmax.f32 %v4289_v8, 0.0  ;;  %11270 = vst [vmem:[#allocation32_spill] sm:$0xff] %v10074_v55 }
 0x7cc   : > { %v4172_v9 = vpop.f32.mrf.mxu2  ;;  %v10030_v53 = vld [vmem:[#allocation3 + $0x129] sm:$0xff] }
 0x7cd   : > { %11265 = vst [vmem:[#allocation5_spill] sm:$0xff] %v10030_v53  ;;  %v4218_v32 = vadd.f32 %v4172_v9, %v3943_v10  ;;  %7384 = vmatmul.msk.f32.gmra.mxu3 %vm426_vm4, %v10030_v53  ;;  %v10061_v10 = vld [vmem:[%s11069_s5] ss:$0 sm:$0xff] }
 0x7ce   : > { %4354 = vst.msk [vmem:[#allocation3 + $0x139] sm:$0xff] %vm426_vm4, %v4321_v57 }
 0x7cf   : > { %v4254_v22 = vmul.f32 %v9637_v49, %v4218_v32  ;;  %v3628_v14 = vpop.f32.mrf.mxu0  ;;  %v10066_v32 = vld [vmem:[#allocation3 + $0x98] sm:$0xff] }
 0x7d0   : > { %v3903_v51 = vpop.f32.mrf.mxu1  ;;  %v10038_v3 = vpop.f32.mrf.mxu3  ;;  %v3670_v8 = vadd.f32 %v3628_v14, %v3394_v26  ;;  %11269 = vst [vmem:[#allocation8_spill] sm:$0xff] %v10066_v32 }
 0x7d1   : > { %v4290_v36 = vadd.f32 %v9647_v63, %v4254_v22  ;;  %7470 = vmatmul.msk.f32.gmra.mxu2 %vm426_vm4, %v10040_v50 }
 0x7d2   : > { %7403 = vmatmul.msk.f32.gmra.mxu0 %vm426_vm4, %v10019_v1  ;;  %v3945_v22 = vadd.f32 %v3903_v51, %v3670_v8  ;;  %v10092_v51 = vld [vmem:[#allocation3 + $0xa8] sm:$0xff] }
 0x7d3   : > { %7437 = vmatmul.msk.f32.gmra.mxu1 %vm426_vm4, %v10043_v11  ;;  %v4322_v49 = vmax.f32 %v4290_v36, 0.0  ;;  %11272 = vst [vmem:[#allocation6_spill] sm:$0xff] %v10092_v51  ;;  %v10301_v11 = vld [vmem:[#allocation3 + $0x120] sm:$0xff] }
 0x7d4   : > { %v4175_v29 = vpop.f32.mrf.mxu2  ;;  %11296 = vst [vmem:[#allocation40_spill] sm:$0xff] %v10301_v11 }
 0x7d5   : > { %v10051_v62 = vld [vmem:[#allocation3 + $0x139] sm:$0xff]  ;;  %4355 = vst.msk [vmem:[#allocation3 + $0x141] sm:$0xff] %vm426_vm4, %v4322_v49  ;;  %v4219_v63 = vadd.f32 %v4175_v29, %v3944_v38  ;;  %v3395_v49 = vadd.f32 %v9804_v13, %v9538_v60 }
 0x7d6   : > { %11268 = vst [vmem:[#allocation27_spill] sm:$0xff] %v10051_v62  ;;  %7385 = vmatmul.msk.f32.gmra.mxu3 %vm426_vm4, %v10051_v62 }
 0x7d7   : > { %v4255_v40 = vmul.f32 %v10061_v10, %v4219_v63  ;;  %v3631_v57 = vpop.f32.mrf.mxu0 }
 0x7d8   : > { %v3906_v9 = vpop.f32.mrf.mxu1  ;;  %v10064_v33 = vpop.f32.mrf.mxu3  ;;  %v3671_v26 = vadd.f32 %v3631_v57, %v3395_v49  ;;  %v7594_v49 = vld [vmem:[%s11071_s7 + $0x1c] sm:$0xf] }
 0x7d9   : > { %v4291_v41 = vadd.f32 %v10071_v44, %v4255_v40  ;;  %7471 = vmatmul.msk.f32.gmra.mxu2 %vm426_vm4, %v10066_v32 }
 0x7da   : > { %7404 = vmatmul.msk.f32.gmra.mxu0 %vm426_vm4, %v10040_v50  ;;  %v3946_v60 = vadd.f32 %v3906_v9, %v3671_v26  ;;  %v7526_v9 = vld [vmem:[%s11071_s7 + $0x14] sm:$0xf]  ;;  %7595 = vmatpush.msk.msrb.mxu2 %vm4525_vm8, %v7594_v49  ;;  %v10320_v50 = vld [vmem:[#allocation3 + $0x128] sm:$0xff] }
 0x7db   : > { %7438 = vmatmul.msk.f32.gmra.mxu1 %vm426_vm4, %v10074_v55  ;;  %v4323_v14 = vmax.f32 %v4291_v41, 0.0  ;;  %v10095_v41 = vld [vmem:[#allocation3 + $0x9a] sm:$0xff]  ;;  %7527 = vmatpush.msk.msrb.mxu0 %vm4525_vm8, %v7526_v9  ;;  %11299 = vst [vmem:[#allocation43_spill] sm:$0xff] %v10320_v50 }
 0x7dc   : > { %v4178_v36 = vpop.f32.mrf.mxu2  ;;  %v10082_v38 = vld [vmem:[#allocation3 + $0x141] sm:$0xff]  ;;  %11273 = vst [vmem:[#allocation38_spill] sm:$0xff] %v10095_v41 }
 0x7dd   : > { %11271 = vst [vmem:[#allocation33_spill] sm:$0xff] %v10082_v38  ;;  %v4220_v29 = vadd.f32 %v4178_v36, %v3945_v22 }
 0x7de   : > { %4356 = vst.msk [vmem:[#allocation3 + $0x151] sm:$0xff] %vm426_vm4, %v4323_v14  ;;  %7386 = vmatmul.msk.f32.gmra.mxu3 %vm426_vm4, %v10082_v38  ;;  %v3396_v14 = vadd.f32 %v9817_v58, %v9555_v56  ;;  %v7628_v56 = vld [vmem:[%s11071_s7 + $0x20] sm:$0xf]  ;;  %v10153_v38 = vld [vmem:[#allocation3 + $0xb2] sm:$0xff] }
 0x7df   : > { %v4256_v63 = vmul.f32 %v10061_v10, %v4220_v29  ;;  %v3634_v40 = vpop.f32.mrf.mxu0  ;;  %7629 = vmatpush.msk.msrb.mxu3 %vm4525_vm8, %v7628_v56  ;;  %v3397_v56 = vadd.f32 %v9831_v19, %v9588_v31  ;;  %11279 = vst [vmem:[#allocation12_spill] sm:$0xff] %v10153_v38 }
 0x7e0   : > { %v3909_v62 = vpop.f32.mrf.mxu1  ;;  %v10090_v55 = vpop.f32.mrf.mxu3  ;;  %v3672_v58 = vadd.f32 %v3634_v40, %v3396_v14  ;;  %v7560_v40 = vld [vmem:[%s11071_s7 + $0x18] sm:$0xf] }
 0x7e1   : > { %v4292_v8 = vadd.f32 %v10071_v44, %v4256_v63  ;;  %7472 = vmatmul.msk.f32.gmra.mxu2 %vm426_vm4, %v10092_v51  ;;  %7561 = vmatpush.msk.msra.mxu1 %vm4525_vm8, %v7560_v40 }
 0x7e2   : > { %7405 = vmatmul.msk.f32.gmra.mxu0 %vm426_vm4, %v10066_v32  ;;  %v3947_v14 = vadd.f32 %v3909_v62, %v3672_v58 }
 0x7e3   : > { %7439 = vmatmul.msk.f32.gmra.mxu1 %vm426_vm4, %v10095_v41  ;;  %v4324_v13 = vmax.f32 %v4292_v8, 0.0 }
 0x7e4   : > { %v4181_v57 = vpop.f32.mrf.mxu2 }
 0x7e5   : > { %v10103_v22 = vld [vmem:[#allocation3 + $0x151] sm:$0xff]  ;;  %4357 = vst.msk [vmem:[#allocation3 + $0x159] sm:$0xff] %vm426_vm4, %v4324_v13  ;;  %v4221_v36 = vadd.f32 %v4181_v57, %v3946_v60 }
 0x7e6   : > { %11274 = vst [vmem:[#allocation7_spill] sm:$0xff] %v10103_v22  ;;  %7387 = vmatmul.msk.f32.gmra.mxu3 %vm426_vm4, %v10103_v22  ;;  %v10125_v60 = vld [vmem:[#allocation3 + $0xb0] sm:$0xff] }
 0x7e7   : > { %v4257_v29 = vmul.f32 %v10061_v10, %v4221_v36  ;;  %v3637_v26 = vpop.f32.mrf.mxu0  ;;  %11275 = vst [vmem:[#allocation42_spill] sm:$0xff] %v10125_v60  ;;  %v10128_v57 = vld [vmem:[#allocation3 + $0xaa] sm:$0xff] }
 0x7e8   : > { %v3912_v63 = vpop.f32.mrf.mxu1  ;;  %v10123_v8 = vpop.f32.mrf.mxu3  ;;  %11276 = vst [vmem:[#allocation9_spill] sm:$0xff] %v10128_v57 }
 0x7e9   : > { %v4293_v13 = vadd.f32 %v10071_v44, %v4257_v29  ;;  %7473 = vmatmul.msk.f32.gmra.mxu2 %vm426_vm4, %v10125_v60 }
 0x7ea   : > { %7406 = vmatmul.msk.f32.gmra.mxu0 %vm426_vm4, %v10092_v51  ;;  %v10282_v51 = vld [vmem:[#allocation3 + $0x110] sm:$0xff] }
 0x7eb   : > { %7440 = vmatmul.msk.f32.gmra.mxu1 %vm426_vm4, %v10128_v57  ;;  %v4325_v36 = vmax.f32 %v4293_v13, 0.0  ;;  %v3673_v57 = vadd.f32 %v3637_v26, %v3397_v56  ;;  %v10150_v13 = vld [vmem:[#allocation3 + $0xc0] sm:$0xff]  ;;  %11294 = vst [vmem:[#allocation30_spill] sm:$0xff] %v10282_v51 }
 0x7ec   : > { %v4184_v49 = vpop.f32.mrf.mxu2  ;;  %v10140_v9 = vld [vmem:[#allocation3 + $0x159] sm:$0xff]  ;;  %11278 = vst [vmem:[#allocation11_spill] sm:$0xff] %v10150_v13 }
 0x7ed   : > { %11277 = vst [vmem:[#allocation10_spill] sm:$0xff] %v10140_v9  ;;  %v4222_v29 = vadd.f32 %v4184_v49, %v3947_v14  ;;  %v3948_v31 = vadd.f32 %v3912_v63, %v3673_v57  ;;  %v10171_v63 = vld [vmem:[#allocation3 + $0xc8] sm:$0xff] }
 0x7ee   : > { %4358 = vst.msk [vmem:[#allocation3 + $0x169] sm:$0xff] %vm426_vm4, %v4325_v36  ;;  %7388 = vmatmul.msk.f32.gmra.mxu3 %vm426_vm4, %v10140_v9  ;;  %v3398_v36 = vadd.f32 %v9844_v45, %v9613_v25 }
 0x7ef   : > { %v4258_v22 = vmul.f32 %v10061_v10, %v4222_v29  ;;  %v3640_v41 = vpop.f32.mrf.mxu0  ;;  %11281 = vst [vmem:[#allocation14_spill] sm:$0xff] %v10171_v63 }
 0x7f0   : > { %v3915_v62 = vpop.f32.mrf.mxu1  ;;  %v10148_v58 = vpop.f32.mrf.mxu3  ;;  %v3674_v49 = vadd.f32 %v3640_v41, %v3398_v36 }
 0x7f1   : > { %v4294_v40 = vadd.f32 %v10071_v44, %v4258_v22  ;;  %7474 = vmatmul.msk.f32.gmra.mxu2 %vm426_vm4, %v10150_v13 }
 0x7f2   : > { %7407 = vmatmul.msk.f32.gmra.mxu0 %vm426_vm4, %v10125_v60  ;;  %v3949_v25 = vadd.f32 %v3915_v62, %v3674_v49  ;;  %v10194_v49 = vld [vmem:[#allocation3 + $0xca] sm:$0xff] }
 0x7f3   : > { %7441 = vmatmul.msk.f32.gmra.mxu1 %vm426_vm4, %v10153_v38  ;;  %v4326_v19 = vmax.f32 %v4294_v40, 0.0  ;;  %v10174_v40 = vld [vmem:[#allocation3 + $0xc2] sm:$0xff]  ;;  %11285 = vst [vmem:[#allocation18_spill] sm:$0xff] %v10194_v49 }
 0x7f4   : > { %v4187_v26 = vpop.f32.mrf.mxu2  ;;  %11282 = vst [vmem:[#allocation15_spill] sm:$0xff] %v10174_v40 }
 0x7f5   : > { %v10161_v14 = vld [vmem:[#allocation3 + $0x169] sm:$0xff]  ;;  %4359 = vst.msk [vmem:[#allocation3 + $0x171] sm:$0xff] %vm426_vm4, %v4326_v19  ;;  %v4223_v22 = vadd.f32 %v4187_v26, %v3948_v31 }
 0x7f6   : > { %11280 = vst [vmem:[#allocation13_spill] sm:$0xff] %v10161_v14  ;;  %7389 = vmatmul.msk.f32.gmra.mxu3 %vm426_vm4, %v10161_v14 }
 0x7f7   : > { %v4259_v56 = vmul.f32 %v10061_v10, %v4223_v22  ;;  %v4758_v29 = vpop.f32.mrf.mxu0 }
 0x7f8   : > { %v5004_v9 = vpop.f32.mrf.mxu1  ;;  %v10169_v38 = vpop.f32.mrf.mxu3  ;;  %v4759_v26 = vadd.f32 %v4758_v29, %v9855_v6 }
 0x7f9   : > { %v4295_v57 = vadd.f32 %v10071_v44, %v4259_v56  ;;  %7475 = vmatmul.msk.f32.gmra.mxu2 %vm426_vm4, %v10171_v63 }
 0x7fa   : > { %7408 = vmatmul.msk.f32.gmra.mxu0 %vm426_vm4, %v10150_v13  ;;  %v5100_v6 = vadd.f32 %v5004_v9, %v4759_v26  ;;  %v10263_v13 = vld [vmem:[#allocation3 + $0x108] sm:$0xff] }
 0x7fb   : > { %7442 = vmatmul.msk.f32.gmra.mxu1 %vm426_vm4, %v10174_v40  ;;  %v4327_v45 = vmax.f32 %v4295_v57, 0.0  ;;  %v10191_v40 = vld [vmem:[#allocation3 + $0xd8] sm:$0xff]  ;;  %11292 = vst [vmem:[#allocation34_spill] sm:$0xff] %v10263_v13 }
 0x7fc   : > { %v4190_v41 = vpop.f32.mrf.mxu2  ;;  %v10182_v31 = vld [vmem:[#allocation3 + $0x171] sm:$0xff]  ;;  %11284 = vst [vmem:[#allocation17_spill] sm:$0xff] %v10191_v40  ;;  %v5410_v57 = vld [vmem:[#allocation3 + $0x19] sm:$0xff] }
 0x7fd   : > { %11283 = vst [vmem:[#allocation16_spill] sm:$0xff] %v10182_v31  ;;  %v4224_v19 = vadd.f32 %v4190_v41, %v3949_v25 }
 0x7fe   : > { %4360 = vst.msk [vmem:[#allocation3 + $0x181] sm:$0xff] %vm426_vm4, %v4327_v45  ;;  %7390 = vmatmul.msk.f32.gmra.mxu3 %vm426_vm4, %v10182_v31  ;;  %v10211_v31 = vld [vmem:[#allocation3 + $0xda] sm:$0xff] }
 0x7ff   : > { %v4260_v36 = vmul.f32 %v10061_v10, %v4224_v19  ;;  %v4761_v22 = vpop.f32.mrf.mxu0  ;;  %11287 = vst [vmem:[#allocation28_spill] sm:$0xff] %v10211_v31 }
 0x800   : > { %v5007_v56 = vpop.f32.mrf.mxu1  ;;  %v10189_v14 = vpop.f32.mrf.mxu3 }
 0x801   : > { %v4296_v62 = vadd.f32 %v10071_v44, %v4260_v36  ;;  %7476 = vmatmul.msk.f32.gmra.mxu2 %vm426_vm4, %v10191_v40  ;;  %v4762_v44 = vadd.f32 %v4761_v22, %v9870_v48  ;;  %v10209_v36 = vld [vmem:[#allocation3 + $0xe0] sm:$0xff] }
 0x802   : > { %7409 = vmatmul.msk.f32.gmra.mxu0 %vm426_vm4, %v10171_v63  ;;  %11286 = vst [vmem:[#allocation21_spill] sm:$0xff] %v10209_v36  ;;  %v5411_v48 = vld [vmem:[#allocation3 + $0x21] sm:$0xff] }
 0x803   : > { %7443 = vmatmul.msk.f32.gmra.mxu1 %vm426_vm4, %v10194_v49  ;;  %v4328_v10 = vmax.f32 %v4296_v62, 0.0  ;;  %v5101_v9 = vadd.f32 %v5007_v56, %v4762_v44  ;;  %v10227_v49 = vld [vmem:[#allocation3 + $0xe2] sm:$0xff] }
 0x804   : > { %v5282_v29 = vpop.f32.mrf.mxu2  ;;  %11289 = vst [vmem:[#allocation24_spill] sm:$0xff] %v10227_v49 }
 0x805   : > { %4361 = vst.msk [vmem:[#allocation3 + $0x189] sm:$0xff] %vm426_vm4, %v4328_v10  ;;  %v10203_v25 = vadd.f32 %v5282_v29, %v5100_v6 }
 0x806   : > { %7494 = vmatmul.msk.f32.vlgmr.msra.gmra.mxu3 %vm426_vm4, %v5410_v57  ;;  %v10225_v57 = vld [vmem:[#allocation3 + $0xf0] sm:$0xff] }
 0x807   : > { %v4764_v45 = vpop.f32.mrf.mxu0  ;;  %11288 = vst [vmem:[#allocation4_spill] sm:$0xff] %v10225_v57 }
 0x808   : > { %v5010_v41 = vpop.f32.mrf.mxu1  ;;  %v10207_v19 = vpop.f32.mrf.mxu3  ;;  %v4765_v62 = vadd.f32 %v4764_v45, %v9891_v24  ;;  %v10235_v24 = vld [vmem:[#allocation3 + $0x31] sm:$0xff] }
 0x809   : > { %7477 = vmatmul.msk.f32.gmra.mxu2 %vm426_vm4, %v10209_v36 }
 0x80a   : > { %7410 = vmatmul.msk.f32.gmra.mxu0 %vm426_vm4, %v10191_v40  ;;  %v5102_v56 = vadd.f32 %v5010_v41, %v4765_v62  ;;  %v10244_v40 = vld [vmem:[#allocation3 + $0xf8] sm:$0xff] }
 0x80b   : > { %7444 = vmatmul.msk.f32.gmra.mxu1 %vm426_vm4, %v10211_v31  ;;  %11290 = vst [vmem:[#allocation20_spill] sm:$0xff] %v10244_v40 }
 0x80c   : > { %v5285_v26 = vpop.f32.mrf.mxu2 }
 0x80d   : > { %v10219_v22 = vadd.f32 %v5285_v26, %v5101_v9 }
 0x80e   : > { %7495 = vmatmul.msk.f32.gmra.mxu3 %vm426_vm4, %v5411_v48 }
 0x80f   : > { %v4767_v6 = vpop.f32.mrf.mxu0 }
 0x810   : > { %v5013_v10 = vpop.f32.mrf.mxu1  ;;  %v10223_v29 = vpop.f32.mrf.mxu3  ;;  %v4768_v9 = vadd.f32 %v4767_v6, %v9912_v54  ;;  %v10254_v54 = vld [vmem:[#allocation3 + $0x39] sm:$0xff] }
 0x811   : > { %7478 = vmatmul.msk.f32.gmra.mxu2 %vm426_vm4, %v10225_v57 }
 0x812   : > { %7411 = vmatmul.msk.f32.gmra.mxu0 %vm426_vm4, %v10209_v36  ;;  %v10246_v36 = vld [vmem:[#allocation3 + $0xf2] sm:$0xff]  ;;  %v5103_v41 = vadd.f32 %v5013_v10, %v4768_v9 }
 0x813   : > { %7445 = vmatmul.msk.f32.gmra.mxu1 %vm426_vm4, %v10227_v49  ;;  %11291 = vst [vmem:[#allocation35_spill] sm:$0xff] %v10246_v36 }
 0x814   : > { %v5288_v44 = vpop.f32.mrf.mxu2 }
 0x815   : > { %v10237_v45 = vadd.f32 %v5288_v44, %v5102_v56 }
 0x816   : > { %7496 = vmatmul.msk.f32.gmra.mxu3 %vm426_vm4, %v10235_v24 }
 0x817   : > { %v4770_v26 = vpop.f32.mrf.mxu0 }
 0x818   : > { %v5016_v48 = vpop.f32.mrf.mxu1  ;;  %v10242_v31 = vpop.f32.mrf.mxu3  ;;  %v4771_v56 = vadd.f32 %v4770_v26, %v9933_v30  ;;  %v10273_v30 = vld [vmem:[#allocation3 + $0x49] sm:$0xff] }
 0x819   : > { %7479 = vmatmul.msk.f32.gmra.mxu2 %vm426_vm4, %v10244_v40 }
 0x81a   : > { %7412 = vmatmul.msk.f32.gmra.mxu0 %vm426_vm4, %v10225_v57  ;;  %v10265_v57 = vld [vmem:[#allocation3 + $0xfa] sm:$0xff]  ;;  %v5104_v10 = vadd.f32 %v5016_v48, %v4771_v56 }
 0x81b   : > { %7446 = vmatmul.msk.f32.gmra.mxu1 %vm426_vm4, %v10246_v36  ;;  %11293 = vst [vmem:[#allocation22_spill] sm:$0xff] %v10265_v57 }
 0x81c   : > { %v5291_v62 = vpop.f32.mrf.mxu2 }
 0x81d   : > { %v10256_v6 = vadd.f32 %v5291_v62, %v5103_v41 }
 0x81e   : > { %7497 = vmatmul.msk.f32.gmra.mxu3 %vm426_vm4, %v10254_v54 }
 0x81f   : > { %v4773_v44 = vpop.f32.mrf.mxu0 }
 0x820   : > { %v5019_v49 = vpop.f32.mrf.mxu1  ;;  %v10261_v63 = vpop.f32.mrf.mxu3  ;;  %v4774_v41 = vadd.f32 %v4773_v44, %v9954_v28  ;;  %v10292_v28 = vld [vmem:[#allocation3 + $0x51] sm:$0xff] }
 0x821   : > { %7480 = vmatmul.msk.f32.gmra.mxu2 %vm426_vm4, %v10263_v13 }
 0x822   : > { %7413 = vmatmul.msk.f32.gmra.mxu0 %vm426_vm4, %v10244_v40  ;;  %v10284_v40 = vld [vmem:[#allocation3 + $0x10a] sm:$0xff]  ;;  %v5105_v48 = vadd.f32 %v5019_v49, %v4774_v41 }
 0x823   : > { %7447 = vmatmul.msk.f32.gmra.mxu1 %vm426_vm4, %v10265_v57  ;;  %11295 = vst [vmem:[#allocation29_spill] sm:$0xff] %v10284_v40 }
 0x824   : > { %v5294_v9 = vpop.f32.mrf.mxu2 }
 0x825   : > { %v10275_v26 = vadd.f32 %v5294_v9, %v5104_v10 }
 0x826   : > { %7498 = vmatmul.msk.f32.gmra.mxu3 %vm426_vm4, %v10273_v30 }
 0x827   : > { %v4776_v62 = vpop.f32.mrf.mxu0 }
 0x828   : > { %v5022_v36 = vpop.f32.mrf.mxu1  ;;  %v10280_v60 = vpop.f32.mrf.mxu3  ;;  %v4777_v10 = vadd.f32 %v4776_v62, %v9975_v59  ;;  %v10311_v59 = vld [vmem:[#allocation3 + $0x61] sm:$0xff] }
 0x829   : > { %7481 = vmatmul.msk.f32.gmra.mxu2 %vm426_vm4, %v10282_v51 }
 0x82a   : > { %7414 = vmatmul.msk.f32.gmra.mxu0 %vm426_vm4, %v10263_v13  ;;  %v10303_v13 = vld [vmem:[#allocation3 + $0x112] sm:$0xff]  ;;  %v5106_v49 = vadd.f32 %v5022_v36, %v4777_v10 }
 0x82b   : > { %7448 = vmatmul.msk.f32.gmra.mxu1 %vm426_vm4, %v10284_v40  ;;  %11297 = vst [vmem:[#allocation39_spill] sm:$0xff] %v10303_v13 }
 0x82c   : > { %v5297_v56 = vpop.f32.mrf.mxu2 }
 0x82d   : > { %v10294_v44 = vadd.f32 %v5297_v56, %v5105_v48 }
 0x82e   : > { %7499 = vmatmul.msk.f32.gmra.mxu3 %vm426_vm4, %v10292_v28 }
 0x82f   : > { %v4779_v9 = vpop.f32.mrf.mxu0 }
 0x830   : > { %v5025_v57 = vpop.f32.mrf.mxu1  ;;  %v10299_v32 = vpop.f32.mrf.mxu3  ;;  %v4780_v48 = vadd.f32 %v4779_v9, %v9996_v42  ;;  %v10330_v42 = vld [vmem:[#allocation3 + $0x69] sm:$0xff] }
 0x831   : > { %7482 = vmatmul.msk.f32.gmra.mxu2 %vm426_vm4, %v10301_v11 }
 0x832   : > { %7415 = vmatmul.msk.f32.gmra.mxu0 %vm426_vm4, %v10282_v51  ;;  %v10322_v51 = vld [vmem:[#allocation3 + $0x122] sm:$0xff]  ;;  %v5107_v36 = vadd.f32 %v5025_v57, %v4780_v48 }
 0x833   : > { %7449 = vmatmul.msk.f32.gmra.mxu1 %vm426_vm4, %v10303_v13  ;;  %11300 = vst [vmem:[#allocation41_spill] sm:$0xff] %v10322_v51 }
 0x834   : > { %v5300_v41 = vpop.f32.mrf.mxu2 }
 0x835   : > { %v10313_v62 = vadd.f32 %v5300_v41, %v5106_v49 }
 0x836   : > { %7500 = vmatmul.msk.f32.gmra.mxu3 %vm426_vm4, %v10311_v59 }
 0x837   : > { %11298 = vst [vmem:[#allocation37_spill] sm:$0xff] %v10313_v62  ;;  %v4782_v56 = vpop.f32.mrf.mxu0  ;;  %v10339_v62 = vld [vmem:[#allocation3 + $0x138] sm:$0xff] }
 0x838   : > { %v5028_v40 = vpop.f32.mrf.mxu1  ;;  %v10318_v53 = vpop.f32.mrf.mxu3  ;;  %v4783_v49 = vadd.f32 %v4782_v56, %v10017_v61  ;;  %11303 = vst [vmem:[#allocation25_spill] sm:$0xff] %v10339_v62  ;;  %v10349_v61 = vld [vmem:[#allocation3 + $0x79] sm:$0xff] }
 0x839   : > { %7483 = vmatmul.msk.f32.gmra.mxu2 %vm426_vm4, %v10320_v50 }
 0x83a   : > { %7416 = vmatmul.msk.f32.gmra.mxu0 %vm426_vm4, %v10301_v11  ;;  %v10341_v11 = vld [vmem:[#allocation3 + $0x12a] sm:$0xff]  ;;  %v5108_v57 = vadd.f32 %v5028_v40, %v4783_v49 }
 0x83b   : > { %7450 = vmatmul.msk.f32.gmra.mxu1 %vm426_vm4, %v10322_v51  ;;  %11304 = vst [vmem:[#allocation19_spill] sm:$0xff] %v10341_v11 }
 0x83c   : > { %v5303_v10 = vpop.f32.mrf.mxu2 }
 0x83d   : > { %v10332_v9 = vadd.f32 %v5303_v10, %v5107_v36 }
 0x83e   : > { %7501 = vmatmul.msk.f32.gmra.mxu3 %vm426_vm4, %v10330_v42 }
 0x83f   : > { %11301 = vst [vmem:[#allocation44_spill] sm:$0xff] %v10332_v9  ;;  %v4785_v41 = vpop.f32.mrf.mxu0 }
 0x840   : > { %v5031_v13 = vpop.f32.mrf.mxu1  ;;  %v10337_v0 = vpop.f32.mrf.mxu3  ;;  %v4786_v36 = vadd.f32 %v4785_v41, %v10038_v3  ;;  %v10368_v3 = vld [vmem:[#allocation3 + $0x81] sm:$0xff] }
 0x841   : > { %11302 = vst [vmem:[#allocation45_spill] sm:$0xff] %v10337_v0  ;;  %7484 = vmatmul.msk.f32.gmra.mxu2 %vm426_vm4, %v10339_v62  ;;  %v10358_v0 = vld [vmem:[#allocation3 + $0x140] sm:$0xff] }
 0x842   : > { %7417 = vmatmul.msk.f32.gmra.mxu0 %vm426_vm4, %v10320_v50  ;;  %11307 = vst [vmem:[#allocation47_spill] sm:$0xff] %v10358_v0  ;;  %v10360_v50 = vld [vmem:[#allocation3 + $0x13a] sm:$0xff]  ;;  %v5109_v40 = vadd.f32 %v5031_v13, %v4786_v36 }
 0x843   : > { %7451 = vmatmul.msk.f32.gmra.mxu1 %vm426_vm4, %v10341_v11  ;;  %11308 = vst [vmem:[#allocation48_spill] sm:$0xff] %v10360_v50 }
 0x844   : > { %v5306_v48 = vpop.f32.mrf.mxu2 }
 0x845   : > { %v10351_v56 = vadd.f32 %v5306_v48, %v5108_v57 }
 0x846   : > { %7502 = vmatmul.msk.f32.gmra.mxu3 %vm426_vm4, %v10349_v61 }
 0x847   : > { %11305 = vst [vmem:[#allocation31_spill] sm:$0xff] %v10351_v56  ;;  %v4788_v10 = vpop.f32.mrf.mxu0 }
 0x848   : > { %v5034_v51 = vpop.f32.mrf.mxu1  ;;  %v10356_v9 = vpop.f32.mrf.mxu3  ;;  %v4789_v57 = vadd.f32 %v4788_v10, %v10064_v33  ;;  %v10387_v33 = vld [vmem:[#allocation3 + $0x91] sm:$0xff] }
 0x849   : > { %11306 = vst [vmem:[#allocation46_spill] sm:$0xff] %v10356_v9  ;;  %7485 = vmatmul.msk.f32.gmra.mxu2 %vm426_vm4, %v10358_v0  ;;  %v10377_v9 = vld [vmem:[#allocation3 + $0x150] sm:$0xff] }
 0x84a   : > { %7418 = vmatmul.msk.f32.gmra.mxu0 %vm426_vm4, %v10339_v62  ;;  %11311 = vst [vmem:[#allocation51_spill] sm:$0xff] %v10377_v9  ;;  %v10379_v62 = vld [vmem:[#allocation3 + $0x142] sm:$0xff]  ;;  %v5110_v13 = vadd.f32 %v5034_v51, %v4789_v57 }
 0x84b   : > { %7452 = vmatmul.msk.f32.gmra.mxu1 %vm426_vm4, %v10360_v50  ;;  %11312 = vst [vmem:[#allocation52_spill] sm:$0xff] %v10379_v62 }
 0x84c   : > { %v5309_v49 = vpop.f32.mrf.mxu2 }
 0x84d   : > { %v10370_v41 = vadd.f32 %v5309_v49, %v5109_v40 }
 0x84e   : > { %7503 = vmatmul.msk.f32.gmra.mxu3 %vm426_vm4, %v10368_v3 }
 0x84f   : > { %11309 = vst [vmem:[#allocation49_spill] sm:$0xff] %v10370_v41  ;;  %v4791_v48 = vpop.f32.mrf.mxu0 }
 0x850   : > { %v5037_v11 = vpop.f32.mrf.mxu1  ;;  %v10375_v56 = vpop.f32.mrf.mxu3  ;;  %v4792_v40 = vadd.f32 %v4791_v48, %v10090_v55  ;;  %v10406_v55 = vld [vmem:[#allocation3 + $0x99] sm:$0xff] }
 0x851   : > { %11310 = vst [vmem:[#allocation50_spill] sm:$0xff] %v10375_v56  ;;  %7486 = vmatmul.msk.f32.gmra.mxu2 %vm426_vm4, %v10377_v9  ;;  %v10396_v56 = vld [vmem:[#allocation3 + $0x158] sm:$0xff] }
 0x852   : > { %7419 = vmatmul.msk.f32.gmra.mxu0 %vm426_vm4, %v10358_v0  ;;  %11315 = vst [vmem:[#allocation55_spill] sm:$0xff] %v10396_v56  ;;  %v10398_v0 = vld [vmem:[#allocation3 + $0x152] sm:$0xff]  ;;  %v5111_v51 = vadd.f32 %v5037_v11, %v4792_v40 }
 0x853   : > { %7453 = vmatmul.msk.f32.gmra.mxu1 %vm426_vm4, %v10379_v62  ;;  %11316 = vst [vmem:[#allocation56_spill] sm:$0xff] %v10398_v0 }
 0x854   : > { %v5312_v36 = vpop.f32.mrf.mxu2 }
 0x855   : > { %v10389_v10 = vadd.f32 %v5312_v36, %v5110_v13 }
 0x856   : > { %7504 = vmatmul.msk.f32.gmra.mxu3 %vm426_vm4, %v10387_v33 }
 0x857   : > { %11313 = vst [vmem:[#allocation53_spill] sm:$0xff] %v10389_v10  ;;  %v4794_v49 = vpop.f32.mrf.mxu0 }
 0x858   : > { %v5040_v50 = vpop.f32.mrf.mxu1  ;;  %v4795_v13 = vadd.f32 %v4794_v49, %v10123_v8  ;;  %v10425_v8 = vld [vmem:[#allocation3 + $0xa9] sm:$0xff] }
 0x859   : > { %v10394_v41 = vpop.f32.mrf.mxu3  ;;  %7487 = vmatmul.msk.f32.gmra.mxu2 %vm426_vm4, %v10396_v56 }
 0x85a   : > { %11314 = vst [vmem:[#allocation54_spill] sm:$0xff] %v10394_v41  ;;  %7420 = vmatmul.msk.f32.gmra.mxu0 %vm426_vm4, %v10377_v9  ;;  %v10415_v41 = vld [vmem:[#allocation3 + $0x168] sm:$0xff]  ;;  %v10417_v9 = vld [vmem:[#allocation3 + $0x15a] sm:$0xff]  ;;  %v5112_v11 = vadd.f32 %v5040_v50, %v4795_v13 }
 0x85b   : > { %7454 = vmatmul.msk.f32.gmra.mxu1 %vm426_vm4, %v10398_v0  ;;  %11319 = vst [vmem:[#allocation59_spill] sm:$0xff] %v10415_v41 }
 0x85c   : > { %v5315_v57 = vpop.f32.mrf.mxu2  ;;  %11320 = vst [vmem:[#allocation60_spill] sm:$0xff] %v10417_v9 }
 0x85d   : > { %v10408_v48 = vadd.f32 %v5315_v57, %v5111_v51 }
 0x85e   : > { %7505 = vmatmul.msk.f32.gmra.mxu3 %vm426_vm4, %v10406_v55 }
 0x85f   : > { %11317 = vst [vmem:[#allocation57_spill] sm:$0xff] %v10408_v48  ;;  %v4797_v36 = vpop.f32.mrf.mxu0 }
 0x860   : > { %v5043_v62 = vpop.f32.mrf.mxu1  ;;  %v4798_v51 = vadd.f32 %v4797_v36, %v10148_v58  ;;  %v10444_v58 = vld [vmem:[#allocation3 + $0xb1] sm:$0xff] }
 0x861   : > { %v10413_v10 = vpop.f32.mrf.mxu3  ;;  %7488 = vmatmul.msk.f32.gmra.mxu2 %vm426_vm4, %v10415_v41 }
 0x862   : > { %11318 = vst [vmem:[#allocation58_spill] sm:$0xff] %v10413_v10  ;;  %7421 = vmatmul.msk.f32.gmra.mxu0 %vm426_vm4, %v10396_v56  ;;  %v10434_v10 = vld [vmem:[#allocation3 + $0x170] sm:$0xff]  ;;  %v5113_v50 = vadd.f32 %v5043_v62, %v4798_v51 }
 0x863   : > { %7455 = vmatmul.msk.f32.gmra.mxu1 %vm426_vm4, %v10417_v9  ;;  %11323 = vst [vmem:[#allocation63_spill] sm:$0xff] %v10434_v10  ;;  %v10436_v56 = vld [vmem:[#allocation3 + $0x16a] sm:$0xff] }
 0x864   : > { %v5318_v40 = vpop.f32.mrf.mxu2  ;;  %11324 = vst [vmem:[#allocation64_spill] sm:$0xff] %v10436_v56 }
 0x865   : > { %v10427_v49 = vadd.f32 %v5318_v40, %v5112_v11 }
 0x866   : > { %7506 = vmatmul.msk.f32.gmra.mxu3 %vm426_vm4, %v10425_v8 }
 0x867   : > { %11321 = vst [vmem:[#allocation61_spill] sm:$0xff] %v10427_v49  ;;  %v4800_v57 = vpop.f32.mrf.mxu0 }
 0x868   : > { %v5046_v0 = vpop.f32.mrf.mxu1  ;;  %v4801_v11 = vadd.f32 %v4800_v57, %v10169_v38  ;;  %v10463_v38 = vld [vmem:[#allocation3 + $0xc1] sm:$0xff] }
 0x869   : > { %v10432_v48 = vpop.f32.mrf.mxu3  ;;  %7489 = vmatmul.msk.f32.gmra.mxu2 %vm426_vm4, %v10434_v10 }
 0x86a   : > { %11322 = vst [vmem:[#allocation62_spill] sm:$0xff] %v10432_v48  ;;  %7422 = vmatmul.msk.f32.gmra.mxu0 %vm426_vm4, %v10415_v41  ;;  %v10453_v48 = vld [vmem:[#allocation3 + $0x180] sm:$0xff]  ;;  %v10455_v41 = vld [vmem:[#allocation3 + $0x172] sm:$0xff]  ;;  %v5114_v62 = vadd.f32 %v5046_v0, %v4801_v11 }
 0x86b   : > { %7456 = vmatmul.msk.f32.gmra.mxu1 %vm426_vm4, %v10436_v56  ;;  %11326 = vst [vmem:[#allocation66_spill] sm:$0xff] %v10453_v48  ;;  %v5688_v0 = vld [vmem:[#allocation3 + $0x1a] sm:$0xff] }
 0x86c   : > { %v5321_v13 = vpop.f32.mrf.mxu2  ;;  %11327 = vst [vmem:[#allocation67_spill] sm:$0xff] %v10455_v41 }
 0x86d   : > { %v10446_v36 = vadd.f32 %v5321_v13, %v5113_v50 }
 0x86e   : > { %7507 = vmatmul.msk.f32.gmra.mxu3 %vm426_vm4, %v10444_v58 }
 0x86f   : > { %11325 = vst [vmem:[#allocation65_spill] sm:$0xff] %v10446_v36  ;;  %v4803_v40 = vpop.f32.mrf.mxu0  ;;  %v10472_v36 = vld [vmem:[#allocation3 + $0x188] sm:$0xff] }
 0x870   : > { %v5049_v9 = vpop.f32.mrf.mxu1  ;;  %v4804_v50 = vadd.f32 %v4803_v40, %v10189_v14  ;;  %11328 = vst [vmem:[#allocation68_spill] sm:$0xff] %v10472_v36 }
 0x871   : > { %v10451_v49 = vpop.f32.mrf.mxu3  ;;  %7490 = vmatmul.msk.f32.gmra.mxu2 %vm426_vm4, %v10453_v48 }
 0x872   : > { %7423 = vmatmul.msk.f32.gmra.mxu0 %vm426_vm4, %v10434_v10  ;;  %v5115_v11 = vadd.f32 %v5049_v9, %v4804_v50 }
 0x873   : > { %7457 = vmatmul.msk.f32.gmra.mxu1 %vm426_vm4, %v10455_v41 }
 0x874   : > { %v5324_v51 = vpop.f32.mrf.mxu2 }
 0x875   : > { %v10465_v57 = vadd.f32 %v5324_v51, %v5114_v62  ;;  %v10479_v51 = vld [vmem:[#allocation3 + $0xc9] sm:$0xff] }
 0x876   : > { %7508 = vmatmul.msk.f32.gmra.mxu3 %vm426_vm4, %v10463_v38 }
 0x877   : > { %v4806_v13 = vpop.f32.mrf.mxu0 }
 0x878   : > { %v5052_v56 = vpop.f32.mrf.mxu1  ;;  %v4807_v40 = vadd.f32 %v4806_v13, %v10207_v19 }
 0x879   : > { %v10470_v48 = vpop.f32.mrf.mxu3  ;;  %7491 = vmatmul.msk.f32.gmra.mxu2 %vm426_vm4, %v10472_v36 }
 0x87a   : > { %7528 = vmatmul.msk.f32.vlgmr.msrb.gmra.mxu0 %vm426_vm4, %v5688_v0 }
 0x87b   : > { %7562 = vmatmul.msk.f32.vlgmr.msra.gmra.mxu1 %vm426_vm4, %v9873_v34  ;;  %v5116_v34 = vadd.f32 %v5052_v56, %v4807_v40 }
 0x87c   : > { %v5327_v62 = vpop.f32.mrf.mxu2 }
 0x87d   : > { %v10481_v14 = vadd.f32 %v5327_v62, %v5115_v11 }
 0x87e   : > { %7509 = vmatmul.msk.f32.gmra.mxu3 %vm426_vm4, %v10479_v51 }
 0x87f   : > { %v4809_v41 = vpop.f32.mrf.mxu0 }
 0x880   : > { %v5055_v10 = vpop.f32.mrf.mxu1  ;;  %v4810_v19 = vadd.f32 %v4809_v41, %v10223_v29 }
 0x881   : > { %v10486_v36 = vpop.f32.mrf.mxu3  ;;  %7596 = vmatmul.msk.f32.vlgmr.msrb.gmra.mxu2 %vm426_vm4, %v10235_v24 }
 0x882   : > { %7529 = vmatmul.msk.f32.gmra.mxu0 %vm426_vm4, %v9876_v17  ;;  %v5117_v17 = vadd.f32 %v5055_v10, %v4810_v19 }
 0x883   : > { %7563 = vmatmul.msk.f32.gmra.mxu1 %vm426_vm4, %v9893_v37 }
 0x884   : > { %v5330_v9 = vpop.f32.mrf.mxu2 }
 0x885   : > { %v10494_v50 = vadd.f32 %v5330_v9, %v5116_v34 }
 0x886   : > { %7510 = vmatmul.msk.f32.gmra.mxu3 %vm426_vm4, %v9883_v46 }
 0x887   : > { %v4812_v13 = vpop.f32.mrf.mxu0 }
 0x888   : > { %v5058_v0 = vpop.f32.mrf.mxu1  ;;  %v4813_v29 = vadd.f32 %v4812_v13, %v10242_v31 }
 0x889   : > { %v5560_v11 = vpop.f32.mrf.mxu3  ;;  %7597 = vmatmul.msk.f32.gmra.mxu2 %vm426_vm4, %v10254_v54 }
 0x88a   : > { %v10500_v24 = vadd.f32 %v5560_v11, %v10203_v25  ;;  %7530 = vmatmul.msk.f32.gmra.mxu0 %vm426_vm4, %v9896_v52  ;;  %v5118_v52 = vadd.f32 %v5058_v0, %v4813_v29  ;;  %v11330_v29 = vld [vmem:[#allocation37_spill] sm:$0xff] }
 0x88b   : > { %7564 = vmatmul.msk.f32.gmra.mxu1 %vm426_vm4, %v9914_v2 }
 0x88c   : > { %v5333_v37 = vpop.f32.mrf.mxu2 }
 0x88d   : > { %v10508_v46 = vadd.f32 %v5333_v37, %v5117_v17 }
 0x88e   : > { %7511 = vmatmul.msk.f32.gmra.mxu3 %vm426_vm4, %v9904_v18 }
 0x88f   : > { %v4815_v25 = vpop.f32.mrf.mxu0 }
 0x890   : > { %v5061_v56 = vpop.f32.mrf.mxu1  ;;  %v4816_v31 = vadd.f32 %v4815_v25, %v10261_v63 }
 0x891   : > { %v5563_v41 = vpop.f32.mrf.mxu3  ;;  %7598 = vmatmul.msk.f32.gmra.mxu2 %vm426_vm4, %v10273_v30 }
 0x892   : > { %v10514_v54 = vadd.f32 %v5563_v41, %v10219_v22  ;;  %7531 = vmatmul.msk.f32.gmra.mxu0 %vm426_vm4, %v9917_v15  ;;  %v5119_v15 = vadd.f32 %v5061_v56, %v4816_v31  ;;  %v11333_v41 = vld [vmem:[#allocation5_spill] sm:$0xff] }
 0x893   : > { %7565 = vmatmul.msk.f32.gmra.mxu1 %vm426_vm4, %v9935_v4 }
 0x894   : > { %v5336_v2 = vpop.f32.mrf.mxu2 }
 0x895   : > { %v10522_v18 = vadd.f32 %v5336_v2, %v5118_v52  ;;  %v11334_v52 = vld [vmem:[#allocation46_spill] sm:$0xff] }
 0x896   : > { %7512 = vmatmul.msk.f32.gmra.mxu3 %vm426_vm4, %v9925_v12 }
 0x897   : > { %v4818_v22 = vpop.f32.mrf.mxu0 }
 0x898   : > { %v5064_v10 = vpop.f32.mrf.mxu1  ;;  %v4819_v63 = vadd.f32 %v4818_v22, %v10280_v60 }
 0x899   : > { %v5566_v62 = vpop.f32.mrf.mxu3  ;;  %7599 = vmatmul.msk.f32.gmra.mxu2 %vm426_vm4, %v10292_v28 }
 0x89a   : > { %v10528_v30 = vadd.f32 %v5566_v62, %v10237_v45  ;;  %7532 = vmatmul.msk.f32.gmra.mxu0 %vm426_vm4, %v9938_v43  ;;  %v5120_v43 = vadd.f32 %v5064_v10, %v4819_v63  ;;  %v11335_v62 = vld [vmem:[#allocation44_spill] sm:$0xff] }
 0x89b   : > { %7566 = vmatmul.msk.f32.gmra.mxu1 %vm426_vm4, %v9956_v35 }
 0x89c   : > { %v5339_v4 = vpop.f32.mrf.mxu2 }
 0x89d   : > { %v10536_v12 = vadd.f32 %v5339_v4, %v5119_v15  ;;  %v11336_v15 = vld [vmem:[#allocation26_spill] sm:$0xff]  ;;  %v11337_v4 = vld [vmem:[#allocation8_spill] sm:$0xff] }
 0x89e   : > { %7513 = vmatmul.msk.f32.gmra.mxu3 %vm426_vm4, %v9946_v7 }
 0x89f   : > { %v4821_v45 = vpop.f32.mrf.mxu0 }
 0x8a0   : > { %v5067_v40 = vpop.f32.mrf.mxu1  ;;  %v4822_v60 = vadd.f32 %v4821_v45, %v10299_v32 }
 0x8a1   : > { %v5569_v34 = vpop.f32.mrf.mxu3  ;;  %7600 = vmatmul.msk.f32.gmra.mxu2 %vm426_vm4, %v10311_v59 }
 0x8a2   : > { %v10542_v28 = vadd.f32 %v5569_v34, %v10256_v6  ;;  %7533 = vmatmul.msk.f32.gmra.mxu0 %vm426_vm4, %v9959_v39  ;;  %v5121_v39 = vadd.f32 %v5067_v40, %v4822_v60  ;;  %v11338_v34 = vld [vmem:[#allocation27_spill] sm:$0xff] }
 0x8a3   : > { %7567 = vmatmul.msk.f32.gmra.mxu1 %vm426_vm4, %v9977_v20 }
 0x8a4   : > { %v5342_v35 = vpop.f32.mrf.mxu2 }
 0x8a5   : > { %v10550_v7 = vadd.f32 %v5342_v35, %v5120_v43  ;;  %v11339_v43 = vld [vmem:[#allocation50_spill] sm:$0xff] }
 0x8a6   : > { %7514 = vmatmul.msk.f32.gmra.mxu3 %vm426_vm4, %v9967_v5 }
 0x8a7   : > { %v4824_v6 = vpop.f32.mrf.mxu0 }
 0x8a8   : > { %v5070_v9 = vpop.f32.mrf.mxu1  ;;  %v4825_v32 = vadd.f32 %v4824_v6, %v10318_v53  ;;  %v11329_v53 = vld [vmem:[#allocation45_spill] sm:$0xff] }
 0x8a9   : > { %v5572_v19 = vpop.f32.mrf.mxu3  ;;  %7601 = vmatmul.msk.f32.gmra.mxu2 %vm426_vm4, %v10330_v42 }
 0x8aa   : > { %v10556_v59 = vadd.f32 %v5572_v19, %v10275_v26  ;;  %7534 = vmatmul.msk.f32.gmra.mxu0 %vm426_vm4, %v9980_v47  ;;  %v5122_v47 = vadd.f32 %v5070_v9, %v4825_v32  ;;  %v11340_v19 = vld [vmem:[#allocation31_spill] sm:$0xff] }
 0x8ab   : > { %7568 = vmatmul.msk.f32.gmra.mxu1 %vm426_vm4, %v9998_v23 }
 0x8ac   : > { %v5345_v20 = vpop.f32.mrf.mxu2 }
 0x8ad   : > { %v10564_v5 = vadd.f32 %v5345_v20, %v5121_v39  ;;  %v11341_v39 = vld [vmem:[#allocation32_spill] sm:$0xff]  ;;  %v11342_v20 = vld [vmem:[#allocation6_spill] sm:$0xff] }
 0x8ae   : > { %7515 = vmatmul.msk.f32.gmra.mxu3 %vm426_vm4, %v9988_v27 }
 0x8af   : > { %v4827_v26 = vpop.f32.mrf.mxu0 }
 0x8b0   : > { %v5073_v13 = vpop.f32.mrf.mxu1  ;;  %v4828_v11 = vadd.f32 %v4827_v26, %v11329_v53 }
 0x8b1   : > { %v5575_v0 = vpop.f32.mrf.mxu3  ;;  %7602 = vmatmul.msk.f32.gmra.mxu2 %vm426_vm4, %v10349_v61 }
 0x8b2   : > { %v10570_v42 = vadd.f32 %v5575_v0, %v10294_v44  ;;  %7535 = vmatmul.msk.f32.gmra.mxu0 %vm426_vm4, %v10001_v21  ;;  %v11331_v21 = vld [vmem:[#allocation23_spill] sm:$0xff]  ;;  %v5123_v25 = vadd.f32 %v5073_v13, %v4828_v11  ;;  %v11343_v0 = vld [vmem:[#allocation33_spill] sm:$0xff] }
 0x8b3   : > { %7569 = vmatmul.msk.f32.gmra.mxu1 %vm426_vm4, %v10019_v1  ;;  %v11332_v1 = vld [vmem:[#allocation36_spill] sm:$0xff] }
 0x8b4   : > { %v5348_v23 = vpop.f32.mrf.mxu2 }
 0x8b5   : > { %v10578_v27 = vadd.f32 %v5348_v23, %v5122_v47  ;;  %v11344_v47 = vld [vmem:[#allocation54_spill] sm:$0xff] }
 0x8b6   : > { %7516 = vmatmul.msk.f32.gmra.mxu3 %vm426_vm4, %v10009_v16 }
 0x8b7   : > { %v4830_v44 = vpop.f32.mrf.mxu0 }
 0x8b8   : > { %v5076_v17 = vpop.f32.mrf.mxu1  ;;  %v4831_v2 = vadd.f32 %v4830_v44, %v11334_v52 }
 0x8b9   : > { %v5578_v37 = vpop.f32.mrf.mxu3  ;;  %7603 = vmatmul.msk.f32.gmra.mxu2 %vm426_vm4, %v10368_v3 }
 0x8ba   : > { %v10584_v61 = vadd.f32 %v5578_v37, %v11330_v29  ;;  %7536 = vmatmul.msk.f32.gmra.mxu0 %vm426_vm4, %v11331_v21  ;;  %v5124_v63 = vadd.f32 %v5076_v17, %v4831_v2  ;;  %v11345_v17 = vld [vmem:[#allocation49_spill] sm:$0xff]  ;;  %v11346_v37 = vld [vmem:[#allocation38_spill] sm:$0xff] }
 0x8bb   : > { %7570 = vmatmul.msk.f32.gmra.mxu1 %vm426_vm4, %v11332_v1  ;;  %v11347_v29 = vld [vmem:[#allocation42_spill] sm:$0xff] }
 0x8bc   : > { %v5351_v56 = vpop.f32.mrf.mxu2 }
 0x8bd   : > { %v10592_v16 = vadd.f32 %v5351_v56, %v5123_v25  ;;  %v11348_v56 = vld [vmem:[#allocation7_spill] sm:$0xff] }
 0x8be   : > { %7517 = vmatmul.msk.f32.gmra.mxu3 %vm426_vm4, %v11333_v41  ;;  %v11349_v41 = vld [vmem:[#allocation58_spill] sm:$0xff] }
 0x8bf   : > { %v4833_v31 = vpop.f32.mrf.mxu0 }
 0x8c0   : > { %v5079_v22 = vpop.f32.mrf.mxu1  ;;  %v4834_v35 = vadd.f32 %v4833_v31, %v11339_v43  ;;  %v11354_v43 = vld [vmem:[#allocation62_spill] sm:$0xff] }
 0x8c1   : > { %v5581_v10 = vpop.f32.mrf.mxu3  ;;  %7604 = vmatmul.msk.f32.gmra.mxu2 %vm426_vm4, %v10387_v33 }
 0x8c2   : > { %v10598_v3 = vadd.f32 %v5581_v10, %v11335_v62  ;;  %7537 = vmatmul.msk.f32.gmra.mxu0 %vm426_vm4, %v11336_v15  ;;  %v5125_v32 = vadd.f32 %v5079_v22, %v4834_v35  ;;  %v11350_v10 = vld [vmem:[#allocation53_spill] sm:$0xff]  ;;  %v11352_v15 = vld [vmem:[#allocation11_spill] sm:$0xff] }
 0x8c3   : > { %7571 = vmatmul.msk.f32.gmra.mxu1 %vm426_vm4, %v11337_v4  ;;  %v11351_v62 = vld [vmem:[#allocation9_spill] sm:$0xff] }
 0x8c4   : > { %v5354_v45 = vpop.f32.mrf.mxu2 }
 0x8c5   : > { %v10606_v40 = vadd.f32 %v5354_v45, %v5124_v63 }
 0x8c6   : > { %7518 = vmatmul.msk.f32.gmra.mxu3 %vm426_vm4, %v11338_v34  ;;  %v11353_v34 = vld [vmem:[#allocation10_spill] sm:$0xff] }
 0x8c7   : > { %v4836_v60 = vpop.f32.mrf.mxu0 }
 0x8c8   : > { %v5082_v6 = vpop.f32.mrf.mxu1  ;;  %v4837_v23 = vadd.f32 %v4836_v60, %v11344_v47  ;;  %v11358_v47 = vld [vmem:[#allocation13_spill] sm:$0xff] }
 0x8c9   : > { %v5584_v9 = vpop.f32.mrf.mxu3  ;;  %7605 = vmatmul.msk.f32.gmra.mxu2 %vm426_vm4, %v10406_v55 }
 0x8ca   : > { %v10612_v33 = vadd.f32 %v5584_v9, %v11340_v19  ;;  %7538 = vmatmul.msk.f32.gmra.mxu0 %vm426_vm4, %v11341_v39  ;;  %v5126_v21 = vadd.f32 %v5082_v6, %v4837_v23  ;;  %v11355_v19 = vld [vmem:[#allocation57_spill] sm:$0xff]  ;;  %v11356_v39 = vld [vmem:[#allocation12_spill] sm:$0xff] }
 0x8cb   : > { %7572 = vmatmul.msk.f32.gmra.mxu1 %vm426_vm4, %v11342_v20  ;;  %v11357_v20 = vld [vmem:[#allocation14_spill] sm:$0xff] }
 0x8cc   : > { %v5357_v26 = vpop.f32.mrf.mxu2 }
 0x8cd   : > { %v10620_v13 = vadd.f32 %v5357_v26, %v5125_v32 }
 0x8ce   : > { %7519 = vmatmul.msk.f32.gmra.mxu3 %vm426_vm4, %v11343_v0 }
 0x8cf   : > { %v4839_v53 = vpop.f32.mrf.mxu0 }
 0x8d0   : > { %v5085_v11 = vpop.f32.mrf.mxu1  ;;  %v4840_v52 = vadd.f32 %v4839_v53, %v11349_v41 }
 0x8d1   : > { %v5587_v44 = vpop.f32.mrf.mxu3  ;;  %7606 = vmatmul.msk.f32.gmra.mxu2 %vm426_vm4, %v10425_v8 }
 0x8d2   : > { %v10626_v55 = vadd.f32 %v5587_v44, %v11345_v17  ;;  %7539 = vmatmul.msk.f32.gmra.mxu0 %vm426_vm4, %v11346_v37  ;;  %v5127_v4 = vadd.f32 %v5085_v11, %v4840_v52  ;;  %v11359_v17 = vld [vmem:[#allocation61_spill] sm:$0xff]  ;;  %v11360_v37 = vld [vmem:[#allocation15_spill] sm:$0xff] }
 0x8d3   : > { %7573 = vmatmul.msk.f32.gmra.mxu1 %vm426_vm4, %v11347_v29  ;;  %v11361_v29 = vld [vmem:[#allocation17_spill] sm:$0xff] }
 0x8d4   : > { %v5360_v1 = vpop.f32.mrf.mxu2 }
 0x8d5   : > { %v10634_v25 = vadd.f32 %v5360_v1, %v5126_v21 }
 0x8d6   : > { %7520 = vmatmul.msk.f32.gmra.mxu3 %vm426_vm4, %v11348_v56 }
 0x8d7   : > { %v4842_v2 = vpop.f32.mrf.mxu0 }
 0x8d8   : > { %v5088_v31 = vpop.f32.mrf.mxu1  ;;  %v4843_v35 = vadd.f32 %v4842_v2, %v11354_v43 }
 0x8d9   : > { %v5590_v22 = vpop.f32.mrf.mxu3  ;;  %7607 = vmatmul.msk.f32.gmra.mxu2 %vm426_vm4, %v10444_v58 }
 0x8da   : > { %v10640_v8 = vadd.f32 %v5590_v22, %v11350_v10  ;;  %7540 = vmatmul.msk.f32.gmra.mxu0 %vm426_vm4, %v11351_v62  ;;  %v5128_v32 = vadd.f32 %v5088_v31, %v4843_v35  ;;  %v6259_v22 = vld [vmem:[#allocation3 + $0xd9] sm:$0xff] }
 0x8db   : > { %7574 = vmatmul.msk.f32.gmra.mxu1 %vm426_vm4, %v11352_v15  ;;  %v11364_v62 = vld [vmem:[#allocation18_spill] sm:$0xff]  ;;  %v11365_v15 = vld [vmem:[#allocation21_spill] sm:$0xff] }
 0x8dc   : > { %v5363_v63 = vpop.f32.mrf.mxu2 }
 0x8dd   : > { %v10648_v45 = vadd.f32 %v5363_v63, %v5127_v4 }
 0x8de   : > { %7521 = vmatmul.msk.f32.gmra.mxu3 %vm426_vm4, %v11353_v34  ;;  %v10689_v34 = vld [vmem:[#allocation3 + $0x181] sm:$0xff] }
 0x8df   : > { %v4845_v60 = vpop.f32.mrf.mxu0 }
 0x8e0   : > { %v5091_v6 = vpop.f32.mrf.mxu1  ;;  %v4846_v23 = vadd.f32 %v4845_v60, %v10451_v49  ;;  %v11362_v49 = vld [vmem:[#allocation16_spill] sm:$0xff] }
 0x8e1   : > { %v5593_v9 = vpop.f32.mrf.mxu3  ;;  %7608 = vmatmul.msk.f32.gmra.mxu2 %vm426_vm4, %v10463_v38 }
 0x8e2   : > { %v10654_v58 = vadd.f32 %v5593_v9, %v11355_v19  ;;  %7541 = vmatmul.msk.f32.gmra.mxu0 %vm426_vm4, %v11356_v39  ;;  %v5129_v21 = vadd.f32 %v5091_v6, %v4846_v23  ;;  %v6260_v19 = vld [vmem:[#allocation3 + $0xe1] sm:$0xff]  ;;  %v10705_v23 = vld [vmem:[#allocation3 + $0x189] sm:$0xff] }
 0x8e3   : > { %7575 = vmatmul.msk.f32.gmra.mxu1 %vm426_vm4, %v11357_v20 }
 0x8e4   : > { %v5366_v26 = vpop.f32.mrf.mxu2 }
 0x8e5   : > { %v10662_v0 = vadd.f32 %v5366_v26, %v5128_v32  ;;  %v11366_v32 = vld [vmem:[#allocation28_spill] sm:$0xff] }
 0x8e6   : > { %7522 = vmatmul.msk.f32.gmra.mxu3 %vm426_vm4, %v11358_v47  ;;  %v11367_v26 = vld [vmem:[#allocation4_spill] sm:$0xff] }
 0x8e7   : > { %v4848_v53 = vpop.f32.mrf.mxu0 }
 0x8e8   : > { %v5094_v11 = vpop.f32.mrf.mxu1  ;;  %v4849_v41 = vadd.f32 %v4848_v53, %v10470_v48 }
 0x8e9   : > { %v5596_v44 = vpop.f32.mrf.mxu3  ;;  %7609 = vmatmul.msk.f32.gmra.mxu2 %vm426_vm4, %v10479_v51  ;;  %v11363_v51 = vld [vmem:[#allocation65_spill] sm:$0xff] }
 0x8ea   : > { %v10668_v38 = vadd.f32 %v5596_v44, %v11359_v17  ;;  %7542 = vmatmul.msk.f32.gmra.mxu0 %vm426_vm4, %v11360_v37  ;;  %v5130_v4 = vadd.f32 %v5094_v11, %v4849_v41  ;;  %v6261_v17 = vld [vmem:[#allocation3 + $0xf1] sm:$0xff] }
 0x8eb   : > { %7576 = vmatmul.msk.f32.gmra.mxu1 %vm426_vm4, %v11361_v29  ;;  %v6523_v41 = vld [vmem:[#allocation3 + $0x32] sm:$0xff] }
 0x8ec   : > { %v5369_v1 = vpop.f32.mrf.mxu2 }
 0x8ed   : > { %v10676_v56 = vadd.f32 %v5369_v1, %v5129_v21  ;;  %v11368_v21 = vld [vmem:[#allocation24_spill] sm:$0xff] }
 0x8ee   : > { %7523 = vmatmul.msk.f32.gmra.mxu3 %vm426_vm4, %v11362_v49  ;;  %v11369_v1 = vld [vmem:[#allocation20_spill] sm:$0xff] }
 0x8ef   : > { %v4851_v52 = vpop.f32.mrf.mxu0 }
 0x8f0   : > { %v5097_v2 = vpop.f32.mrf.mxu1  ;;  %v4852_v43 = vadd.f32 %v4851_v52, %v10486_v36 }
 0x8f1   : > { %v5599_v31 = vpop.f32.mrf.mxu3  ;;  %7610 = vmatmul.msk.f32.gmra.mxu2 %vm426_vm4, %v6259_v22  ;;  %v6262_v22 = vld [vmem:[#allocation3 + $0xf9] sm:$0xff] }
 0x8f2   : > { %v10682_v10 = vadd.f32 %v5599_v31, %v11363_v51  ;;  %7543 = vmatmul.msk.f32.gmra.mxu0 %vm426_vm4, %v11364_v62  ;;  %v5131_v47 = vadd.f32 %v5097_v2, %v4852_v43  ;;  %v6524_v43 = vld [vmem:[#allocation3 + $0x3a] sm:$0xff] }
 0x8f3   : > { %7577 = vmatmul.msk.f32.gmra.mxu1 %vm426_vm4, %v11365_v15  ;;  %v11370_v15 = vld [vmem:[#allocation35_spill] sm:$0xff] }
 0x8f4   : > { %v5372_v63 = vpop.f32.mrf.mxu2 }
 0x8f5   : > { %v10691_v48 = vadd.f32 %v5372_v63, %v5130_v4  ;;  %v11371_v4 = vld [vmem:[#allocation34_spill] sm:$0xff] }
 0x8f6   : > { %7524 = vmatmul.msk.f32.gmra.mxu3 %vm426_vm4, %v10689_v34 }
 0x8f7   : > { %v5838_v35 = vpop.f32.mrf.mxu0 }
 0x8f8   : > { %v6117_v60 = vpop.f32.mrf.mxu1  ;;  %v5934_v6 = vadd.f32 %v5838_v35, %v10500_v24 }
 0x8f9   : > { %v5602_v9 = vpop.f32.mrf.mxu3  ;;  %7611 = vmatmul.msk.f32.gmra.mxu2 %vm426_vm4, %v6260_v19 }
 0x8fa   : > { %v10698_v39 = vadd.f32 %v5602_v9, %v10465_v57  ;;  %v6213_v20 = vadd.f32 %v6117_v60, %v5934_v6  ;;  %7544 = vmatmul.msk.f32.gmra.mxu0 %vm426_vm4, %v11366_v32  ;;  %v6263_v9 = vld [vmem:[#allocation3 + $0x109] sm:$0xff]  ;;  %v11372_v32 = vld [vmem:[#allocation22_spill] sm:$0xff] }
 0x8fb   : > { %7578 = vmatmul.msk.f32.gmra.mxu1 %vm426_vm4, %v11367_v26  ;;  %v11373_v26 = vld [vmem:[#allocation30_spill] sm:$0xff] }
 0x8fc   : > { %v5375_v36 = vpop.f32.mrf.mxu2 }
 0x8fd   : > { %v10707_v53 = vadd.f32 %v5375_v36, %v5131_v47  ;;  %v6525_v36 = vld [vmem:[#allocation3 + $0x4a] sm:$0xff] }
 0x8fe   : > { %7525 = vmatmul.msk.f32.gmra.mxu3 %vm426_vm4, %v10705_v23 }
 0x8ff   : > { %v5841_v57 = vpop.f32.mrf.mxu0 }
 0x900   : > { %v6120_v24 = vpop.f32.mrf.mxu1  ;;  %v5935_v11 = vadd.f32 %v5841_v57, %v10514_v54 }
 0x901   : > { %v5605_v44 = vpop.f32.mrf.mxu3  ;;  %7612 = vmatmul.msk.f32.gmra.mxu2 %vm426_vm4, %v6261_v17 }
 0x902   : > { %v10713_v37 = vadd.f32 %v5605_v44, %v10481_v14  ;;  %v6214_v29 = vadd.f32 %v6120_v24, %v5935_v11  ;;  %7545 = vmatmul.msk.f32.gmra.mxu0 %vm426_vm4, %v11368_v21  ;;  %v6264_v44 = vld [vmem:[#allocation3 + $0x111] sm:$0xff] }
 0x903   : > { %7579 = vmatmul.msk.f32.gmra.mxu1 %vm426_vm4, %v11369_v1  ;;  %v11374_v21 = vld [vmem:[#allocation29_spill] sm:$0xff]  ;;  %v11375_v1 = vld [vmem:[#allocation40_spill] sm:$0xff] }
 0x904   : > { %v6395_v49 = vpop.f32.mrf.mxu2 }
 0x905   : > { %v10720_v52 = vadd.f32 %v6395_v49, %v6213_v20 }
 0x906   : > { %7630 = vmatmul.msk.f32.vlgmr.msrb.gmra.mxu3 %vm426_vm4, %v6523_v41  ;;  %v6526_v41 = vld [vmem:[#allocation3 + $0x52] sm:$0xff] }
 0x907   : > { %v5844_v54 = vpop.f32.mrf.mxu0 }
 0x908   : > { %v6123_v2 = vpop.f32.mrf.mxu1  ;;  %v5936_v14 = vadd.f32 %v5844_v54, %v10528_v30 }
 0x909   : > { %v5608_v31 = vpop.f32.mrf.mxu3  ;;  %7613 = vmatmul.msk.f32.gmra.mxu2 %vm426_vm4, %v6262_v22 }
 0x90a   : > { %v10725_v51 = vadd.f32 %v5608_v31, %v10494_v50  ;;  %v6215_v62 = vadd.f32 %v6123_v2, %v5936_v14  ;;  %7546 = vmatmul.msk.f32.gmra.mxu0 %vm426_vm4, %v11370_v15  ;;  %v6265_v31 = vld [vmem:[#allocation3 + $0x121] sm:$0xff] }
 0x90b   : > { %7580 = vmatmul.msk.f32.gmra.mxu1 %vm426_vm4, %v11371_v4  ;;  %v11376_v15 = vld [vmem:[#allocation39_spill] sm:$0xff] }
 0x90c   : > { %v6398_v63 = vpop.f32.mrf.mxu2  ;;  %v11377_v4 = vld [vmem:[#allocation43_spill] sm:$0xff] }
 0x90d   : > { %v10732_v35 = vadd.f32 %v6398_v63, %v6214_v29 }
 0x90e   : > { %7631 = vmatmul.msk.f32.gmra.mxu3 %vm426_vm4, %v6524_v43  ;;  %v6527_v43 = vld [vmem:[#allocation3 + $0x62] sm:$0xff] }
 0x90f   : > { %v5847_v30 = vpop.f32.mrf.mxu0 }
 0x910   : > { %v6126_v60 = vpop.f32.mrf.mxu1  ;;  %v5937_v50 = vadd.f32 %v5847_v30, %v10542_v28 }
 0x911   : > { %v5611_v6 = vpop.f32.mrf.mxu3  ;;  %7614 = vmatmul.msk.f32.gmra.mxu2 %vm426_vm4, %v6263_v9 }
 0x912   : > { %v10737_v19 = vadd.f32 %v5611_v6, %v10508_v46  ;;  %v6216_v20 = vadd.f32 %v6126_v60, %v5937_v50  ;;  %7547 = vmatmul.msk.f32.gmra.mxu0 %vm426_vm4, %v11372_v32  ;;  %v6266_v6 = vld [vmem:[#allocation3 + $0x129] sm:$0xff]  ;;  %v11378_v32 = vld [vmem:[#allocation41_spill] sm:$0xff] }
 0x913   : > { %7581 = vmatmul.msk.f32.gmra.mxu1 %vm426_vm4, %v11373_v26  ;;  %v11379_v26 = vld [vmem:[#allocation25_spill] sm:$0xff] }
 0x914   : > { %v6401_v47 = vpop.f32.mrf.mxu2 }
 0x915   : > { %v10744_v57 = vadd.f32 %v6401_v47, %v6215_v62 }
 0x916   : > { %7632 = vmatmul.msk.f32.gmra.mxu3 %vm426_vm4, %v6525_v36  ;;  %v6528_v36 = vld [vmem:[#allocation3 + $0x6a] sm:$0xff] }
 0x917   : > { %v5850_v28 = vpop.f32.mrf.mxu0 }
 0x918   : > { %v6129_v24 = vpop.f32.mrf.mxu1  ;;  %v5938_v46 = vadd.f32 %v5850_v28, %v10556_v59 }
 0x919   : > { %v5614_v11 = vpop.f32.mrf.mxu3  ;;  %7615 = vmatmul.msk.f32.gmra.mxu2 %vm426_vm4, %v6264_v44 }
 0x91a   : > { %v10749_v17 = vadd.f32 %v5614_v11, %v10522_v18  ;;  %v6217_v29 = vadd.f32 %v6129_v24, %v5938_v46  ;;  %7548 = vmatmul.msk.f32.gmra.mxu0 %vm426_vm4, %v11374_v21  ;;  %v6267_v46 = vld [vmem:[#allocation3 + $0x139] sm:$0xff]  ;;  %v11380_v21 = vld [vmem:[#allocation19_spill] sm:$0xff] }
 0x91b   : > { %7582 = vmatmul.msk.f32.gmra.mxu1 %vm426_vm4, %v11375_v1  ;;  %v11381_v1 = vld [vmem:[#allocation47_spill] sm:$0xff] }
 0x91c   : > { %v6404_v49 = vpop.f32.mrf.mxu2 }
 0x91d   : > { %v10756_v54 = vadd.f32 %v6404_v49, %v6216_v20 }
 0x91e   : > { %7633 = vmatmul.msk.f32.gmra.mxu3 %vm426_vm4, %v6526_v41  ;;  %v6529_v41 = vld [vmem:[#allocation3 + $0x7a] sm:$0xff] }
 0x91f   : > { %v5853_v59 = vpop.f32.mrf.mxu0 }
 0x920   : > { %v6132_v2 = vpop.f32.mrf.mxu1  ;;  %v5939_v18 = vadd.f32 %v5853_v59, %v10570_v42 }
 0x921   : > { %v5617_v14 = vpop.f32.mrf.mxu3  ;;  %7616 = vmatmul.msk.f32.gmra.mxu2 %vm426_vm4, %v6265_v31 }
 0x922   : > { %v10761_v22 = vadd.f32 %v5617_v14, %v10536_v12  ;;  %v6218_v62 = vadd.f32 %v6132_v2, %v5939_v18  ;;  %7549 = vmatmul.msk.f32.gmra.mxu0 %vm426_vm4, %v11376_v15  ;;  %v6268_v2 = vld [vmem:[#allocation3 + $0x141] sm:$0xff]  ;;  %v11382_v18 = vld [vmem:[#allocation48_spill] sm:$0xff] }
 0x923   : > { %7583 = vmatmul.msk.f32.gmra.mxu1 %vm426_vm4, %v11377_v4  ;;  %v11383_v14 = vld [vmem:[#allocation51_spill] sm:$0xff] }
 0x924   : > { %v6407_v63 = vpop.f32.mrf.mxu2 }
 0x925   : > { %v10768_v30 = vadd.f32 %v6407_v63, %v6217_v29  ;;  %v6269_v63 = vld [vmem:[#allocation3 + $0x151] sm:$0xff] }
 0x926   : > { %7634 = vmatmul.msk.f32.gmra.mxu3 %vm426_vm4, %v6527_v43 }
 0x927   : > { %v5856_v42 = vpop.f32.mrf.mxu0 }
 0x928   : > { %v6135_v60 = vpop.f32.mrf.mxu1  ;;  %v5940_v12 = vadd.f32 %v5856_v42, %v10584_v61  ;;  %v11385_v42 = vld [vmem:[#allocation55_spill] sm:$0xff] }
 0x929   : > { %v5620_v50 = vpop.f32.mrf.mxu3  ;;  %7617 = vmatmul.msk.f32.gmra.mxu2 %vm426_vm4, %v6266_v6 }
 0x92a   : > { %v10773_v9 = vadd.f32 %v5620_v50, %v10550_v7  ;;  %v6219_v20 = vadd.f32 %v6135_v60, %v5940_v12  ;;  %7550 = vmatmul.msk.f32.gmra.mxu0 %vm426_vm4, %v11378_v32  ;;  %v6531_v60 = vld [vmem:[#allocation3 + $0x92] sm:$0xff]  ;;  %v6532_v32 = vld [vmem:[#allocation3 + $0x9a] sm:$0xff] }
 0x92b   : > { %7584 = vmatmul.msk.f32.gmra.mxu1 %vm426_vm4, %v11379_v26  ;;  %v6270_v50 = vld [vmem:[#allocation3 + $0x159] sm:$0xff] }
 0x92c   : > { %v6410_v47 = vpop.f32.mrf.mxu2 }
 0x92d   : > { %v10780_v28 = vadd.f32 %v6410_v47, %v6218_v62  ;;  %v6530_v62 = vld [vmem:[#allocation3 + $0x82] sm:$0xff] }
 0x92e   : > { %7635 = vmatmul.msk.f32.gmra.mxu3 %vm426_vm4, %v6528_v36  ;;  %v6271_v47 = vld [vmem:[#allocation3 + $0x169] sm:$0xff] }
 0x92f   : > { %v5859_v61 = vpop.f32.mrf.mxu0 }
 0x930   : > { %v5941_v24 = vadd.f32 %v5859_v61, %v10598_v3  ;;  %v6138_v11 = vpop.f32.mrf.mxu1  ;;  %v11389_v61 = vld [vmem:[#allocation63_spill] sm:$0xff] }
 0x931   : > { %v5623_v7 = vpop.f32.mrf.mxu3  ;;  %7618 = vmatmul.msk.f32.gmra.mxu2 %vm426_vm4, %v6267_v46  ;;  %v6272_v46 = vld [vmem:[#allocation3 + $0x171] sm:$0xff] }
 0x932   : > { %v10785_v44 = vadd.f32 %v5623_v7, %v10564_v5  ;;  %v6220_v29 = vadd.f32 %v6138_v11, %v5941_v24  ;;  %7551 = vmatmul.msk.f32.gmra.mxu0 %vm426_vm4, %v11380_v21  ;;  %v6533_v24 = vld [vmem:[#allocation3 + $0xaa] sm:$0xff]  ;;  %v6534_v21 = vld [vmem:[#allocation3 + $0xb2] sm:$0xff] }
 0x933   : > { %7585 = vmatmul.msk.f32.gmra.mxu1 %vm426_vm4, %v11381_v1 }
 0x934   : > { %v6413_v49 = vpop.f32.mrf.mxu2 }
 0x935   : > { %v10792_v59 = vadd.f32 %v6413_v49, %v6219_v20  ;;  %v11387_v20 = vld [vmem:[#allocation59_spill] sm:$0xff] }
 0x936   : > { %7636 = vmatmul.msk.f32.gmra.mxu3 %vm426_vm4, %v6529_v41  ;;  %v11393_v41 = vld [vmem:[#allocation68_spill] sm:$0xff] }
 0x939   : > { %v5626_v3 = vpop.f32.mrf.mxu3  ;;  %7619 = vmatmul.msk.f32.gmra.mxu2 %vm426_vm4, %v6268_v2  ;;  %v5997_v2 = vld [vmem:[#allocation3 + $0x198] sm:$0xff] }
 0x93a   : > { %v10796_v5 = vadd.f32 %v5626_v3, %v10578_v27  ;;  %7552 = vmatmul.msk.f32.gmra.mxu0 %vm426_vm4, %v11382_v18  ;;  %v11384_v27 = vld [vmem:[#allocation52_spill] sm:$0xff]  ;;  %v6535_v3 = vld [vmem:[#allocation3 + $0xc2] sm:$0xff] }
 0x93b   : > { %7586 = vmatmul.msk.f32.gmra.mxu1 %vm426_vm4, %v11383_v14 }
 0x93c   : > { %v6416_v31 = vpop.f32.mrf.mxu2 }
 0x93d   : > { %v10803_v15 = vadd.f32 %v6416_v31, %v6220_v29  ;;  %v11391_v29 = vld [vmem:[#allocation66_spill] sm:$0xff] }
 0x93e   : > { %7637 = vmatmul.msk.f32.gmra.mxu3 %vm426_vm4, %v6530_v62  ;;  %v10855_v31 = vld [vmem:[#allocation3 + $0x182] sm:$0xff] }
 0x93f   : > { %v5998_v62 = vld [vmem:[#allocation3 + $0x1a0] sm:$0xff] }
 0x941   : > { %v5629_v4 = vpop.f32.mrf.mxu3  ;;  %7620 = vmatmul.msk.f32.gmra.mxu2 %vm426_vm4, %v6269_v63 }
 0x942   : > { %v10807_v43 = vadd.f32 %v5629_v4, %v10592_v16  ;;  %7553 = vmatmul.msk.f32.gmra.mxu0 %vm426_vm4, %v11384_v27  ;;  %v11386_v16 = vld [vmem:[#allocation56_spill] sm:$0xff]  ;;  %v6276_v27 = vld [vmem:[#allocation3 + $0x1a1] sm:$0xff] }
 0x943   : > { %7587 = vmatmul.msk.f32.gmra.mxu1 %vm426_vm4, %v11385_v42 }
 0x946   : > { %7638 = vmatmul.msk.f32.gmra.mxu3 %vm426_vm4, %v6531_v60 }
 0x949   : > { %v5632_v12 = vpop.f32.mrf.mxu3  ;;  %7621 = vmatmul.msk.f32.gmra.mxu2 %vm426_vm4, %v6270_v50 }
 0x94a   : > { %v10816_v6 = vadd.f32 %v5632_v12, %v10606_v40  ;;  %7554 = vmatmul.msk.f32.gmra.mxu0 %vm426_vm4, %v11386_v16  ;;  %v11388_v40 = vld [vmem:[#allocation60_spill] sm:$0xff] }
 0x94b   : > { %7588 = vmatmul.msk.f32.gmra.mxu1 %vm426_vm4, %v11387_v20  ;;  %v6539_v16 = vld [vmem:[#allocation3 + $0xf2] sm:$0xff]  ;;  %v10885_v20 = vld [vmem:[%s11072_s8] ss:$0 sm:$0xff] }
 0x94e   : > { %7639 = vmatmul.msk.f32.gmra.mxu3 %vm426_vm4, %v6532_v32 }
 0x951   : > { %v5635_v26 = vpop.f32.mrf.mxu3  ;;  %7622 = vmatmul.msk.f32.gmra.mxu2 %vm426_vm4, %v6271_v47 }
 0x952   : > { %v10825_v36 = vadd.f32 %v5635_v26, %v10620_v13  ;;  %7555 = vmatmul.msk.f32.gmra.mxu0 %vm426_vm4, %v11388_v40  ;;  %v11390_v13 = vld [vmem:[#allocation64_spill] sm:$0xff]  ;;  %v10891_v26 = vld [vmem:[%s11073_s9] ss:$0 sm:$0xff] }
 0x953   : > { %7589 = vmatmul.msk.f32.gmra.mxu1 %vm426_vm4, %v11389_v61 }
 0x956   : > { %7640 = vmatmul.msk.f32.gmra.mxu3 %vm426_vm4, %v6533_v24  ;;  %v10896_v24 = vpop.f32.mrf.mxu0 }
 0x959   : > { %v5638_v7 = vpop.f32.mrf.mxu3  ;;  %7623 = vmatmul.msk.f32.gmra.mxu2 %vm426_vm4, %v6272_v46 }
 0x95a   : > { %v10834_v11 = vadd.f32 %v5638_v7, %v10634_v25  ;;  %7556 = vmatmul.msk.f32.gmra.mxu0 %vm426_vm4, %v11390_v13  ;;  %v11392_v25 = vld [vmem:[#allocation67_spill] sm:$0xff] }
 0x95b   : > { %7590 = vmatmul.msk.f32.gmra.mxu1 %vm426_vm4, %v11391_v29  ;;  %v6541_v13 = vld [vmem:[#allocation3 + $0x10a] sm:$0xff]  ;;  %v10900_v29 = vpop.f32.mrf.mxu1 }
 0x95e   : > { %7641 = vmatmul.msk.f32.gmra.mxu3 %vm426_vm4, %v6534_v21 }
 0x961   : > { %v5641_v1 = vpop.f32.mrf.mxu3  ;;  %7624 = vmatmul.msk.f32.gmra.mxu2 %vm426_vm4, %v10689_v34  ;;  %v6275_v34 = vld [vmem:[#allocation3 + $0x199] sm:$0xff] }
 0x962   : > { %v10843_v49 = vadd.f32 %v5641_v1, %v10648_v45  ;;  %7557 = vmatmul.msk.f32.gmra.mxu0 %vm426_vm4, %v11392_v25  ;;  %v6536_v45 = vld [vmem:[#allocation3 + $0xca] sm:$0xff]  ;;  %v10904_v1 = vpop.f32.mrf.mxu2 }
 0x963   : > { %7591 = vmatmul.msk.f32.gmra.mxu1 %vm426_vm4, %v11393_v41 }
 0x966   : > { %7642 = vmatmul.msk.f32.gmra.mxu3 %vm426_vm4, %v6535_v3 }
 0x969   : > { %v5644_v18 = vpop.f32.mrf.mxu3  ;;  %7625 = vmatmul.msk.f32.gmra.mxu2 %vm426_vm4, %v10705_v23  ;;  %v6537_v23 = vld [vmem:[#allocation3 + $0xda] sm:$0xff] }
 0x96a   : > { %v10853_v14 = vadd.f32 %v5644_v18, %v10662_v0  ;;  %7558 = vmatmul.msk.f32.gmra.mxu0 %vm426_vm4, %v10855_v31  ;;  %v10866_v0 = vld [vmem:[#allocation3 + $0x18a] sm:$0xff]  ;;  %v6542_v18 = vld [vmem:[#allocation3 + $0x112] sm:$0xff] }
 0x96b   : > { %7592 = vmatmul.msk.f32.gmra.mxu1 %vm426_vm4, %v5997_v2  ;;  %v10907_v2 = vpop.f32.mrf.mxu0 }
 0x96e   : > { %7643 = vmatmul.msk.f32.gmra.mxu3 %vm426_vm4, %v6536_v45 }
 0x971   : > { %v5647_v4 = vpop.f32.mrf.mxu3  ;;  %7626 = vmatmul.msk.f32.gmra.mxu2 %vm426_vm4, %v6275_v34  ;;  %v10912_v34 = vpop.f32.mrf.mxu1 }
 0x972   : > { %v10864_v63 = vadd.f32 %v5647_v4, %v10676_v56  ;;  %7559 = vmatmul.msk.f32.gmra.mxu0 %vm426_vm4, %v10866_v0  ;;  %v6538_v56 = vld [vmem:[#allocation3 + $0xe2] sm:$0xff]  ;;  %v10914_v4 = vpop.f32.mrf.mxu2 }
 0x973   : > { %7593 = vmatmul.msk.f32.gmra.mxu1 %vm426_vm4, %v5998_v62 }
 0x976   : > { %7644 = vmatmul.msk.f32.gmra.mxu3 %vm426_vm4, %v6537_v23 }
 0x979   : > { %v5650_v42 = vpop.f32.mrf.mxu3  ;;  %7627 = vmatmul.msk.f32.gmra.mxu2 %vm426_vm4, %v6276_v27 }
 0x97a   : > { %v10874_v60 = vadd.f32 %v5650_v42, %v10691_v48  ;;  %v10918_v42 = vpop.f32.mrf.mxu0 }
 0x97e   : > { %7645 = vmatmul.msk.f32.gmra.mxu3 %vm426_vm4, %v6538_v56  ;;  %v6543_v56 = vld [vmem:[#allocation3 + $0x122] sm:$0xff] }
 0x981   : > { %v5653_v12 = vpop.f32.mrf.mxu3 }
 0x982   : > { %v10879_v50 = vadd.f32 %v5653_v12, %v10707_v53  ;;  %v6540_v53 = vld [vmem:[#allocation3 + $0xfa] sm:$0xff] }
 0x986   : > { %7646 = vmatmul.msk.f32.gmra.mxu3 %vm426_vm4, %v6539_v16 }
 0x989   : > { %v6673_v32 = vpop.f32.mrf.mxu3 }
 0x98a   : > { %v6769_v48 = vadd.f32 %v6673_v32, %v10720_v52 }
 0x98c   : > { %v6805_v47 = vmul.f32 %v10885_v20, %v6769_v48  ;;  %v10922_v48 = vpop.f32.mrf.mxu1 }
 0x98e   : > { %v6841_v40 = vadd.f32 %v10891_v26, %v6805_v47  ;;  %7647 = vmatmul.msk.f32.gmra.mxu3 %vm426_vm4, %v6540_v53  ;;  %v10925_v53 = vpop.f32.mrf.mxu2 }
 0x990   : > { %v6873_v61 = vmax.f32 %v6841_v40, 0.0  ;;  %v6544_v40 = vld [vmem:[#allocation3 + $0x12a] sm:$0xff] }
 0x991   : > { %v6676_v7 = vpop.f32.mrf.mxu3 }
 0x992   : > { %v6770_v46 = vadd.f32 %v6676_v7, %v10732_v35  ;;  %6905 = vxpose.xlu2.b32.start [1/16] (narrow) %v6873_v61, 8  ;;  %v10930_v7 = vpop.f32.mrf.mxu0 }
 0x994   : > { %v6806_v52 = vmul.f32 %v10885_v20, %v6770_v46 }
 0x996   : > { %v6842_v21 = vadd.f32 %v10891_v26, %v6806_v52  ;;  %7648 = vmatmul.msk.f32.gmra.mxu3 %vm426_vm4, %v6541_v13 }
 0x998   : > { %v6874_v25 = vmax.f32 %v6842_v21, 0.0  ;;  %v10933_v21 = vpop.f32.mrf.mxu1 }
 0x999   : > { %v6679_v41 = vpop.f32.mrf.mxu3 }
 0x99a   : > { %v6771_v3 = vadd.f32 %v6679_v41, %v10744_v57  ;;  %6906 = vxpose.xlu2.b32.cont [2/16] (narrow) %v6874_v25, 8  ;;  %v10936_v25 = vpop.f32.mrf.mxu2  ;;  %v6545_v41 = vld [vmem:[#allocation3 + $0x13a] sm:$0xff] }
 0x99c   : > { %v6807_v35 = vmul.f32 %v10885_v20, %v6771_v3 }
 0x99e   : > { %v6843_v45 = vadd.f32 %v10891_v26, %v6807_v35  ;;  %7649 = vmatmul.msk.f32.gmra.mxu3 %vm426_vm4, %v6542_v18  ;;  %v10940_v18 = vpop.f32.mrf.mxu0 }
 0x9a0   : > { %v6875_v62 = vmax.f32 %v6843_v45, 0.0 }
 0x9a1   : > { %v6682_v23 = vpop.f32.mrf.mxu3 }
 0x9a2   : > { %v6772_v27 = vadd.f32 %v6682_v23, %v10756_v54  ;;  %6907 = vxpose.xlu2.b32.cont [3/16] (narrow) %v6875_v62, 8  ;;  %v6546_v23 = vld [vmem:[#allocation3 + $0x142] sm:$0xff] }
 0x9a4   : > { %v6808_v57 = vmul.f32 %v10885_v20, %v6772_v27  ;;  %v10944_v27 = vpop.f32.mrf.mxu1 }
 0x9a6   : > { %v6844_v12 = vadd.f32 %v10891_v26, %v6808_v57  ;;  %7650 = vmatmul.msk.f32.gmra.mxu3 %vm426_vm4, %v6543_v56  ;;  %v10948_v56 = vpop.f32.mrf.mxu2 }
 0x9a8   : > { %v6876_v16 = vmax.f32 %v6844_v12, 0.0 }
 0x9a9   : > { %v6685_v32 = vpop.f32.mrf.mxu3 }
 0x9aa   : > { %v6773_v47 = vadd.f32 %v6685_v32, %v10768_v30  ;;  %6908 = vxpose.xlu2.b32.cont [4/16] (narrow) %v6876_v16, 8  ;;  %v5942_v32 = vadd.f32 %v10896_v24, %v10612_v33 }
 0x9ac   : > { %v6809_v54 = vmul.f32 %v10885_v20, %v6773_v47 }
 0x9ae   : > { %v6845_v61 = vadd.f32 %v10891_v26, %v6809_v54  ;;  %7651 = vmatmul.msk.f32.gmra.mxu3 %vm426_vm4, %v6544_v40  ;;  %v6547_v40 = vld [vmem:[#allocation3 + $0x152] sm:$0xff] }
 0x9b0   : > { %v6877_v46 = vmax.f32 %v6845_v61, 0.0  ;;  %v6221_v61 = vadd.f32 %v10900_v29, %v5942_v32  ;;  %v6549_v32 = vld [vmem:[#allocation3 + $0x16a] sm:$0xff] }
 0x9b1   : > { %v6688_v52 = vpop.f32.mrf.mxu3 }
 0x9b2   : > { %v6774_v13 = vadd.f32 %v6688_v52, %v10780_v28  ;;  %6909 = vxpose.xlu2.b32.cont [5/16] (narrow) %v6877_v46, 8  ;;  %v6499_v52 = vadd.f32 %v10904_v1, %v6221_v61 }
 0x9b4   : > { %v6810_v30 = vmul.f32 %v10885_v20, %v6774_v13  ;;  %v6156_v13 = vpop.f32.mrf.mxu1 }
 0x9b6   : > { %v6846_v3 = vadd.f32 %v10891_v26, %v6810_v30  ;;  %7652 = vmatmul.msk.f32.gmra.mxu3 %vm426_vm4, %v6545_v41  ;;  %v6434_v41 = vpop.f32.mrf.mxu2 }
 0x9b8   : > { %v6878_v35 = vmax.f32 %v6846_v3, 0.0 }
 0x9b9   : > { %v6691_v45 = vpop.f32.mrf.mxu3 }
 0x9ba   : > { %v6775_v62 = vadd.f32 %v6691_v45, %v10792_v59  ;;  %6910 = vxpose.xlu2.b32.cont [6/16] (narrow) %v6878_v35, 8  ;;  %v10953_v59 = vpop.f32.mrf.mxu0  ;;  %v6548_v45 = vld [vmem:[#allocation3 + $0x15a] sm:$0xff] }
 0x9bc   : > { %v6811_v28 = vmul.f32 %v10885_v20, %v6775_v62 }
 0x9be   : > { %v6847_v57 = vadd.f32 %v10891_v26, %v6811_v28  ;;  %7653 = vmatmul.msk.f32.gmra.mxu3 %vm426_vm4, %v6546_v23 }
 0x9c0   : > { %v6879_v12 = vmax.f32 %v6847_v57, 0.0  ;;  %v5944_v57 = vadd.f32 %v10918_v42, %v10640_v8  ;;  %v5945_v8 = vadd.f32 %v10930_v7, %v10654_v58  ;;  %v5946_v58 = vadd.f32 %v10940_v18, %v10668_v38 }
 0x9c1   : > { %v6694_v16 = vpop.f32.mrf.mxu3  ;;  %v5947_v38 = vadd.f32 %v10953_v59, %v10682_v10  ;;  %v6553_v10 = vld [vmem:[#allocation3 + $0x19a] sm:$0xff] }
 0x9c2   : > { %v6776_v47 = vadd.f32 %v6694_v16, %v10803_v15  ;;  %6911 = vxpose.xlu2.b32.cont [7/16] (narrow) %v6879_v12, 8  ;;  %v5943_v15 = vadd.f32 %v10907_v2, %v10626_v55  ;;  %v5880_v35 = vpop.f32.mrf.mxu0  ;;  %v6159_v55 = vpop.f32.mrf.mxu1 }
 0x9c3   : > { %v6437_v12 = vpop.f32.mrf.mxu2 }
 0x9c4   : > { %v6812_v54 = vmul.f32 %v10885_v20, %v6776_v47  ;;  %v6222_v29 = vadd.f32 %v10912_v34, %v5943_v15  ;;  %v6223_v34 = vadd.f32 %v10922_v48, %v5944_v57  ;;  %v6224_v48 = vadd.f32 %v10933_v21, %v5945_v8 }
 0x9c6   : > { %v6848_v46 = vadd.f32 %v10891_v26, %v6812_v54  ;;  %7654 = vmatmul.msk.f32.gmra.mxu3 %vm426_vm4, %v6547_v40  ;;  %v6500_v1 = vadd.f32 %v10914_v4, %v6222_v29  ;;  %v6501_v4 = vadd.f32 %v10925_v53, %v6223_v34  ;;  %v6502_v53 = vadd.f32 %v10936_v25, %v6224_v48 }
 0x9c8   : > { %v6880_v30 = vmax.f32 %v6848_v46, 0.0 }
 0x9c9   : > { %v6697_v33 = vpop.f32.mrf.mxu3 }
 0x9ca   : > { %v6777_v24 = vadd.f32 %v6697_v33, %v6499_v52  ;;  %6912 = vxpose.xlu2.b32.cont [8/16] (narrow) %v6880_v30, 8  ;;  %v5883_v54 = vpop.f32.mrf.mxu0  ;;  %v6162_v46 = vpop.f32.mrf.mxu1  ;;  %v6550_v33 = vld [vmem:[#allocation3 + $0x172] sm:$0xff] }
 0x9cb   : > { %v6440_v30 = vpop.f32.mrf.mxu2 }
 0x9cc   : > { %v6813_v3 = vmul.f32 %v10885_v20, %v6777_v24 }
 0x9ce   : > { %v6849_v62 = vadd.f32 %v10891_v26, %v6813_v3  ;;  %7655 = vmatmul.msk.f32.gmra.mxu3 %vm426_vm4, %v6548_v45 }
 0x9d0   : > { %v6881_v28 = vmax.f32 %v6849_v62, 0.0  ;;  %v6225_v62 = vadd.f32 %v10944_v27, %v5946_v58  ;;  %v6226_v27 = vadd.f32 %v6156_v13, %v5947_v38 }
 0x9d1   : > { %v6700_v23 = vpop.f32.mrf.mxu3 }
 0x9d2   : > { %v6778_v2 = vadd.f32 %v6700_v23, %v6500_v1  ;;  %6913 = vxpose.xlu2.b32.cont [9/16] (narrow) %v6881_v28, 8  ;;  %v5886_v3 = vpop.f32.mrf.mxu0  ;;  %v6165_v1 = vpop.f32.mrf.mxu1  ;;  %v6503_v25 = vadd.f32 %v10948_v56, %v6225_v62 }
 0x9d3   : > { %v6443_v28 = vpop.f32.mrf.mxu2 }
 0x9d4   : > { %v6814_v16 = vmul.f32 %v10885_v20, %v6778_v2 }
 0x9d6   : > { %v6850_v47 = vadd.f32 %v10891_v26, %v6814_v16  ;;  %7656 = vmatmul.msk.f32.gmra.mxu3 %vm426_vm4, %v6549_v32 }
 0x9d8   : > { %v6882_v40 = vmax.f32 %v6850_v47, 0.0 }
 0x9d9   : > { %v6703_v61 = vpop.f32.mrf.mxu3 }
 0x9da   : > { %v6779_v42 = vadd.f32 %v6703_v61, %v6501_v4  ;;  %6914 = vxpose.xlu2.b32.cont [10/16] (narrow) %v6882_v40, 8  ;;  %v5889_v2 = vpop.f32.mrf.mxu0  ;;  %v6168_v34 = vpop.f32.mrf.mxu1  ;;  %v5948_v40 = vadd.f32 %v5880_v35, %v10698_v39  ;;  %v6554_v35 = vld [vmem:[#allocation3 + $0x1a2] sm:$0xff] }
 0x9db   : > { %v6446_v56 = vpop.f32.mrf.mxu2 }
 0x9dc   : > { %v6815_v52 = vmul.f32 %v10885_v20, %v6779_v42  ;;  %v6227_v42 = vadd.f32 %v6159_v55, %v5948_v40 }
 0x9de   : > { %v6851_v15 = vadd.f32 %v10891_v26, %v6815_v52  ;;  %7657 = vmatmul.msk.f32.gmra.mxu3 %vm426_vm4, %v6550_v33  ;;  %v6505_v52 = vadd.f32 %v6437_v12, %v6227_v42  ;;  %v5949_v33 = vadd.f32 %v5883_v54, %v10713_v37 }
 0x9e0   : > { %v6883_v24 = vmax.f32 %v6851_v15, 0.0 }
 0x9e1   : > { %v6706_v45 = vpop.f32.mrf.mxu3 }
 0x9e2   : > { %v6780_v7 = vadd.f32 %v6706_v45, %v6502_v53  ;;  %6915 = vxpose.xlu2.b32.cont [11/16] (narrow) %v6883_v24, 8  ;;  %v5892_v8 = vpop.f32.mrf.mxu0  ;;  %v6171_v48 = vpop.f32.mrf.mxu1  ;;  %v6228_v24 = vadd.f32 %v6162_v46, %v5949_v33 }
 0x9e3   : > { %v6449_v39 = vpop.f32.mrf.mxu2  ;;  %v5952_v40 = vadd.f32 %v5892_v8, %v10749_v17 }
 0x9e4   : > { %v6816_v29 = vmul.f32 %v10885_v20, %v6780_v7  ;;  %v6506_v58 = vadd.f32 %v6440_v30, %v6228_v24 }
 0x9e6   : > { %v6852_v21 = vadd.f32 %v10891_v26, %v6816_v29  ;;  %7658 = vmatmul.msk.f32.gmra.mxu3 %vm426_vm4, %v10855_v31  ;;  %v6504_v31 = vadd.f32 %v6434_v41, %v6226_v27  ;;  %v5950_v29 = vadd.f32 %v5886_v3, %v10725_v51 }
 0x9e8   : > { %v6884_v23 = vmax.f32 %v6852_v21, 0.0 }
 0x9e9   : > { %v6709_v57 = vpop.f32.mrf.mxu3 }
 0x9ea   : > { %v6781_v18 = vadd.f32 %v6709_v57, %v6503_v25  ;;  %6916 = vxpose.xlu2.b32.cont [12/16] (narrow) %v6884_v23, 8  ;;  %v5895_v55 = vpop.f32.mrf.mxu0  ;;  %v6174_v37 = vpop.f32.mrf.mxu1  ;;  %v6229_v25 = vadd.f32 %v6165_v1, %v5950_v29 }
 0x9eb   : > { %v6452_v21 = vpop.f32.mrf.mxu2 }
 0x9ec   : > { %v6817_v16 = vmul.f32 %v10885_v20, %v6781_v18  ;;  %v6507_v46 = vadd.f32 %v6443_v28, %v6229_v25 }
 0x9ee   : > { %v6853_v32 = vadd.f32 %v10891_v26, %v6817_v16  ;;  %7659 = vmatmul.msk.f32.gmra.mxu3 %vm426_vm4, %v10866_v0  ;;  %v5951_v16 = vadd.f32 %v5889_v2, %v10737_v19  ;;  %v6231_v19 = vadd.f32 %v6171_v48, %v5952_v40 }
 0x9f0   : > { %v6885_v47 = vmax.f32 %v6853_v32, 0.0  ;;  %v6230_v51 = vadd.f32 %v6168_v34, %v5951_v16 }
 0x9f1   : > { %v6712_v4 = vpop.f32.mrf.mxu3 }
 0x9f2   : > { %v6782_v61 = vadd.f32 %v6712_v4, %v6504_v31  ;;  %6917 = vxpose.xlu2.b32.cont [13/16] (narrow) %v6885_v47, 8  ;;  %v5898_v38 = vpop.f32.mrf.mxu0  ;;  %v6177_v3 = vpop.f32.mrf.mxu1  ;;  %v6508_v47 = vadd.f32 %v6446_v56, %v6230_v51 }
 0x9f3   : > { %v6455_v31 = vpop.f32.mrf.mxu2 }
 0x9f4   : > { %v6818_v59 = vmul.f32 %v10885_v20, %v6782_v61 }
 0x9f6   : > { %v6854_v13 = vadd.f32 %v10891_v26, %v6818_v59  ;;  %7660 = vmatmul.msk.f32.gmra.mxu3 %vm426_vm4, %v6553_v10  ;;  %v6509_v59 = vadd.f32 %v6449_v39, %v6231_v19 }
 0x9f8   : > { %v6886_v0 = vmax.f32 %v6854_v13, 0.0 }
 0x9f9   : > { %v6715_v41 = vpop.f32.mrf.mxu3 }
 0x9fa   : > { %v6783_v15 = vadd.f32 %v6715_v41, %v6505_v52  ;;  %6918 = vxpose.xlu2.b32.cont [14/16] (narrow) %v6886_v0, 8  ;;  %v5901_v61 = vpop.f32.mrf.mxu0  ;;  %v6180_v42 = vpop.f32.mrf.mxu1  ;;  %v5953_v0 = vadd.f32 %v5895_v55, %v10761_v22 }
 0x9fb   : > { %v6458_v13 = vpop.f32.mrf.mxu2 }
 0x9fc   : > { %v6819_v53 = vmul.f32 %v10885_v20, %v6783_v15  ;;  %v6232_v8 = vadd.f32 %v6174_v37, %v5953_v0  ;;  %v5955_v37 = vadd.f32 %v5901_v61, %v10785_v44 }
 0x9fe   : > { %v6855_v45 = vadd.f32 %v10891_v26, %v6819_v53  ;;  %7661 = vmatmul.msk.f32.gmra.mxu3 %vm426_vm4, %v6554_v35  ;;  %v6510_v15 = vadd.f32 %v6452_v21, %v6232_v8  ;;  %v5954_v53 = vadd.f32 %v5898_v38, %v10773_v9 }
 0xa00   : > { %v6887_v7 = vmax.f32 %v6855_v45, 0.0  ;;  %v6233_v22 = vadd.f32 %v6177_v3, %v5954_v53 }
 0xa01   : > { %v6718_v12 = vpop.f32.mrf.mxu3 }
 0xa02   : > { %v6784_v62 = vadd.f32 %v6718_v12, %v6506_v58  ;;  %6919 = vxpose.xlu2.b32.cont [15/16] (narrow) %v6887_v7, 8  ;;  %v5904_v17 = vpop.f32.mrf.mxu0  ;;  %v6183_v39 = vpop.f32.mrf.mxu1  ;;  %v6511_v12 = vadd.f32 %v6455_v31, %v6233_v22 }
 0xa03   : > { %v6461_v45 = vpop.f32.mrf.mxu2 }
 0xa04   : > { %v6820_v54 = vmul.f32 %v10885_v20, %v6784_v62 }
 0xa06   : > { %v6856_v23 = vadd.f32 %v10891_v26, %v6820_v54 }
 0xa08   : > { %v6888_v57 = vmax.f32 %v6856_v23, 0.0  ;;  %v6234_v23 = vadd.f32 %v6180_v42, %v5955_v37 }
 0xa09   : > { %v6721_v18 = vpop.f32.mrf.mxu3 }
 0xa0a   : > { %v6785_v30 = vadd.f32 %v6721_v18, %v6507_v46  ;;  %6920 = vxpose.xlu2.b32.end [16/16] (narrow) %v6888_v57, 8  ;;  %v5907_v7 = vpop.f32.mrf.mxu0  ;;  %v6186_v21 = vpop.f32.mrf.mxu1  ;;  %v6512_v57 = vadd.f32 %v6458_v13, %v6234_v23 }
 0xa0b   : > { %v6464_v25 = vpop.f32.mrf.mxu2  ;;  %v5957_v40 = vadd.f32 %v5907_v7, %v10807_v43 }
 0xa0c   : > { %v6821_v27 = vmul.f32 %v10885_v20, %v6785_v30  ;;  %v5956_v30 = vadd.f32 %v5904_v17, %v10796_v5 }
 0xa0d   : > { %v6236_v5 = vadd.f32 %v6186_v21, %v5957_v40 }
 0xa0e   : > { %v6857_v32 = vadd.f32 %v10891_v26, %v6821_v27  ;;  %v6235_v44 = vadd.f32 %v6183_v39, %v5956_v30 }
 0xa10   : > { %v6889_v4 = vmax.f32 %v6857_v32, 0.0 }
 0xa11   : > { %v6724_v1 = vpop.f32.mrf.mxu3 }
 0xa12   : > { %v6786_v28 = vadd.f32 %v6724_v1, %v6508_v47  ;;  %6937 = vxpose.xlu1.b32.start [1/16] (narrow) %v6889_v4, 8  ;;  %v5910_v18 = vpop.f32.mrf.mxu0  ;;  %v6189_v3 = vpop.f32.mrf.mxu1  ;;  %v6513_v47 = vadd.f32 %v6461_v45, %v6235_v44 }
 0xa13   : > { %v6467_v31 = vpop.f32.mrf.mxu2 }
 0xa14   : > { %v6822_v10 = vmul.f32 %v10885_v20, %v6786_v28 }
 0xa16   : > { %v6858_v2 = vadd.f32 %v10891_v26, %v6822_v10 }
 0xa18   : > { %v6890_v34 = vmax.f32 %v6858_v2, 0.0  ;;  %v6514_v2 = vadd.f32 %v6464_v25, %v6236_v5 }
 0xa19   : > { %v6727_v52 = vpop.f32.mrf.mxu3 }
 0xa1a   : > { %v6787_v56 = vadd.f32 %v6727_v52, %v6509_v59  ;;  %6938 = vxpose.xlu1.b32.cont [2/16] (narrow) %v6890_v34, 8  ;;  %v5913_v61 = vpop.f32.mrf.mxu0  ;;  %v6192_v59 = vpop.f32.mrf.mxu1  ;;  %v5958_v52 = vadd.f32 %v5910_v18, %v10816_v6 }
 0xa1b   : > { %v6470_v34 = vpop.f32.mrf.mxu2 }
 0xa1c   : > { %v6823_v41 = vmul.f32 %v10885_v20, %v6787_v56 }
 0xa1e   : > { %v6859_v33 = vadd.f32 %v10891_v26, %v6823_v41  ;;  %v6237_v41 = vadd.f32 %v6189_v3, %v5958_v52 }
 0xa20   : > { %v6891_v35 = vmax.f32 %v6859_v33, 0.0  ;;  %v6515_v8 = vadd.f32 %v6467_v31, %v6237_v41 }
 0xa21   : > { %v6730_v48 = vpop.f32.mrf.mxu3 }
 0xa22   : > { %v6788_v24 = vadd.f32 %v6730_v48, %v6510_v15  ;;  %6939 = vxpose.xlu1.b32.cont [3/16] (narrow) %v6891_v35, 8  ;;  %v5916_v43 = vpop.f32.mrf.mxu0  ;;  %v5959_v35 = vadd.f32 %v5913_v61, %v10825_v36  ;;  %v6195_v48 = vpop.f32.mrf.mxu1 }
 0xa23   : > { %v6473_v39 = vpop.f32.mrf.mxu2 }
 0xa24   : > { %v6824_v58 = vmul.f32 %v10885_v20, %v6788_v24  ;;  %v6238_v6 = vadd.f32 %v6192_v59, %v5959_v35 }
 0xa26   : > { %v6860_v55 = vadd.f32 %v10891_v26, %v6824_v58  ;;  %v6516_v22 = vadd.f32 %v6470_v34, %v6238_v6 }
 0xa28   : > { %v6892_v29 = vmax.f32 %v6860_v55, 0.0 }
 0xa29   : > { %v6733_v62 = vpop.f32.mrf.mxu3 }
 0xa2a   : > { %v6789_v54 = vadd.f32 %v6733_v62, %v6511_v12  ;;  %6940 = vxpose.xlu1.b32.cont [4/16] (narrow) %v6892_v29, 8  ;;  %v5919_v58 = vpop.f32.mrf.mxu0  ;;  %v5960_v12 = vadd.f32 %v5916_v43, %v10834_v11  ;;  %v6198_v62 = vpop.f32.mrf.mxu1 }
 0xa2b   : > { %v6476_v37 = vpop.f32.mrf.mxu2 }
 0xa2c   : > { %v6825_v9 = vmul.f32 %v10885_v20, %v6789_v54  ;;  %v6239_v54 = vadd.f32 %v6195_v48, %v5960_v12 }
 0xa2e   : > { %v6861_v46 = vadd.f32 %v10891_v26, %v6825_v9  ;;  %v6517_v9 = vadd.f32 %v6473_v39, %v6239_v54 }
 0xa30   : > { %v6893_v38 = vmax.f32 %v6861_v46, 0.0 }
 0xa31   : > { %v6736_v16 = vpop.f32.mrf.mxu3 }
 0xa32   : > { %v6790_v27 = vadd.f32 %v6736_v16, %v6512_v57  ;;  %6941 = vxpose.xlu1.b32.cont [5/16] (narrow) %v6893_v38, 8  ;;  %v5922_v23 = vpop.f32.mrf.mxu0  ;;  %v5961_v57 = vadd.f32 %v5919_v58, %v10843_v49  ;;  %v6201_v16 = vpop.f32.mrf.mxu1 }
 0xa34   : > { %v6826_v51 = vmul.f32 %v10885_v20, %v6790_v27  ;;  %v6240_v18 = vadd.f32 %v6198_v62, %v5961_v57  ;;  %v6479_v27 = vpop.f32.mrf.mxu2 }
 0xa36   : > { %v6862_v32 = vadd.f32 %v10891_v26, %v6826_v51  ;;  %v6518_v51 = vadd.f32 %v6476_v37, %v6240_v18 }
 0xa38   : > { %v6894_v4 = vmax.f32 %v6862_v32, 0.0  ;;  %v5962_v32 = vadd.f32 %v5922_v23, %v10853_v14 }
 0xa39   : > { %v6739_v1 = vpop.f32.mrf.mxu3 }
 0xa3a   : > { %v6791_v28 = vadd.f32 %v6739_v1, %v6513_v47  ;;  %6942 = vxpose.xlu1.b32.cont [6/16] (narrow) %v6894_v4, 8  ;;  %v5925_v47 = vpop.f32.mrf.mxu0  ;;  %v6241_v4 = vadd.f32 %v6201_v16, %v5962_v32  ;;  %v6204_v40 = vpop.f32.mrf.mxu1 }
 0xa3b   : > { %v5963_v5 = vadd.f32 %v5925_v47, %v10864_v63 }
 0xa3c   : > { %v6827_v10 = vmul.f32 %v10885_v20, %v6791_v28  ;;  %v6519_v28 = vadd.f32 %v6479_v27, %v6241_v4 }
 0xa3d   : > { %v6242_v34 = vadd.f32 %v6204_v40, %v5963_v5 }
 0xa3e   : > { %v6863_v19 = vadd.f32 %v10891_v26, %v6827_v10  ;;  %v6482_v10 = vpop.f32.mrf.mxu2 }
 0xa3f   : > { %v6520_v52 = vadd.f32 %v6482_v10, %v6242_v34 }
 0xa40   : > { %v6895_v42 = vmax.f32 %v6863_v19, 0.0 }
 0xa41   : > { %v6742_v13 = vpop.f32.mrf.mxu3 }
 0xa42   : > { %v6792_v0 = vadd.f32 %v6742_v13, %v6514_v2  ;;  %6943 = vxpose.xlu1.b32.cont [7/16] (narrow) %v6895_v42, 8  ;;  %v6921_v2 = vpop.trf.xlu2  ;;  %v5928_v42 = vpop.f32.mrf.mxu0 }
 0xa43   : > { %6969 = vst [vmem:[%s11046_s27] sm:$0x3f] %v6921_v2  ;;  %v5964_v41 = vadd.f32 %v5928_v42, %v10874_v60 }
 0xa44   : > { %v6828_v56 = vmul.f32 %v10885_v20, %v6792_v0 }
 0xa46   : > { %v6864_v17 = vadd.f32 %v10891_v26, %v6828_v56  ;;  %v6207_v56 = vpop.f32.mrf.mxu1 }
 0xa48   : > { %v6896_v33 = vmax.f32 %v6864_v17, 0.0 }
 0xa49   : > { %v6745_v15 = vpop.f32.mrf.mxu3 }
 0xa4a   : > { %v6793_v53 = vadd.f32 %v6745_v15, %v6515_v8  ;;  %6944 = vxpose.xlu1.b32.cont [8/16] (narrow) %v6896_v33, 8  ;;  %v6485_v8 = vpop.f32.mrf.mxu2  ;;  %v6243_v33 = vadd.f32 %v6207_v56, %v5964_v41  ;;  %v5931_v35 = vpop.f32.mrf.mxu0 }
 0xa4c   : > { %v6829_v24 = vmul.f32 %v10885_v20, %v6793_v53  ;;  %v6521_v48 = vadd.f32 %v6485_v8, %v6243_v33 }
 0xa4e   : > { %v6865_v45 = vadd.f32 %v10891_v26, %v6829_v24  ;;  %v5965_v24 = vadd.f32 %v5931_v35, %v10879_v50 }
 0xa50   : > { %v6897_v55 = vmax.f32 %v6865_v45, 0.0  ;;  %v6210_v45 = vpop.f32.mrf.mxu1 }
 0xa51   : > { %v6748_v7 = vpop.f32.mrf.mxu3 }
 0xa52   : > { %v6794_v29 = vadd.f32 %v6748_v7, %v6516_v22  ;;  %6945 = vxpose.xlu1.b32.cont [9/16] (narrow) %v6897_v55, 8  ;;  %v6488_v58 = vpop.f32.mrf.mxu2  ;;  %v6244_v22 = vadd.f32 %v6210_v45, %v5965_v24 }
 0xa54   : > { %v6830_v36 = vmul.f32 %v10885_v20, %v6794_v29  ;;  %v6522_v7 = vadd.f32 %v6488_v58, %v6244_v22 }
 0xa56   : > { %v6866_v21 = vadd.f32 %v10891_v26, %v6830_v36 }
 0xa58   : > { %v6898_v25 = vmax.f32 %v6866_v21, 0.0 }
 0xa59   : > { %v6751_v46 = vpop.f32.mrf.mxu3 }
 0xa5a   : > { %v6795_v38 = vadd.f32 %v6751_v46, %v6517_v9  ;;  %6946 = vxpose.xlu1.b32.cont [10/16] (narrow) %v6898_v25, 8 }
 0xa5c   : > { %v6831_v11 = vmul.f32 %v10885_v20, %v6795_v38 }
 0xa5e   : > { %v6867_v30 = vadd.f32 %v10891_v26, %v6831_v11 }
 0xa60   : > { %v6899_v44 = vmax.f32 %v6867_v30, 0.0 }
 0xa61   : > { %v6754_v3 = vpop.f32.mrf.mxu3 }
 0xa62   : > { %v6796_v31 = vadd.f32 %v6754_v3, %v6518_v51  ;;  %6947 = vxpose.xlu1.b32.cont [11/16] (narrow) %v6899_v44, 8 }
 0xa64   : > { %v6832_v49 = vmul.f32 %v10885_v20, %v6796_v31 }
 0xa66   : > { %v6868_v1 = vadd.f32 %v10891_v26, %v6832_v49 }
 0xa68   : > { %v6900_v61 = vmax.f32 %v6868_v1, 0.0 }
 0xa69   : > { %v6757_v14 = vpop.f32.mrf.mxu3 }
 0xa6a   : > { %v6797_v19 = vadd.f32 %v6757_v14, %v6519_v28  ;;  %6948 = vxpose.xlu1.b32.cont [12/16] (narrow) %v6900_v61, 8 }
 0xa6c   : > { %v6833_v59 = vmul.f32 %v10885_v20, %v6797_v19 }
 0xa6e   : > { %v6869_v13 = vadd.f32 %v10891_v26, %v6833_v59 }
 0xa70   : > { %v6901_v0 = vmax.f32 %v6869_v13, 0.0 }
 0xa71   : > { %v6760_v43 = vpop.f32.mrf.mxu3 }
 0xa72   : > { %v6798_v17 = vadd.f32 %v6760_v43, %v6520_v52  ;;  %6949 = vxpose.xlu1.b32.cont [13/16] (narrow) %v6901_v0, 8 }
 0xa74   : > { %v6834_v63 = vmul.f32 %v10885_v20, %v6798_v17 }
 0xa76   : > { %v6870_v15 = vadd.f32 %v10891_v26, %v6834_v63 }
 0xa78   : > { %v6902_v53 = vmax.f32 %v6870_v15, 0.0 }
 0xa79   : > { %v6763_v39 = vpop.f32.mrf.mxu3 }
 0xa7a   : > { %v6799_v6 = vadd.f32 %v6763_v39, %v6521_v48  ;;  %6950 = vxpose.xlu1.b32.cont [14/16] (narrow) %v6902_v53, 8 }
 0xa7c   : > { %v6835_v60 = vmul.f32 %v10885_v20, %v6799_v6 }
 0xa7e   : > { %v6871_v55 = vadd.f32 %v10891_v26, %v6835_v60 }
 0xa80   : > { %v6903_v12 = vmax.f32 %v6871_v55, 0.0 }
 0xa81   : > { %v6766_v29 = vpop.f32.mrf.mxu3 }
 0xa82   : > { %v6800_v62 = vadd.f32 %v6766_v29, %v6522_v7  ;;  %6951 = vxpose.xlu1.b32.cont [15/16] (narrow) %v6903_v12, 8 }
 0xa84   : > { %v6836_v36 = vmul.f32 %v10885_v20, %v6800_v62 }
 0xa86   : > { %v6872_v37 = vadd.f32 %v10891_v26, %v6836_v36 }
 0xa88   : > { %v6904_v50 = vmax.f32 %v6872_v37, 0.0 }
 0xa8a   : > { %6952 = vxpose.xlu1.b32.end [16/16] (narrow) %v6904_v50, 8 }
 0xab6   : > { %v6953_v54 = vpop.trf.xlu1 }
 0xab7   : > { %6970 = vst [vmem:[%s11046_s27 + $0x8] sm:$0x3f] %v6953_v54 }
 0xab8 PF: > { %s20_s13 = sadd.s32 1, %s7753_s13  }
 0xab9   : > { %p17_p4 = scmp.ge.s32.totalorder %s20_s13, 4  }
 0xabb   :  { %19 = sbr.rel (!%p17_p4) target bundleno = 1 (0x1), region = 115 }

</bundles_post_ra>
